<compile_context>
chip_gen: v6e
topology: v6e:2x2x1
jax: 0.10.0
libtpu: 0.0.40
codegen_flags: <defaults>
</compile_context>

<pallas_src>
import functools

import jax
import jax.numpy as jnp
from jax.experimental import pallas as pl
from jax.experimental.pallas import tpu as pltpu

_LANE = 128              # TPU lane width (last dim)
_SUBLANE = 8             # TPU sublane width (second-to-last dim, f32)
_STATIC_UNROLL_MAX = 64  # fully unroll the time loop (static indices) up to this T


def _round_up(x, m):
    return ((x + m - 1) // m) * m


def _row_slice(t, Bp):
    """Rows [t*Bp, (t+1)*Bp) of a time-major 2-D (T*Bp, F) buffer."""
    start = t * Bp
    if not isinstance(start, int):
        start = pl.multiple_of(start, Bp)
    return pl.ds(start, Bp)


# ----------------------------------------------------------------------------
# Fused bidirectional GRU layer body (shared by the "sequence" and "head" kernels)
# Gate order (r, z, n) follows PyTorch:
#   r = sig(Wir x + bir + Whr h + bhr)
#   z = sig(Wiz x + biz + Whz h + bhz)
#   n = tanh(Win x + bin + r * (Whn h + bhn))
#   h' = (1 - z) * n + z * h
# (bhr / bhz are folded into the hoisted input-side bias at pack time.)
# ----------------------------------------------------------------------------
def _bigru_recurrence(len_ref, x_ref, wih_ref, bih_ref, whhf_ref, bhnf_ref,
                      whhb_ref, bhnb_ref, gi_ref, seq_ref, *, T, Bp, Hp):
    H3 = 3 * Hp
    track_last = seq_ref is None   # last layer: capture last-valid output instead

    # --- hoisted input projection: one bf16 MXU matmul for all T and both dirs ---
    gi_ref[...] = (
        jnp.dot(x_ref[...].astype(jnp.bfloat16), wih_ref[...],
                preferred_element_type=jnp.float32)
        + bih_ref[...])

    len_vec = len_ref[...]                      # (Bp, 1) int32, loaded once
    bhn_f = bhnf_ref[...]                       # (1, Hp) f32, loaded once
    bhn_b = bhnb_ref[...]

    def gru_cell(gi_t, gh_t, bhn, h):
        r = jax.nn.sigmoid(gi_t[:, 0:Hp] + gh_t[:, 0:Hp])
        z = jax.nn.sigmoid(gi_t[:, Hp:2 * Hp] + gh_t[:, Hp:2 * Hp])
        n = jnp.tanh(gi_t[:, 2 * Hp:H3] + r * (gh_t[:, 2 * Hp:H3] + bhn))
        return (1.0 - z) * n + z * h

    def step(i, carry):
        h_f, h_b, cap_b = carry
        t_f = i
        t_b = T - 1 - i
        rows_f = _row_slice(t_f, Bp)
        rows_b = _row_slice(t_b, Bp)

        gi_f = gi_ref[rows_f, 0:H3]             # (Bp, 3Hp), lane-aligned slices
        gi_b = gi_ref[rows_b, H3:2 * H3]

        # serial critical path: only the recurrent matmuls (bf16 in, f32 acc)
        gh_f = jnp.dot(h_f.astype(jnp.bfloat16), whhf_ref[...],
                       preferred_element_type=jnp.float32)
        gh_b = jnp.dot(h_b.astype(jnp.bfloat16), whhb_ref[...],
                       preferred_element_type=jnp.float32)

        hf_new = gru_cell(gi_f, gh_f, bhn_f, h_f)
        hb_new = gru_cell(gi_b, gh_b, bhn_b, h_b)

        valid_f = len_vec > t_f                 # (Bp, 1) -> broadcasts over Hp
        valid_b = len_vec > t_b
        h_f = jnp.where(valid_f, hf_new, h_f)   # freeze state past the length
        h_b = jnp.where(valid_b, hb_new, h_b)

        if track_last:
            # bwd part of the "last valid output" = bwd state right after its
            # first valid step, i.e. at time t_b == length - 1.
            cap_b = jnp.where(len_vec == (t_b + 1), h_b, cap_b)
        else:
            # pad_packed_sequence semantics: padded timesteps are zero.
            seq_ref[rows_f, 0:Hp] = jnp.where(valid_f, hf_new, 0.0).astype(seq_ref.dtype)
            seq_ref[rows_b, Hp:2 * Hp] = jnp.where(valid_b, hb_new, 0.0).astype(seq_ref.dtype)
        return (h_f, h_b, cap_b)

    h0 = jnp.zeros((Bp, Hp), jnp.float32)
    carry = (h0, h0, h0)
    if T <= _STATIC_UNROLL_MAX:
        for i in range(T):                      # fully unrolled, static indices
            carry = step(i, carry)
    else:
        carry = jax.lax.fori_loop(0, T, step, carry)
    h_f, _, cap_b = carry
    return h_f, cap_b


def _bigru_seq_kernel(len_ref, x_ref, wih_ref, bih_ref, whhf_ref, bhnf_ref,
                      whhb_ref, bhnb_ref, seq_ref, gi_ref, *, T, Bp, Hp):
    _bigru_recurrence(len_ref, x_ref, wih_ref, bih_ref, whhf_ref, bhnf_ref,
                      whhb_ref, bhnb_ref, gi_ref, seq_ref, T=T, Bp=Bp, Hp=Hp)


def _bigru_head_kernel(len_ref, x_ref, wih_ref, bih_ref, whhf_ref, bhnf_ref,
                       whhb_ref, bhnb_ref, w1f_ref, w1b_ref, b1_ref, w2_ref,
                       b2_ref, head_ref, gi_ref, *, T, Bp, Hp):
    # Last GRU layer + fused MLP head; the full sequence output never leaves VMEM.
    h_f, h_b_first = _bigru_recurrence(
        len_ref, x_ref, wih_ref, bih_ref, whhf_ref, bhnf_ref, whhb_ref,
        bhnb_ref, gi_ref, None, T=T, Bp=Bp, Hp=Hp)
    hid = jnp.maximum(
        jnp.dot(h_f.astype(jnp.bfloat16), w1f_ref[...],
                preferred_element_type=jnp.float32)
        + jnp.dot(h_b_first.astype(jnp.bfloat16), w1b_ref[...],
                  preferred_element_type=jnp.float32)
        + b1_ref[...],
        0.0)                                    # ReLU; dropout is identity at inference
    head_ref[...] = (jnp.dot(hid.astype(jnp.bfloat16), w2_ref[...],
                             preferred_element_type=jnp.float32)
                     + b2_ref[...])


def _bigru_layer(len_p, x_p, lp, *, T, Bp, head=None):
    """One bidirectional GRU layer as a single gridless pallas_call."""
    Hp = lp["whh_f"].shape[0]
    gi_scratch = pltpu.VMEM((T * Bp, 6 * Hp), jnp.float32)
    if head is None:
        kernel = functools.partial(_bigru_seq_kernel, T=T, Bp=Bp, Hp=Hp)
        return pl.pallas_call(
            kernel,
            out_shape=jax.ShapeDtypeStruct((T * Bp, 2 * Hp), jnp.bfloat16),
            scratch_shapes=[gi_scratch],
        )(len_p, x_p, lp["wih"], lp["bih"], lp["whh_f"], lp["bhn_f"],
          lp["whh_b"], lp["bhn_b"])
    Op = head["w2"].shape[1]
    kernel = functools.partial(_bigru_head_kernel, T=T, Bp=Bp, Hp=Hp)
    return pl.pallas_call(
        kernel,
        out_shape=jax.ShapeDtypeStruct((Bp, Op), jnp.float32),
        scratch_shapes=[gi_scratch],
    )(len_p, x_p, lp["wih"], lp["bih"], lp["whh_f"], lp["bhn_f"],
      lp["whh_b"], lp["bhn_b"], head["w1f"], head["w1b"], head["b1"],
      head["w2"], head["b2"])


# ----------------------------------------------------------------------------
# Full CustomRNN forward (kernel path)
# ----------------------------------------------------------------------------
def custom_rnn_forward(x_btd, lengths, packed):
    """x_btd: (B, T, input_size), lengths: (B,) int (>= 1, as pack_padded_sequence)."""
    B, T, Din = x_btd.shape
    Bp = _round_up(B, _SUBLANE)
    Dp0 = packed["layers"][0]["wih"].shape[0]

    # bf16 activations in HBM: the next matmul rounds to bf16 anyway.
    x_t = jnp.transpose(x_btd, (1, 0, 2)).astype(jnp.bfloat16)        # (T, B, Din)
    x_p = jnp.zeros((T, Bp, Dp0), jnp.bfloat16).at[:, :B, :Din].set(x_t)
    x_p = x_p.reshape(T * Bp, Dp0)                                    # time-major, 2-D
    len_p = jnp.zeros((Bp, 1), jnp.int32).at[:B, 0].set(lengths.astype(jnp.int32))

    for lp in packed["layers"][:-1]:
        x_p = _bigru_layer(len_p, x_p, lp, T=T, Bp=Bp)               # (T*Bp, 2*Hp) bf16
    head = _bigru_layer(len_p, x_p, packed["layers"][-1], T=T, Bp=Bp,
                        head=packed["mlp"])                          # (Bp, Op) f32
    return head[:B, :packed["output_size"]]


# ----------------------------------------------------------------------------
# Parameter packing: fuse gates/directions and zero-pad to (8, 128) layouts.
# The recurrent r/z biases are folded into the input-side bias (hoisted matmul);
# only the n-gate recurrent bias stays in the hot loop (needed inside r * (.)).
# ----------------------------------------------------------------------------
def pack_params(params, input_size, hidden_size, output_size):
    H = hidden_size
    Hp = _round_up(H, _LANE)
    layers = []
    d_in = input_size
    for li, lp in enumerate(params["gru"]):
        if li == 0:
            Dp = _round_up(d_in, _LANE)
            row_map = [(0, d_in, 0)]            # (src_row0, n_rows, dst_row0)
        else:
            Dp = 2 * Hp
            row_map = [(0, H, 0), (H, H, Hp)]   # fwd-hidden rows, bwd-hidden rows
        wih = jnp.zeros((Dp, 6 * Hp), jnp.float32)
        bih = jnp.zeros((1, 6 * Hp), jnp.float32)
        whh = {0: jnp.zeros((Hp, 3 * Hp), jnp.float32),
               1: jnp.zeros((Hp, 3 * Hp), jnp.float32)}
        bhn = {0: jnp.zeros((1, Hp), jnp.float32),
               1: jnp.zeros((1, Hp), jnp.float32)}
        for di, dname in enumerate(("fwd", "bwd")):
            w_ih, w_hh, b_ih, b_hh = lp[dname]
            for g in range(3):                  # gate order r, z, n
                col0 = (3 * di + g) * Hp
                for (s0, n, d0) in row_map:
                    wih = wih.at[d0:d0 + n, col0:col0 + H].set(w_ih[g, s0:s0 + n, :])
                bias = b_ih[g] + (b_hh[g] if g < 2 else 0.0)   # fold bhr / bhz
                bih = bih.at[:, col0:col0 + H].set(bias)
                whh[di] = whh[di].at[0:H, g * Hp:g * Hp + H].set(w_hh[g])
            bhn[di] = bhn[di].at[:, 0:H].set(b_hh[2])
        layers.append({
            "wih": wih.astype(jnp.bfloat16), "bih": bih,
            "whh_f": whh[0].astype(jnp.bfloat16), "bhn_f": bhn[0],
            "whh_b": whh[1].astype(jnp.bfloat16), "bhn_b": bhn[1],
        })
        d_in = 2 * H

    w1, b1, w2, b2 = params["mlp"]
    mid = w1.shape[1]
    Mp = _round_up(mid, _LANE)
    Op = _round_up(output_size, _LANE)
    mlp = {
        "w1f": jnp.zeros((Hp, Mp), jnp.float32).at[:H, :mid].set(w1[:H]).astype(jnp.bfloat16),
        "w1b": jnp.zeros((Hp, Mp), jnp.float32).at[:H, :mid].set(w1[H:2 * H]).astype(jnp.bfloat16),
        "b1": jnp.zeros((1, Mp), jnp.float32).at[:, :mid].set(b1),
        "w2": jnp.zeros((Mp, Op), jnp.float32).at[:mid, :output_size].set(w2).astype(jnp.bfloat16),
        "b2": jnp.zeros((1, Op), jnp.float32).at[:, :output_size].set(b2),
    }
    return {"layers": layers, "mlp": mlp, "hidden_pad": Hp, "output_size": output_size}


# ----------------------------------------------------------------------------
# Pure-JAX reference (same math, unfused/unpadded) for correctness checking.
# Matmul operands are cast to bf16 (f32 accumulation) to match the kernel's
# native single-pass MXU precision, so both sides see identical input rounding.
# ----------------------------------------------------------------------------
def _bdot(a, b):
    return jnp.dot(a.astype(jnp.bfloat16), b.astype(jnp.bfloat16),
                   preferred_element_type=jnp.float32)


def gru_dir_ref(x_tbd, lengths, wih, whh, bih, bhh, *, reverse):
    T, B, _ = x_tbd.shape
    H = whh.shape[-1]
    ts = jnp.arange(T - 1, -1, -1) if reverse else jnp.arange(T)

    def step(h, t):
        x_t = x_tbd[t]
        r = jax.nn.sigmoid(_bdot(x_t, wih[0]) + bih[0] + _bdot(h, whh[0]) + bhh[0])
        z = jax.nn.sigmoid(_bdot(x_t, wih[1]) + bih[1] + _bdot(h, whh[1]) + bhh[1])
        n = jnp.tanh(_bdot(x_t, wih[2]) + bih[2] + r * (_bdot(h, whh[2]) + bhh[2]))
        h_new = (1.0 - z) * n + z * h
        valid = (lengths > t)[:, None]
        return jnp.where(valid, h_new, h), jnp.where(valid, h_new, 0.0)

    _, outs = jax.lax.scan(step, jnp.zeros((B, H), jnp.float32), ts)
    if reverse:
        outs = outs[::-1]
    return outs


def custom_rnn_reference(x_btd, lengths, params):
    B, T, _ = x_btd.shape
    x = jnp.transpose(x_btd, (1, 0, 2)).astype(jnp.float32)
    for lp in params["gru"]:
        f = gru_dir_ref(x, lengths, *lp["fwd"], reverse=False)
        b = gru_dir_ref(x, lengths, *lp["bwd"], reverse=True)
        x = jnp.concatenate([f, b], axis=-1)
    out_bt = jnp.transpose(x, (1, 0, 2))
    last = out_bt[jnp.arange(B), lengths - 1, :]
    w1, b1, w2, b2 = params["mlp"]
    hid = jnp.maximum(_bdot(last, w1) + b1, 0.0)
    return _bdot(hid, w2) + b2


# ----------------------------------------------------------------------------
# Deterministic parameter init (uniform(-1/sqrt(H), 1/sqrt(H)), PyTorch-style)
# ----------------------------------------------------------------------------
def init_params(key, input_size, hidden_size, num_lstm_layers, output_size):
    params = {"gru": []}
    k = hidden_size ** -0.5
    d_in = input_size
    for _ in range(num_lstm_layers):
        layer_p = {}
        for dname in ("fwd", "bwd"):
            key, k1, k2, k3, k4 = jax.random.split(key, 5)
            layer_p[dname] = (
                jax.random.uniform(k1, (3, d_in, hidden_size), jnp.float32, -k, k),
                jax.random.uniform(k2, (3, hidden_size, hidden_size), jnp.float32, -k, k),
                jax.random.uniform(k3, (3, 1, hidden_size), jnp.float32, -k, k),
                jax.random.uniform(k4, (3, 1, hidden_size), jnp.float32, -k, k),
            )
        params["gru"].append(layer_p)
        d_in = 2 * hidden_size

    mid = (2 * hidden_size) // 2
    k1s = (2 * hidden_size) ** -0.5
    k2s = mid ** -0.5
    key, a, b, c, d = jax.random.split(key, 5)
    params["mlp"] = (
        jax.random.uniform(a, (2 * hidden_size, mid), jnp.float32, -k1s, k1s),
        jax.random.uniform(b, (1, mid), jnp.float32, -k1s, k1s),
        jax.random.uniform(c, (mid, output_size), jnp.float32, -k2s, k2s),
        jax.random.uniform(d, (1, output_size), jnp.float32, -k2s, k2s),
    )
    return params


if __name__ == "__main__":
    # Small config consistent with the module:
    #   input_size=8, hidden_size=16, num_lstm_layers=2, num_mlp_layers=2, output_size=5
    B, T = 4, 8
    input_size, hidden_size, num_lstm_layers, output_size = 8, 16, 2, 5

    key = jax.random.PRNGKey(0)
    key, kx, kp = jax.random.split(key, 3)
    x = jax.random.normal(kx, (B, T, input_size), jnp.float32)
    lengths = jnp.array([8, 5, 3, 6], dtype=jnp.int32)   # per-sequence valid lengths (>= 1)
    params = init_params(kp, input_size, hidden_size, num_lstm_layers, output_size)
    packed = pack_params(params, input_size, hidden_size, output_size)

    out = jax.block_until_ready(custom_rnn_forward(x, lengths, packed))
    ref = jax.block_until_ready(custom_rnn_reference(x, lengths, params))

    assert out.shape == (B, output_size)
    max_diff = float(jnp.max(jnp.abs(out - ref)))
    assert bool(jnp.allclose(out, ref, atol=2e-3, rtol=2e-3)), (
        f"mismatch, max abs diff = {max_diff}")

    print("KERNEL_OK")
</pallas_src>

<mosaic_0001>
module attributes {stable_mosaic.version = 11 : i64} {
  func.func @_bigru_seq_kernel(%arg0: memref<8x1xi32, #tpu.memory_space<vmem>>, %arg1: memref<64x128xbf16, #tpu.memory_space<vmem>>, %arg2: memref<128x768xbf16, #tpu.memory_space<vmem>>, %arg3: memref<1x768xf32, #tpu.memory_space<vmem>>, %arg4: memref<128x384xbf16, #tpu.memory_space<vmem>>, %arg5: memref<1x128xf32, #tpu.memory_space<vmem>>, %arg6: memref<128x384xbf16, #tpu.memory_space<vmem>>, %arg7: memref<1x128xf32, #tpu.memory_space<vmem>>, %arg8: memref<64x256xbf16, #tpu.memory_space<vmem>>, %arg9: memref<64x768xf32, #tpu.memory_space<vmem>>) attributes {dimension_semantics = [], scalar_prefetch = 0 : i64, scratch_operands = 1 : i64, tpu.core_type = #tpu.core_type<tc>} {
    %c0 = arith.constant 0 : index
    %c0_0 = arith.constant 0 : index
    %0 = vector.load %arg1[%c0, %c0_0] : memref<64x128xbf16, #tpu.memory_space<vmem>>, vector<64x128xbf16>
    %c0_1 = arith.constant 0 : index
    %c0_2 = arith.constant 0 : index
    %1 = vector.load %arg2[%c0_1, %c0_2] : memref<128x768xbf16, #tpu.memory_space<vmem>>, vector<128x768xbf16>
    %cst = arith.constant dense<0.000000e+00> : vector<64x768xf32>
    %2 = tpu.matmul %0, %1, %cst {dimension_numbers = #tpu.dot_dimension_numbers<[1], [0], [0], [1], [0, 0, 1, 1], [], []>} : vector<64x128xbf16>, vector<128x768xbf16>, vector<64x768xf32> -> vector<64x768xf32>
    %c0_3 = arith.constant 0 : index
    %c0_4 = arith.constant 0 : index
    %3 = vector.load %arg3[%c0_3, %c0_4] : memref<1x768xf32, #tpu.memory_space<vmem>>, vector<1x768xf32>
    %4 = vector.broadcast %3 : vector<1x768xf32> to vector<64x768xf32>
    %5 = arith.addf %2, %4 : vector<64x768xf32>
    %c0_5 = arith.constant 0 : index
    %c0_6 = arith.constant 0 : index
    %6 = vector.load %arg9[%c0_5, %c0_6] : memref<64x768xf32, #tpu.memory_space<vmem>>, vector<64x768xf32>
    tpu.vector_store %arg9[%c0_5, %c0_6], %5 {strides = array<i32>} : memref<64x768xf32, #tpu.memory_space<vmem>>, vector<64x768xf32>,
    %c0_7 = arith.constant 0 : index
    %c0_8 = arith.constant 0 : index
    %7 = vector.load %arg0[%c0_7, %c0_8] : memref<8x1xi32, #tpu.memory_space<vmem>>, vector<8x1xi32>
    %c0_9 = arith.constant 0 : index
    %c0_10 = arith.constant 0 : index
    %8 = vector.load %arg5[%c0_9, %c0_10] : memref<1x128xf32, #tpu.memory_space<vmem>>, vector<1x128xf32>
    %c0_11 = arith.constant 0 : index
    %c0_12 = arith.constant 0 : index
    %9 = vector.load %arg7[%c0_11, %c0_12] : memref<1x128xf32, #tpu.memory_space<vmem>>, vector<1x128xf32>
    %cst_13 = arith.constant 0.000000e+00 : f32
    %10 = vector.broadcast %cst_13 : f32 to vector<8x128xf32>
    %c0_14 = arith.constant 0 : index
    %c0_15 = arith.constant 0 : index
    %11 = vector.load %arg9[%c0_14, %c0_15] : memref<64x768xf32, #tpu.memory_space<vmem>>, vector<8x384xf32>
    %c56 = arith.constant 56 : index
    %c384 = arith.constant 384 : index
    %12 = vector.load %arg9[%c56, %c384] : memref<64x768xf32, #tpu.memory_space<vmem>>, vector<8x384xf32>
    %13 = arith.truncf %10 : vector<8x128xf32> to vector<8x128xbf16>
    %c0_16 = arith.constant 0 : index
    %c0_17 = arith.constant 0 : index
    %14 = vector.load %arg4[%c0_16, %c0_17] : memref<128x384xbf16, #tpu.memory_space<vmem>>, vector<128x384xbf16>
    %cst_18 = arith.constant dense<0.000000e+00> : vector<8x384xf32>
    %15 = tpu.matmul %13, %14, %cst_18 {dimension_numbers = #tpu.dot_dimension_numbers<[1], [0], [0], [1], [0, 0, 1, 1], [], []>} : vector<8x128xbf16>, vector<128x384xbf16>, vector<8x384xf32> -> vector<8x384xf32>
    %16 = arith.truncf %10 : vector<8x128xf32> to vector<8x128xbf16>
    %c0_19 = arith.constant 0 : index
    %c0_20 = arith.constant 0 : index
    %17 = vector.load %arg6[%c0_19, %c0_20] : memref<128x384xbf16, #tpu.memory_space<vmem>>, vector<128x384xbf16>
    %cst_21 = arith.constant dense<0.000000e+00> : vector<8x384xf32>
    %18 = tpu.matmul %16, %17, %cst_21 {dimension_numbers = #tpu.dot_dimension_numbers<[1], [0], [0], [1], [0, 0, 1, 1], [], []>} : vector<8x128xbf16>, vector<128x384xbf16>, vector<8x384xf32> -> vector<8x384xf32>
    %19 = vector.extract_strided_slice %11 {offsets = [0, 0], sizes = [8, 128], strides = [1, 1]} : vector<8x384xf32> to vector<8x128xf32>
    %20 = vector.extract_strided_slice %15 {offsets = [0, 0], sizes = [8, 128], strides = [1, 1]} : vector<8x384xf32> to vector<8x128xf32>
    %21 = arith.addf %19, %20 : vector<8x128xf32>
    %22 = arith.negf %21 : vector<8x128xf32>
    %23 = math.exp %22 : vector<8x128xf32>
    %cst_22 = arith.constant 1.000000e+00 : f32
    %24 = vector.broadcast %cst_22 : f32 to vector<8x128xf32>
    %25 = arith.addf %24, %23 : vector<8x128xf32>
    %26 = arith.divf %24, %25 : vector<8x128xf32>
    %27 = vector.extract_strided_slice %11 {offsets = [0, 128], sizes = [8, 128], strides = [1, 1]} : vector<8x384xf32> to vector<8x128xf32>
    %28 = vector.extract_strided_slice %15 {offsets = [0, 128], sizes = [8, 128], strides = [1, 1]} : vector<8x384xf32> to vector<8x128xf32>
    %29 = arith.addf %27, %28 : vector<8x128xf32>
    %30 = arith.negf %29 : vector<8x128xf32>
    %31 = math.exp %30 : vector<8x128xf32>
    %cst_23 = arith.constant 1.000000e+00 : f32
    %32 = vector.broadcast %cst_23 : f32 to vector<8x128xf32>
    %33 = arith.addf %32, %31 : vector<8x128xf32>
    %34 = arith.divf %32, %33 : vector<8x128xf32>
    %35 = vector.extract_strided_slice %11 {offsets = [0, 256], sizes = [8, 128], strides = [1, 1]} : vector<8x384xf32> to vector<8x128xf32>
    %36 = vector.extract_strided_slice %15 {offsets = [0, 256], sizes = [8, 128], strides = [1, 1]} : vector<8x384xf32> to vector<8x128xf32>
    %37 = vector.broadcast %8 : vector<1x128xf32> to vector<8x128xf32>
    %38 = arith.addf %36, %37 : vector<8x128xf32>
    %39 = arith.mulf %26, %38 : vector<8x128xf32>
    %40 = arith.addf %35, %39 : vector<8x128xf32>
    %41 = math.tanh %40 : vector<8x128xf32>
    %cst_24 = arith.constant 1.000000e+00 : f32
    %42 = vector.broadcast %cst_24 : f32 to vector<8x128xf32>
    %43 = arith.subf %42, %34 : vector<8x128xf32>
    %44 = arith.mulf %43, %41 : vector<8x128xf32>
    %45 = arith.mulf %34, %10 : vector<8x128xf32>
    %46 = arith.addf %44, %45 : vector<8x128xf32>
    %47 = vector.extract_strided_slice %12 {offsets = [0, 0], sizes = [8, 128], strides = [1, 1]} : vector<8x384xf32> to vector<8x128xf32>
    %48 = vector.extract_strided_slice %18 {offsets = [0, 0], sizes = [8, 128], strides = [1, 1]} : vector<8x384xf32> to vector<8x128xf32>
    %49 = arith.addf %47, %48 : vector<8x128xf32>
    %50 = arith.negf %49 : vector<8x128xf32>
    %51 = math.exp %50 : vector<8x128xf32>
    %cst_25 = arith.constant 1.000000e+00 : f32
    %52 = vector.broadcast %cst_25 : f32 to vector<8x128xf32>
    %53 = arith.addf %52, %51 : vector<8x128xf32>
    %54 = arith.divf %52, %53 : vector<8x128xf32>
    %55 = vector.extract_strided_slice %12 {offsets = [0, 128], sizes = [8, 128], strides = [1, 1]} : vector<8x384xf32> to vector<8x128xf32>
    %56 = vector.extract_strided_slice %18 {offsets = [0, 128], sizes = [8, 128], strides = [1, 1]} : vector<8x384xf32> to vector<8x128xf32>
    %57 = arith.addf %55, %56 : vector<8x128xf32>
    %58 = arith.negf %57 : vector<8x128xf32>
    %59 = math.exp %58 : vector<8x128xf32>
    %cst_26 = arith.constant 1.000000e+00 : f32
    %60 = vector.broadcast %cst_26 : f32 to vector<8x128xf32>
    %61 = arith.addf %60, %59 : vector<8x128xf32>
    %62 = arith.divf %60, %61 : vector<8x128xf32>
    %63 = vector.extract_strided_slice %12 {offsets = [0, 256], sizes = [8, 128], strides = [1, 1]} : vector<8x384xf32> to vector<8x128xf32>
    %64 = vector.extract_strided_slice %18 {offsets = [0, 256], sizes = [8, 128], strides = [1, 1]} : vector<8x384xf32> to vector<8x128xf32>
    %65 = vector.broadcast %9 : vector<1x128xf32> to vector<8x128xf32>
    %66 = arith.addf %64, %65 : vector<8x128xf32>
    %67 = arith.mulf %54, %66 : vector<8x128xf32>
    %68 = arith.addf %63, %67 : vector<8x128xf32>
    %69 = math.tanh %68 : vector<8x128xf32>
    %cst_27 = arith.constant 1.000000e+00 : f32
    %70 = vector.broadcast %cst_27 : f32 to vector<8x128xf32>
    %71 = arith.subf %70, %62 : vector<8x128xf32>
    %72 = arith.mulf %71, %69 : vector<8x128xf32>
    %73 = arith.mulf %62, %10 : vector<8x128xf32>
    %74 = arith.addf %72, %73 : vector<8x128xf32>
    %c0_i32 = arith.constant 0 : i32
    %75 = vector.broadcast %c0_i32 : i32 to vector<8x1xi32>
    %76 = arith.cmpi sgt, %7, %75 : vector<8x1xi32>
    %c7_i32 = arith.constant 7 : i32
    %77 = vector.broadcast %c7_i32 : i32 to vector<8x1xi32>
    %78 = arith.cmpi sgt, %7, %77 : vector<8x1xi32>
    %79 = vector.shape_cast %76 : vector<8x1xi1> to vector<8x1xi1>
    %80 = vector.broadcast %79 : vector<8x1xi1> to vector<8x128xi1>
    %81 = arith.select %80, %46, %10 : vector<8x128xi1>, vector<8x128xf32>
    %82 = vector.shape_cast %78 : vector<8x1xi1> to vector<8x1xi1>
    %83 = vector.broadcast %82 : vector<8x1xi1> to vector<8x128xi1>
    %84 = arith.select %83, %74, %10 : vector<8x128xi1>, vector<8x128xf32>
    %cst_28 = arith.constant 0.000000e+00 : f32
    %85 = vector.shape_cast %76 : vector<8x1xi1> to vector<8x1xi1>
    %86 = vector.broadcast %85 : vector<8x1xi1> to vector<8x128xi1>
    %87 = vector.broadcast %cst_28 : f32 to vector<8x128xf32>
    %88 = arith.select %86, %46, %87 : vector<8x128xi1>, vector<8x128xf32>
    %89 = arith.truncf %88 : vector<8x128xf32> to vector<8x128xbf16>
    %c0_29 = arith.constant 0 : index
    %c0_30 = arith.constant 0 : index
    %90 = vector.load %arg8[%c0_29, %c0_30] : memref<64x256xbf16, #tpu.memory_space<vmem>>, vector<8x128xbf16>
    tpu.vector_store %arg8[%c0_29, %c0_30], %89 {strides = array<i32>} : memref<64x256xbf16, #tpu.memory_space<vmem>>, vector<8x128xbf16>,
    %cst_31 = arith.constant 0.000000e+00 : f32
    %91 = vector.shape_cast %78 : vector<8x1xi1> to vector<8x1xi1>
    %92 = vector.broadcast %91 : vector<8x1xi1> to vector<8x128xi1>
    %93 = vector.broadcast %cst_31 : f32 to vector<8x128xf32>
    %94 = arith.select %92, %74, %93 : vector<8x128xi1>, vector<8x128xf32>
    %95 = arith.truncf %94 : vector<8x128xf32> to vector<8x128xbf16>
    %c56_32 = arith.constant 56 : index
    %c128 = arith.constant 128 : index
    %96 = vector.load %arg8[%c56_32, %c128] : memref<64x256xbf16, #tpu.memory_space<vmem>>, vector<8x128xbf16>
    tpu.vector_store %arg8[%c56_32, %c128], %95 {strides = array<i32>} : memref<64x256xbf16, #tpu.memory_space<vmem>>, vector<8x128xbf16>,
    %c8 = arith.constant 8 : index
    %c0_33 = arith.constant 0 : index
    %97 = vector.load %arg9[%c8, %c0_33] : memref<64x768xf32, #tpu.memory_space<vmem>>, vector<8x384xf32>
    %c48 = arith.constant 48 : index
    %c384_34 = arith.constant 384 : index
    %98 = vector.load %arg9[%c48, %c384_34] : memref<64x768xf32, #tpu.memory_space<vmem>>, vector<8x384xf32>
    %99 = arith.truncf %81 : vector<8x128xf32> to vector<8x128xbf16>
    %c0_35 = arith.constant 0 : index
    %c0_36 = arith.constant 0 : index
    %100 = vector.load %arg4[%c0_35, %c0_36] : memref<128x384xbf16, #tpu.memory_space<vmem>>, vector<128x384xbf16>
    %cst_37 = arith.constant dense<0.000000e+00> : vector<8x384xf32>
    %101 = tpu.matmul %99, %100, %cst_37 {dimension_numbers = #tpu.dot_dimension_numbers<[1], [0], [0], [1], [0, 0, 1, 1], [], []>} : vector<8x128xbf16>, vector<128x384xbf16>, vector<8x384xf32> -> vector<8x384xf32>
    %102 = arith.truncf %84 : vector<8x128xf32> to vector<8x128xbf16>
    %c0_38 = arith.constant 0 : index
    %c0_39 = arith.constant 0 : index
    %103 = vector.load %arg6[%c0_38, %c0_39] : memref<128x384xbf16, #tpu.memory_space<vmem>>, vector<128x384xbf16>
    %cst_40 = arith.constant dense<0.000000e+00> : vector<8x384xf32>
    %104 = tpu.matmul %102, %103, %cst_40 {dimension_numbers = #tpu.dot_dimension_numbers<[1], [0], [0], [1], [0, 0, 1, 1], [], []>} : vector<8x128xbf16>, vector<128x384xbf16>, vector<8x384xf32> -> vector<8x384xf32>
    %105 = vector.extract_strided_slice %97 {offsets = [0, 0], sizes = [8, 128], strides = [1, 1]} : vector<8x384xf32> to vector<8x128xf32>
    %106 = vector.extract_strided_slice %101 {offsets = [0, 0], sizes = [8, 128], strides = [1, 1]} : vector<8x384xf32> to vector<8x128xf32>
    %107 = arith.addf %105, %106 : vector<8x128xf32>
    %108 = arith.negf %107 : vector<8x128xf32>
    %109 = math.exp %108 : vector<8x128xf32>
    %cst_41 = arith.constant 1.000000e+00 : f32
    %110 = vector.broadcast %cst_41 : f32 to vector<8x128xf32>
    %111 = arith.addf %110, %109 : vector<8x128xf32>
    %112 = arith.divf %110, %111 : vector<8x128xf32>
    %113 = vector.extract_strided_slice %97 {offsets = [0, 128], sizes = [8, 128], strides = [1, 1]} : vector<8x384xf32> to vector<8x128xf32>
    %114 = vector.extract_strided_slice %101 {offsets = [0, 128], sizes = [8, 128], strides = [1, 1]} : vector<8x384xf32> to vector<8x128xf32>
    %115 = arith.addf %113, %114 : vector<8x128xf32>
    %116 = arith.negf %115 : vector<8x128xf32>
    %117 = math.exp %116 : vector<8x128xf32>
    %cst_42 = arith.constant 1.000000e+00 : f32
    %118 = vector.broadcast %cst_42 : f32 to vector<8x128xf32>
    %119 = arith.addf %118, %117 : vector<8x128xf32>
    %120 = arith.divf %118, %119 : vector<8x128xf32>
    %121 = vector.extract_strided_slice %97 {offsets = [0, 256], sizes = [8, 128], strides = [1, 1]} : vector<8x384xf32> to vector<8x128xf32>
    %122 = vector.extract_strided_slice %101 {offsets = [0, 256], sizes = [8, 128], strides = [1, 1]} : vector<8x384xf32> to vector<8x128xf32>
    %123 = vector.broadcast %8 : vector<1x128xf32> to vector<8x128xf32>
    %124 = arith.addf %122, %123 : vector<8x128xf32>
    %125 = arith.mulf %112, %124 : vector<8x128xf32>
    %126 = arith.addf %121, %125 : vector<8x128xf32>
    %127 = math.tanh %126 : vector<8x128xf32>
    %cst_43 = arith.constant 1.000000e+00 : f32
    %128 = vector.broadcast %cst_43 : f32 to vector<8x128xf32>
    %129 = arith.subf %128, %120 : vector<8x128xf32>
    %130 = arith.mulf %129, %127 : vector<8x128xf32>
    %131 = arith.mulf %120, %81 : vector<8x128xf32>
    %132 = arith.addf %130, %131 : vector<8x128xf32>
    %133 = vector.extract_strided_slice %98 {offsets = [0, 0], sizes = [8, 128], strides = [1, 1]} : vector<8x384xf32> to vector<8x128xf32>
    %134 = vector.extract_strided_slice %104 {offsets = [0, 0], sizes = [8, 128], strides = [1, 1]} : vector<8x384xf32> to vector<8x128xf32>
    %135 = arith.addf %133, %134 : vector<8x128xf32>
    %136 = arith.negf %135 : vector<8x128xf32>
    %137 = math.exp %136 : vector<8x128xf32>
    %cst_44 = arith.constant 1.000000e+00 : f32
    %138 = vector.broadcast %cst_44 : f32 to vector<8x128xf32>
    %139 = arith.addf %138, %137 : vector<8x128xf32>
    %140 = arith.divf %138, %139 : vector<8x128xf32>
    %141 = vector.extract_strided_slice %98 {offsets = [0, 128], sizes = [8, 128], strides = [1, 1]} : vector<8x384xf32> to vector<8x128xf32>
    %142 = vector.extract_strided_slice %104 {offsets = [0, 128], sizes = [8, 128], strides = [1, 1]} : vector<8x384xf32> to vector<8x128xf32>
    %143 = arith.addf %141, %142 : vector<8x128xf32>
    %144 = arith.negf %143 : vector<8x128xf32>
    %145 = math.exp %144 : vector<8x128xf32>
    %cst_45 = arith.constant 1.000000e+00 : f32
    %146 = vector.broadcast %cst_45 : f32 to vector<8x128xf32>
    %147 = arith.addf %146, %145 : vector<8x128xf32>
    %148 = arith.divf %146, %147 : vector<8x128xf32>
    %149 = vector.extract_strided_slice %98 {offsets = [0, 256], sizes = [8, 128], strides = [1, 1]} : vector<8x384xf32> to vector<8x128xf32>
    %150 = vector.extract_strided_slice %104 {offsets = [0, 256], sizes = [8, 128], strides = [1, 1]} : vector<8x384xf32> to vector<8x128xf32>
    %151 = vector.broadcast %9 : vector<1x128xf32> to vector<8x128xf32>
    %152 = arith.addf %150, %151 : vector<8x128xf32>
    %153 = arith.mulf %140, %152 : vector<8x128xf32>
    %154 = arith.addf %149, %153 : vector<8x128xf32>
    %155 = math.tanh %154 : vector<8x128xf32>
    %cst_46 = arith.constant 1.000000e+00 : f32
    %156 = vector.broadcast %cst_46 : f32 to vector<8x128xf32>
    %157 = arith.subf %156, %148 : vector<8x128xf32>
    %158 = arith.mulf %157, %155 : vector<8x128xf32>
    %159 = arith.mulf %148, %84 : vector<8x128xf32>
    %160 = arith.addf %158, %159 : vector<8x128xf32>
    %c1_i32 = arith.constant 1 : i32
    %161 = vector.broadcast %c1_i32 : i32 to vector<8x1xi32>
    %162 = arith.cmpi sgt, %7, %161 : vector<8x1xi32>
    %c6_i32 = arith.constant 6 : i32
    %163 = vector.broadcast %c6_i32 : i32 to vector<8x1xi32>
    %164 = arith.cmpi sgt, %7, %163 : vector<8x1xi32>
    %165 = vector.shape_cast %162 : vector<8x1xi1> to vector<8x1xi1>
    %166 = vector.broadcast %165 : vector<8x1xi1> to vector<8x128xi1>
    %167 = arith.select %166, %132, %81 : vector<8x128xi1>, vector<8x128xf32>
    %168 = vector.shape_cast %164 : vector<8x1xi1> to vector<8x1xi1>
    %169 = vector.broadcast %168 : vector<8x1xi1> to vector<8x128xi1>
    %170 = arith.select %169, %160, %84 : vector<8x128xi1>, vector<8x128xf32>
    %cst_47 = arith.constant 0.000000e+00 : f32
    %171 = vector.shape_cast %162 : vector<8x1xi1> to vector<8x1xi1>
    %172 = vector.broadcast %171 : vector<8x1xi1> to vector<8x128xi1>
    %173 = vector.broadcast %cst_47 : f32 to vector<8x128xf32>
    %174 = arith.select %172, %132, %173 : vector<8x128xi1>, vector<8x128xf32>
    %175 = arith.truncf %174 : vector<8x128xf32> to vector<8x128xbf16>
    %c8_48 = arith.constant 8 : index
    %c0_49 = arith.constant 0 : index
    %176 = vector.load %arg8[%c8_48, %c0_49] : memref<64x256xbf16, #tpu.memory_space<vmem>>, vector<8x128xbf16>
    tpu.vector_store %arg8[%c8_48, %c0_49], %175 {strides = array<i32>} : memref<64x256xbf16, #tpu.memory_space<vmem>>, vector<8x128xbf16>,
    %cst_50 = arith.constant 0.000000e+00 : f32
    %177 = vector.shape_cast %164 : vector<8x1xi1> to vector<8x1xi1>
    %178 = vector.broadcast %177 : vector<8x1xi1> to vector<8x128xi1>
    %179 = vector.broadcast %cst_50 : f32 to vector<8x128xf32>
    %180 = arith.select %178, %160, %179 : vector<8x128xi1>, vector<8x128xf32>
    %181 = arith.truncf %180 : vector<8x128xf32> to vector<8x128xbf16>
    %c48_51 = arith.constant 48 : index
    %c128_52 = arith.constant 128 : index
    %182 = vector.load %arg8[%c48_51, %c128_52] : memref<64x256xbf16, #tpu.memory_space<vmem>>, vector<8x128xbf16>
    tpu.vector_store %arg8[%c48_51, %c128_52], %181 {strides = array<i32>} : memref<64x256xbf16, #tpu.memory_space<vmem>>, vector<8x128xbf16>,
    %c16 = arith.constant 16 : index
    %c0_53 = arith.constant 0 : index
    %183 = vector.load %arg9[%c16, %c0_53] : memref<64x768xf32, #tpu.memory_space<vmem>>, vector<8x384xf32>
    %c40 = arith.constant 40 : index
    %c384_54 = arith.constant 384 : index
    %184 = vector.load %arg9[%c40, %c384_54] : memref<64x768xf32, #tpu.memory_space<vmem>>, vector<8x384xf32>
    %185 = arith.truncf %167 : vector<8x128xf32> to vector<8x128xbf16>
    %c0_55 = arith.constant 0 : index
    %c0_56 = arith.constant 0 : index
    %186 = vector.load %arg4[%c0_55, %c0_56] : memref<128x384xbf16, #tpu.memory_space<vmem>>, vector<128x384xbf16>
    %cst_57 = arith.constant dense<0.000000e+00> : vector<8x384xf32>
    %187 = tpu.matmul %185, %186, %cst_57 {dimension_numbers = #tpu.dot_dimension_numbers<[1], [0], [0], [1], [0, 0, 1, 1], [], []>} : vector<8x128xbf16>, vector<128x384xbf16>, vector<8x384xf32> -> vector<8x384xf32>
    %188 = arith.truncf %170 : vector<8x128xf32> to vector<8x128xbf16>
    %c0_58 = arith.constant 0 : index
    %c0_59 = arith.constant 0 : index
    %189 = vector.load %arg6[%c0_58, %c0_59] : memref<128x384xbf16, #tpu.memory_space<vmem>>, vector<128x384xbf16>
    %cst_60 = arith.constant dense<0.000000e+00> : vector<8x384xf32>
    %190 = tpu.matmul %188, %189, %cst_60 {dimension_numbers = #tpu.dot_dimension_numbers<[1], [0], [0], [1], [0, 0, 1, 1], [], []>} : vector<8x128xbf16>, vector<128x384xbf16>, vector<8x384xf32> -> vector<8x384xf32>
    %191 = vector.extract_strided_slice %183 {offsets = [0, 0], sizes = [8, 128], strides = [1, 1]} : vector<8x384xf32> to vector<8x128xf32>
    %192 = vector.extract_strided_slice %187 {offsets = [0, 0], sizes = [8, 128], strides = [1, 1]} : vector<8x384xf32> to vector<8x128xf32>
    %193 = arith.addf %191, %192 : vector<8x128xf32>
    %194 = arith.negf %193 : vector<8x128xf32>
    %195 = math.exp %194 : vector<8x128xf32>
    %cst_61 = arith.constant 1.000000e+00 : f32
    %196 = vector.broadcast %cst_61 : f32 to vector<8x128xf32>
    %197 = arith.addf %196, %195 : vector<8x128xf32>
    %198 = arith.divf %196, %197 : vector<8x128xf32>
    %199 = vector.extract_strided_slice %183 {offsets = [0, 128], sizes = [8, 128], strides = [1, 1]} : vector<8x384xf32> to vector<8x128xf32>
    %200 = vector.extract_strided_slice %187 {offsets = [0, 128], sizes = [8, 128], strides = [1, 1]} : vector<8x384xf32> to vector<8x128xf32>
    %201 = arith.addf %199, %200 : vector<8x128xf32>
    %202 = arith.negf %201 : vector<8x128xf32>
    %203 = math.exp %202 : vector<8x128xf32>
    %cst_62 = arith.constant 1.000000e+00 : f32
    %204 = vector.broadcast %cst_62 : f32 to vector<8x128xf32>
    %205 = arith.addf %204, %203 : vector<8x128xf32>
    %206 = arith.divf %204, %205 : vector<8x128xf32>
    %207 = vector.extract_strided_slice %183 {offsets = [0, 256], sizes = [8, 128], strides = [1, 1]} : vector<8x384xf32> to vector<8x128xf32>
    %208 = vector.extract_strided_slice %187 {offsets = [0, 256], sizes = [8, 128], strides = [1, 1]} : vector<8x384xf32> to vector<8x128xf32>
    %209 = vector.broadcast %8 : vector<1x128xf32> to vector<8x128xf32>
    %210 = arith.addf %208, %209 : vector<8x128xf32>
    %211 = arith.mulf %198, %210 : vector<8x128xf32>
    %212 = arith.addf %207, %211 : vector<8x128xf32>
    %213 = math.tanh %212 : vector<8x128xf32>
    %cst_63 = arith.constant 1.000000e+00 : f32
    %214 = vector.broadcast %cst_63 : f32 to vector<8x128xf32>
    %215 = arith.subf %214, %206 : vector<8x128xf32>
    %216 = arith.mulf %215, %213 : vector<8x128xf32>
    %217 = arith.mulf %206, %167 : vector<8x128xf32>
    %218 = arith.addf %216, %217 : vector<8x128xf32>
    %219 = vector.extract_strided_slice %184 {offsets = [0, 0], sizes = [8, 128], strides = [1, 1]} : vector<8x384xf32> to vector<8x128xf32>
    %220 = vector.extract_strided_slice %190 {offsets = [0, 0], sizes = [8, 128], strides = [1, 1]} : vector<8x384xf32> to vector<8x128xf32>
    %221 = arith.addf %219, %220 : vector<8x128xf32>
    %222 = arith.negf %221 : vector<8x128xf32>
    %223 = math.exp %222 : vector<8x128xf32>
    %cst_64 = arith.constant 1.000000e+00 : f32
    %224 = vector.broadcast %cst_64 : f32 to vector<8x128xf32>
    %225 = arith.addf %224, %223 : vector<8x128xf32>
    %226 = arith.divf %224, %225 : vector<8x128xf32>
    %227 = vector.extract_strided_slice %184 {offsets = [0, 128], sizes = [8, 128], strides = [1, 1]} : vector<8x384xf32> to vector<8x128xf32>
    %228 = vector.extract_strided_slice %190 {offsets = [0, 128], sizes = [8, 128], strides = [1, 1]} : vector<8x384xf32> to vector<8x128xf32>
    %229 = arith.addf %227, %228 : vector<8x128xf32>
    %230 = arith.negf %229 : vector<8x128xf32>
    %231 = math.exp %230 : vector<8x128xf32>
    %cst_65 = arith.constant 1.000000e+00 : f32
    %232 = vector.broadcast %cst_65 : f32 to vector<8x128xf32>
    %233 = arith.addf %232, %231 : vector<8x128xf32>
    %234 = arith.divf %232, %233 : vector<8x128xf32>
    %235 = vector.extract_strided_slice %184 {offsets = [0, 256], sizes = [8, 128], strides = [1, 1]} : vector<8x384xf32> to vector<8x128xf32>
    %236 = vector.extract_strided_slice %190 {offsets = [0, 256], sizes = [8, 128], strides = [1, 1]} : vector<8x384xf32> to vector<8x128xf32>
    %237 = vector.broadcast %9 : vector<1x128xf32> to vector<8x128xf32>
    %238 = arith.addf %236, %237 : vector<8x128xf32>
    %239 = arith.mulf %226, %238 : vector<8x128xf32>
    %240 = arith.addf %235, %239 : vector<8x128xf32>
    %241 = math.tanh %240 : vector<8x128xf32>
    %cst_66 = arith.constant 1.000000e+00 : f32
    %242 = vector.broadcast %cst_66 : f32 to vector<8x128xf32>
    %243 = arith.subf %242, %234 : vector<8x128xf32>
    %244 = arith.mulf %243, %241 : vector<8x128xf32>
    %245 = arith.mulf %234, %170 : vector<8x128xf32>
    %246 = arith.addf %244, %245 : vector<8x128xf32>
    %c2_i32 = arith.constant 2 : i32
    %247 = vector.broadcast %c2_i32 : i32 to vector<8x1xi32>
    %248 = arith.cmpi sgt, %7, %247 : vector<8x1xi32>
    %c5_i32 = arith.constant 5 : i32
    %249 = vector.broadcast %c5_i32 : i32 to vector<8x1xi32>
    %250 = arith.cmpi sgt, %7, %249 : vector<8x1xi32>
    %251 = vector.shape_cast %248 : vector<8x1xi1> to vector<8x1xi1>
    %252 = vector.broadcast %251 : vector<8x1xi1> to vector<8x128xi1>
    %253 = arith.select %252, %218, %167 : vector<8x128xi1>, vector<8x128xf32>
    %254 = vector.shape_cast %250 : vector<8x1xi1> to vector<8x1xi1>
    %255 = vector.broadcast %254 : vector<8x1xi1> to vector<8x128xi1>
    %256 = arith.select %255, %246, %170 : vector<8x128xi1>, vector<8x128xf32>
    %cst_67 = arith.constant 0.000000e+00 : f32
    %257 = vector.shape_cast %248 : vector<8x1xi1> to vector<8x1xi1>
    %258 = vector.broadcast %257 : vector<8x1xi1> to vector<8x128xi1>
    %259 = vector.broadcast %cst_67 : f32 to vector<8x128xf32>
    %260 = arith.select %258, %218, %259 : vector<8x128xi1>, vector<8x128xf32>
    %261 = arith.truncf %260 : vector<8x128xf32> to vector<8x128xbf16>
    %c16_68 = arith.constant 16 : index
    %c0_69 = arith.constant 0 : index
    %262 = vector.load %arg8[%c16_68, %c0_69] : memref<64x256xbf16, #tpu.memory_space<vmem>>, vector<8x128xbf16>
    tpu.vector_store %arg8[%c16_68, %c0_69], %261 {strides = array<i32>} : memref<64x256xbf16, #tpu.memory_space<vmem>>, vector<8x128xbf16>,
    %cst_70 = arith.constant 0.000000e+00 : f32
    %263 = vector.shape_cast %250 : vector<8x1xi1> to vector<8x1xi1>
    %264 = vector.broadcast %263 : vector<8x1xi1> to vector<8x128xi1>
    %265 = vector.broadcast %cst_70 : f32 to vector<8x128xf32>
    %266 = arith.select %264, %246, %265 : vector<8x128xi1>, vector<8x128xf32>
    %267 = arith.truncf %266 : vector<8x128xf32> to vector<8x128xbf16>
    %c40_71 = arith.constant 40 : index
    %c128_72 = arith.constant 128 : index
    %268 = vector.load %arg8[%c40_71, %c128_72] : memref<64x256xbf16, #tpu.memory_space<vmem>>, vector<8x128xbf16>
    tpu.vector_store %arg8[%c40_71, %c128_72], %267 {strides = array<i32>} : memref<64x256xbf16, #tpu.memory_space<vmem>>, vector<8x128xbf16>,
    %c24 = arith.constant 24 : index
    %c0_73 = arith.constant 0 : index
    %269 = vector.load %arg9[%c24, %c0_73] : memref<64x768xf32, #tpu.memory_space<vmem>>, vector<8x384xf32>
    %c32 = arith.constant 32 : index
    %c384_74 = arith.constant 384 : index
    %270 = vector.load %arg9[%c32, %c384_74] : memref<64x768xf32, #tpu.memory_space<vmem>>, vector<8x384xf32>
    %271 = arith.truncf %253 : vector<8x128xf32> to vector<8x128xbf16>
    %c0_75 = arith.constant 0 : index
    %c0_76 = arith.constant 0 : index
    %272 = vector.load %arg4[%c0_75, %c0_76] : memref<128x384xbf16, #tpu.memory_space<vmem>>, vector<128x384xbf16>
    %cst_77 = arith.constant dense<0.000000e+00> : vector<8x384xf32>
    %273 = tpu.matmul %271, %272, %cst_77 {dimension_numbers = #tpu.dot_dimension_numbers<[1], [0], [0], [1], [0, 0, 1, 1], [], []>} : vector<8x128xbf16>, vector<128x384xbf16>, vector<8x384xf32> -> vector<8x384xf32>
    %274 = arith.truncf %256 : vector<8x128xf32> to vector<8x128xbf16>
    %c0_78 = arith.constant 0 : index
    %c0_79 = arith.constant 0 : index
    %275 = vector.load %arg6[%c0_78, %c0_79] : memref<128x384xbf16, #tpu.memory_space<vmem>>, vector<128x384xbf16>
    %cst_80 = arith.constant dense<0.000000e+00> : vector<8x384xf32>
    %276 = tpu.matmul %274, %275, %cst_80 {dimension_numbers = #tpu.dot_dimension_numbers<[1], [0], [0], [1], [0, 0, 1, 1], [], []>} : vector<8x128xbf16>, vector<128x384xbf16>, vector<8x384xf32> -> vector<8x384xf32>
    %277 = vector.extract_strided_slice %269 {offsets = [0, 0], sizes = [8, 128], strides = [1, 1]} : vector<8x384xf32> to vector<8x128xf32>
    %278 = vector.extract_strided_slice %273 {offsets = [0, 0], sizes = [8, 128], strides = [1, 1]} : vector<8x384xf32> to vector<8x128xf32>
    %279 = arith.addf %277, %278 : vector<8x128xf32>
    %280 = arith.negf %279 : vector<8x128xf32>
    %281 = math.exp %280 : vector<8x128xf32>
    %cst_81 = arith.constant 1.000000e+00 : f32
    %282 = vector.broadcast %cst_81 : f32 to vector<8x128xf32>
    %283 = arith.addf %282, %281 : vector<8x128xf32>
    %284 = arith.divf %282, %283 : vector<8x128xf32>
    %285 = vector.extract_strided_slice %269 {offsets = [0, 128], sizes = [8, 128], strides = [1, 1]} : vector<8x384xf32> to vector<8x128xf32>
    %286 = vector.extract_strided_slice %273 {offsets = [0, 128], sizes = [8, 128], strides = [1, 1]} : vector<8x384xf32> to vector<8x128xf32>
    %287 = arith.addf %285, %286 : vector<8x128xf32>
    %288 = arith.negf %287 : vector<8x128xf32>
    %289 = math.exp %288 : vector<8x128xf32>
    %cst_82 = arith.constant 1.000000e+00 : f32
    %290 = vector.broadcast %cst_82 : f32 to vector<8x128xf32>
    %291 = arith.addf %290, %289 : vector<8x128xf32>
    %292 = arith.divf %290, %291 : vector<8x128xf32>
    %293 = vector.extract_strided_slice %269 {offsets = [0, 256], sizes = [8, 128], strides = [1, 1]} : vector<8x384xf32> to vector<8x128xf32>
    %294 = vector.extract_strided_slice %273 {offsets = [0, 256], sizes = [8, 128], strides = [1, 1]} : vector<8x384xf32> to vector<8x128xf32>
    %295 = vector.broadcast %8 : vector<1x128xf32> to vector<8x128xf32>
    %296 = arith.addf %294, %295 : vector<8x128xf32>
    %297 = arith.mulf %284, %296 : vector<8x128xf32>
    %298 = arith.addf %293, %297 : vector<8x128xf32>
    %299 = math.tanh %298 : vector<8x128xf32>
    %cst_83 = arith.constant 1.000000e+00 : f32
    %300 = vector.broadcast %cst_83 : f32 to vector<8x128xf32>
    %301 = arith.subf %300, %292 : vector<8x128xf32>
    %302 = arith.mulf %301, %299 : vector<8x128xf32>
    %303 = arith.mulf %292, %253 : vector<8x128xf32>
    %304 = arith.addf %302, %303 : vector<8x128xf32>
    %305 = vector.extract_strided_slice %270 {offsets = [0, 0], sizes = [8, 128], strides = [1, 1]} : vector<8x384xf32> to vector<8x128xf32>
    %306 = vector.extract_strided_slice %276 {offsets = [0, 0], sizes = [8, 128], strides = [1, 1]} : vector<8x384xf32> to vector<8x128xf32>
    %307 = arith.addf %305, %306 : vector<8x128xf32>
    %308 = arith.negf %307 : vector<8x128xf32>
    %309 = math.exp %308 : vector<8x128xf32>
    %cst_84 = arith.constant 1.000000e+00 : f32
    %310 = vector.broadcast %cst_84 : f32 to vector<8x128xf32>
    %311 = arith.addf %310, %309 : vector<8x128xf32>
    %312 = arith.divf %310, %311 : vector<8x128xf32>
    %313 = vector.extract_strided_slice %270 {offsets = [0, 128], sizes = [8, 128], strides = [1, 1]} : vector<8x384xf32> to vector<8x128xf32>
    %314 = vector.extract_strided_slice %276 {offsets = [0, 128], sizes = [8, 128], strides = [1, 1]} : vector<8x384xf32> to vector<8x128xf32>
    %315 = arith.addf %313, %314 : vector<8x128xf32>
    %316 = arith.negf %315 : vector<8x128xf32>
    %317 = math.exp %316 : vector<8x128xf32>
    %cst_85 = arith.constant 1.000000e+00 : f32
    %318 = vector.broadcast %cst_85 : f32 to vector<8x128xf32>
    %319 = arith.addf %318, %317 : vector<8x128xf32>
    %320 = arith.divf %318, %319 : vector<8x128xf32>
    %321 = vector.extract_strided_slice %270 {offsets = [0, 256], sizes = [8, 128], strides = [1, 1]} : vector<8x384xf32> to vector<8x128xf32>
    %322 = vector.extract_strided_slice %276 {offsets = [0, 256], sizes = [8, 128], strides = [1, 1]} : vector<8x384xf32> to vector<8x128xf32>
    %323 = vector.broadcast %9 : vector<1x128xf32> to vector<8x128xf32>
    %324 = arith.addf %322, %323 : vector<8x128xf32>
    %325 = arith.mulf %312, %324 : vector<8x128xf32>
    %326 = arith.addf %321, %325 : vector<8x128xf32>
    %327 = math.tanh %326 : vector<8x128xf32>
    %cst_86 = arith.constant 1.000000e+00 : f32
    %328 = vector.broadcast %cst_86 : f32 to vector<8x128xf32>
    %329 = arith.subf %328, %320 : vector<8x128xf32>
    %330 = arith.mulf %329, %327 : vector<8x128xf32>
    %331 = arith.mulf %320, %256 : vector<8x128xf32>
    %332 = arith.addf %330, %331 : vector<8x128xf32>
    %c3_i32 = arith.constant 3 : i32
    %333 = vector.broadcast %c3_i32 : i32 to vector<8x1xi32>
    %334 = arith.cmpi sgt, %7, %333 : vector<8x1xi32>
    %c4_i32 = arith.constant 4 : i32
    %335 = vector.broadcast %c4_i32 : i32 to vector<8x1xi32>
    %336 = arith.cmpi sgt, %7, %335 : vector<8x1xi32>
    %337 = vector.shape_cast %334 : vector<8x1xi1> to vector<8x1xi1>
    %338 = vector.broadcast %337 : vector<8x1xi1> to vector<8x128xi1>
    %339 = arith.select %338, %304, %253 : vector<8x128xi1>, vector<8x128xf32>
    %340 = vector.shape_cast %336 : vector<8x1xi1> to vector<8x1xi1>
    %341 = vector.broadcast %340 : vector<8x1xi1> to vector<8x128xi1>
    %342 = arith.select %341, %332, %256 : vector<8x128xi1>, vector<8x128xf32>
    %cst_87 = arith.constant 0.000000e+00 : f32
    %343 = vector.shape_cast %334 : vector<8x1xi1> to vector<8x1xi1>
    %344 = vector.broadcast %343 : vector<8x1xi1> to vector<8x128xi1>
    %345 = vector.broadcast %cst_87 : f32 to vector<8x128xf32>
    %346 = arith.select %344, %304, %345 : vector<8x128xi1>, vector<8x128xf32>
    %347 = arith.truncf %346 : vector<8x128xf32> to vector<8x128xbf16>
    %c24_88 = arith.constant 24 : index
    %c0_89 = arith.constant 0 : index
    %348 = vector.load %arg8[%c24_88, %c0_89] : memref<64x256xbf16, #tpu.memory_space<vmem>>, vector<8x128xbf16>
    tpu.vector_store %arg8[%c24_88, %c0_89], %347 {strides = array<i32>} : memref<64x256xbf16, #tpu.memory_space<vmem>>, vector<8x128xbf16>,
    %cst_90 = arith.constant 0.000000e+00 : f32
    %349 = vector.shape_cast %336 : vector<8x1xi1> to vector<8x1xi1>
    %350 = vector.broadcast %349 : vector<8x1xi1> to vector<8x128xi1>
    %351 = vector.broadcast %cst_90 : f32 to vector<8x128xf32>
    %352 = arith.select %350, %332, %351 : vector<8x128xi1>, vector<8x128xf32>
    %353 = arith.truncf %352 : vector<8x128xf32> to vector<8x128xbf16>
    %c32_91 = arith.constant 32 : index
    %c128_92 = arith.constant 128 : index
    %354 = vector.load %arg8[%c32_91, %c128_92] : memref<64x256xbf16, #tpu.memory_space<vmem>>, vector<8x128xbf16>
    tpu.vector_store %arg8[%c32_91, %c128_92], %353 {strides = array<i32>} : memref<64x256xbf16, #tpu.memory_space<vmem>>, vector<8x128xbf16>,
    %c32_93 = arith.constant 32 : index
    %c0_94 = arith.constant 0 : index
    %355 = vector.load %arg9[%c32_93, %c0_94] : memref<64x768xf32, #tpu.memory_space<vmem>>, vector<8x384xf32>
    %c24_95 = arith.constant 24 : index
    %c384_96 = arith.constant 384 : index
    %356 = vector.load %arg9[%c24_95, %c384_96] : memref<64x768xf32, #tpu.memory_space<vmem>>, vector<8x384xf32>
    %357 = arith.truncf %339 : vector<8x128xf32> to vector<8x128xbf16>
    %c0_97 = arith.constant 0 : index
    %c0_98 = arith.constant 0 : index
    %358 = vector.load %arg4[%c0_97, %c0_98] : memref<128x384xbf16, #tpu.memory_space<vmem>>, vector<128x384xbf16>
    %cst_99 = arith.constant dense<0.000000e+00> : vector<8x384xf32>
    %359 = tpu.matmul %357, %358, %cst_99 {dimension_numbers = #tpu.dot_dimension_numbers<[1], [0], [0], [1], [0, 0, 1, 1], [], []>} : vector<8x128xbf16>, vector<128x384xbf16>, vector<8x384xf32> -> vector<8x384xf32>
    %360 = arith.truncf %342 : vector<8x128xf32> to vector<8x128xbf16>
    %c0_100 = arith.constant 0 : index
    %c0_101 = arith.constant 0 : index
    %361 = vector.load %arg6[%c0_100, %c0_101] : memref<128x384xbf16, #tpu.memory_space<vmem>>, vector<128x384xbf16>
    %cst_102 = arith.constant dense<0.000000e+00> : vector<8x384xf32>
    %362 = tpu.matmul %360, %361, %cst_102 {dimension_numbers = #tpu.dot_dimension_numbers<[1], [0], [0], [1], [0, 0, 1, 1], [], []>} : vector<8x128xbf16>, vector<128x384xbf16>, vector<8x384xf32> -> vector<8x384xf32>
    %363 = vector.extract_strided_slice %355 {offsets = [0, 0], sizes = [8, 128], strides = [1, 1]} : vector<8x384xf32> to vector<8x128xf32>
    %364 = vector.extract_strided_slice %359 {offsets = [0, 0], sizes = [8, 128], strides = [1, 1]} : vector<8x384xf32> to vector<8x128xf32>
    %365 = arith.addf %363, %364 : vector<8x128xf32>
    %366 = arith.negf %365 : vector<8x128xf32>
    %367 = math.exp %366 : vector<8x128xf32>
    %cst_103 = arith.constant 1.000000e+00 : f32
    %368 = vector.broadcast %cst_103 : f32 to vector<8x128xf32>
    %369 = arith.addf %368, %367 : vector<8x128xf32>
    %370 = arith.divf %368, %369 : vector<8x128xf32>
    %371 = vector.extract_strided_slice %355 {offsets = [0, 128], sizes = [8, 128], strides = [1, 1]} : vector<8x384xf32> to vector<8x128xf32>
    %372 = vector.extract_strided_slice %359 {offsets = [0, 128], sizes = [8, 128], strides = [1, 1]} : vector<8x384xf32> to vector<8x128xf32>
    %373 = arith.addf %371, %372 : vector<8x128xf32>
    %374 = arith.negf %373 : vector<8x128xf32>
    %375 = math.exp %374 : vector<8x128xf32>
    %cst_104 = arith.constant 1.000000e+00 : f32
    %376 = vector.broadcast %cst_104 : f32 to vector<8x128xf32>
    %377 = arith.addf %376, %375 : vector<8x128xf32>
    %378 = arith.divf %376, %377 : vector<8x128xf32>
    %379 = vector.extract_strided_slice %355 {offsets = [0, 256], sizes = [8, 128], strides = [1, 1]} : vector<8x384xf32> to vector<8x128xf32>
    %380 = vector.extract_strided_slice %359 {offsets = [0, 256], sizes = [8, 128], strides = [1, 1]} : vector<8x384xf32> to vector<8x128xf32>
    %381 = vector.broadcast %8 : vector<1x128xf32> to vector<8x128xf32>
    %382 = arith.addf %380, %381 : vector<8x128xf32>
    %383 = arith.mulf %370, %382 : vector<8x128xf32>
    %384 = arith.addf %379, %383 : vector<8x128xf32>
    %385 = math.tanh %384 : vector<8x128xf32>
    %cst_105 = arith.constant 1.000000e+00 : f32
    %386 = vector.broadcast %cst_105 : f32 to vector<8x128xf32>
    %387 = arith.subf %386, %378 : vector<8x128xf32>
    %388 = arith.mulf %387, %385 : vector<8x128xf32>
    %389 = arith.mulf %378, %339 : vector<8x128xf32>
    %390 = arith.addf %388, %389 : vector<8x128xf32>
    %391 = vector.extract_strided_slice %356 {offsets = [0, 0], sizes = [8, 128], strides = [1, 1]} : vector<8x384xf32> to vector<8x128xf32>
    %392 = vector.extract_strided_slice %362 {offsets = [0, 0], sizes = [8, 128], strides = [1, 1]} : vector<8x384xf32> to vector<8x128xf32>
    %393 = arith.addf %391, %392 : vector<8x128xf32>
    %394 = arith.negf %393 : vector<8x128xf32>
    %395 = math.exp %394 : vector<8x128xf32>
    %cst_106 = arith.constant 1.000000e+00 : f32
    %396 = vector.broadcast %cst_106 : f32 to vector<8x128xf32>
    %397 = arith.addf %396, %395 : vector<8x128xf32>
    %398 = arith.divf %396, %397 : vector<8x128xf32>
    %399 = vector.extract_strided_slice %356 {offsets = [0, 128], sizes = [8, 128], strides = [1, 1]} : vector<8x384xf32> to vector<8x128xf32>
    %400 = vector.extract_strided_slice %362 {offsets = [0, 128], sizes = [8, 128], strides = [1, 1]} : vector<8x384xf32> to vector<8x128xf32>
    %401 = arith.addf %399, %400 : vector<8x128xf32>
    %402 = arith.negf %401 : vector<8x128xf32>
    %403 = math.exp %402 : vector<8x128xf32>
    %cst_107 = arith.constant 1.000000e+00 : f32
    %404 = vector.broadcast %cst_107 : f32 to vector<8x128xf32>
    %405 = arith.addf %404, %403 : vector<8x128xf32>
    %406 = arith.divf %404, %405 : vector<8x128xf32>
    %407 = vector.extract_strided_slice %356 {offsets = [0, 256], sizes = [8, 128], strides = [1, 1]} : vector<8x384xf32> to vector<8x128xf32>
    %408 = vector.extract_strided_slice %362 {offsets = [0, 256], sizes = [8, 128], strides = [1, 1]} : vector<8x384xf32> to vector<8x128xf32>
    %409 = vector.broadcast %9 : vector<1x128xf32> to vector<8x128xf32>
    %410 = arith.addf %408, %409 : vector<8x128xf32>
    %411 = arith.mulf %398, %410 : vector<8x128xf32>
    %412 = arith.addf %407, %411 : vector<8x128xf32>
    %413 = math.tanh %412 : vector<8x128xf32>
    %cst_108 = arith.constant 1.000000e+00 : f32
    %414 = vector.broadcast %cst_108 : f32 to vector<8x128xf32>
    %415 = arith.subf %414, %406 : vector<8x128xf32>
    %416 = arith.mulf %415, %413 : vector<8x128xf32>
    %417 = arith.mulf %406, %342 : vector<8x128xf32>
    %418 = arith.addf %416, %417 : vector<8x128xf32>
    %c4_i32_109 = arith.constant 4 : i32
    %419 = vector.broadcast %c4_i32_109 : i32 to vector<8x1xi32>
    %420 = arith.cmpi sgt, %7, %419 : vector<8x1xi32>
    %c3_i32_110 = arith.constant 3 : i32
    %421 = vector.broadcast %c3_i32_110 : i32 to vector<8x1xi32>
    %422 = arith.cmpi sgt, %7, %421 : vector<8x1xi32>
    %423 = vector.shape_cast %420 : vector<8x1xi1> to vector<8x1xi1>
    %424 = vector.broadcast %423 : vector<8x1xi1> to vector<8x128xi1>
    %425 = arith.select %424, %390, %339 : vector<8x128xi1>, vector<8x128xf32>
    %426 = vector.shape_cast %422 : vector<8x1xi1> to vector<8x1xi1>
    %427 = vector.broadcast %426 : vector<8x1xi1> to vector<8x128xi1>
    %428 = arith.select %427, %418, %342 : vector<8x128xi1>, vector<8x128xf32>
    %cst_111 = arith.constant 0.000000e+00 : f32
    %429 = vector.shape_cast %420 : vector<8x1xi1> to vector<8x1xi1>
    %430 = vector.broadcast %429 : vector<8x1xi1> to vector<8x128xi1>
    %431 = vector.broadcast %cst_111 : f32 to vector<8x128xf32>
    %432 = arith.select %430, %390, %431 : vector<8x128xi1>, vector<8x128xf32>
    %433 = arith.truncf %432 : vector<8x128xf32> to vector<8x128xbf16>
    %c32_112 = arith.constant 32 : index
    %c0_113 = arith.constant 0 : index
    %434 = vector.load %arg8[%c32_112, %c0_113] : memref<64x256xbf16, #tpu.memory_space<vmem>>, vector<8x128xbf16>
    tpu.vector_store %arg8[%c32_112, %c0_113], %433 {strides = array<i32>} : memref<64x256xbf16, #tpu.memory_space<vmem>>, vector<8x128xbf16>,
    %cst_114 = arith.constant 0.000000e+00 : f32
    %435 = vector.shape_cast %422 : vector<8x1xi1> to vector<8x1xi1>
    %436 = vector.broadcast %435 : vector<8x1xi1> to vector<8x128xi1>
    %437 = vector.broadcast %cst_114 : f32 to vector<8x128xf32>
    %438 = arith.select %436, %418, %437 : vector<8x128xi1>, vector<8x128xf32>
    %439 = arith.truncf %438 : vector<8x128xf32> to vector<8x128xbf16>
    %c24_115 = arith.constant 24 : index
    %c128_116 = arith.constant 128 : index
    %440 = vector.load %arg8[%c24_115, %c128_116] : memref<64x256xbf16, #tpu.memory_space<vmem>>, vector<8x128xbf16>
    tpu.vector_store %arg8[%c24_115, %c128_116], %439 {strides = array<i32>} : memref<64x256xbf16, #tpu.memory_space<vmem>>, vector<8x128xbf16>,
    %c40_117 = arith.constant 40 : index
    %c0_118 = arith.constant 0 : index
    %441 = vector.load %arg9[%c40_117, %c0_118] : memref<64x768xf32, #tpu.memory_space<vmem>>, vector<8x384xf32>
    %c16_119 = arith.constant 16 : index
    %c384_120 = arith.constant 384 : index
    %442 = vector.load %arg9[%c16_119, %c384_120] : memref<64x768xf32, #tpu.memory_space<vmem>>, vector<8x384xf32>
    %443 = arith.truncf %425 : vector<8x128xf32> to vector<8x128xbf16>
    %c0_121 = arith.constant 0 : index
    %c0_122 = arith.constant 0 : index
    %444 = vector.load %arg4[%c0_121, %c0_122] : memref<128x384xbf16, #tpu.memory_space<vmem>>, vector<128x384xbf16>
    %cst_123 = arith.constant dense<0.000000e+00> : vector<8x384xf32>
    %445 = tpu.matmul %443, %444, %cst_123 {dimension_numbers = #tpu.dot_dimension_numbers<[1], [0], [0], [1], [0, 0, 1, 1], [], []>} : vector<8x128xbf16>, vector<128x384xbf16>, vector<8x384xf32> -> vector<8x384xf32>
    %446 = arith.truncf %428 : vector<8x128xf32> to vector<8x128xbf16>
    %c0_124 = arith.constant 0 : index
    %c0_125 = arith.constant 0 : index
    %447 = vector.load %arg6[%c0_124, %c0_125] : memref<128x384xbf16, #tpu.memory_space<vmem>>, vector<128x384xbf16>
    %cst_126 = arith.constant dense<0.000000e+00> : vector<8x384xf32>
    %448 = tpu.matmul %446, %447, %cst_126 {dimension_numbers = #tpu.dot_dimension_numbers<[1], [0], [0], [1], [0, 0, 1, 1], [], []>} : vector<8x128xbf16>, vector<128x384xbf16>, vector<8x384xf32> -> vector<8x384xf32>
    %449 = vector.extract_strided_slice %441 {offsets = [0, 0], sizes = [8, 128], strides = [1, 1]} : vector<8x384xf32> to vector<8x128xf32>
    %450 = vector.extract_strided_slice %445 {offsets = [0, 0], sizes = [8, 128], strides = [1, 1]} : vector<8x384xf32> to vector<8x128xf32>
    %451 = arith.addf %449, %450 : vector<8x128xf32>
    %452 = arith.negf %451 : vector<8x128xf32>
    %453 = math.exp %452 : vector<8x128xf32>
    %cst_127 = arith.constant 1.000000e+00 : f32
    %454 = vector.broadcast %cst_127 : f32 to vector<8x128xf32>
    %455 = arith.addf %454, %453 : vector<8x128xf32>
    %456 = arith.divf %454, %455 : vector<8x128xf32>
    %457 = vector.extract_strided_slice %441 {offsets = [0, 128], sizes = [8, 128], strides = [1, 1]} : vector<8x384xf32> to vector<8x128xf32>
    %458 = vector.extract_strided_slice %445 {offsets = [0, 128], sizes = [8, 128], strides = [1, 1]} : vector<8x384xf32> to vector<8x128xf32>
    %459 = arith.addf %457, %458 : vector<8x128xf32>
    %460 = arith.negf %459 : vector<8x128xf32>
    %461 = math.exp %460 : vector<8x128xf32>
    %cst_128 = arith.constant 1.000000e+00 : f32
    %462 = vector.broadcast %cst_128 : f32 to vector<8x128xf32>
    %463 = arith.addf %462, %461 : vector<8x128xf32>
    %464 = arith.divf %462, %463 : vector<8x128xf32>
    %465 = vector.extract_strided_slice %441 {offsets = [0, 256], sizes = [8, 128], strides = [1, 1]} : vector<8x384xf32> to vector<8x128xf32>
    %466 = vector.extract_strided_slice %445 {offsets = [0, 256], sizes = [8, 128], strides = [1, 1]} : vector<8x384xf32> to vector<8x128xf32>
    %467 = vector.broadcast %8 : vector<1x128xf32> to vector<8x128xf32>
    %468 = arith.addf %466, %467 : vector<8x128xf32>
    %469 = arith.mulf %456, %468 : vector<8x128xf32>
    %470 = arith.addf %465, %469 : vector<8x128xf32>
    %471 = math.tanh %470 : vector<8x128xf32>
    %cst_129 = arith.constant 1.000000e+00 : f32
    %472 = vector.broadcast %cst_129 : f32 to vector<8x128xf32>
    %473 = arith.subf %472, %464 : vector<8x128xf32>
    %474 = arith.mulf %473, %471 : vector<8x128xf32>
    %475 = arith.mulf %464, %425 : vector<8x128xf32>
    %476 = arith.addf %474, %475 : vector<8x128xf32>
    %477 = vector.extract_strided_slice %442 {offsets = [0, 0], sizes = [8, 128], strides = [1, 1]} : vector<8x384xf32> to vector<8x128xf32>
    %478 = vector.extract_strided_slice %448 {offsets = [0, 0], sizes = [8, 128], strides = [1, 1]} : vector<8x384xf32> to vector<8x128xf32>
    %479 = arith.addf %477, %478 : vector<8x128xf32>
    %480 = arith.negf %479 : vector<8x128xf32>
    %481 = math.exp %480 : vector<8x128xf32>
    %cst_130 = arith.constant 1.000000e+00 : f32
    %482 = vector.broadcast %cst_130 : f32 to vector<8x128xf32>
    %483 = arith.addf %482, %481 : vector<8x128xf32>
    %484 = arith.divf %482, %483 : vector<8x128xf32>
    %485 = vector.extract_strided_slice %442 {offsets = [0, 128], sizes = [8, 128], strides = [1, 1]} : vector<8x384xf32> to vector<8x128xf32>
    %486 = vector.extract_strided_slice %448 {offsets = [0, 128], sizes = [8, 128], strides = [1, 1]} : vector<8x384xf32> to vector<8x128xf32>
    %487 = arith.addf %485, %486 : vector<8x128xf32>
    %488 = arith.negf %487 : vector<8x128xf32>
    %489 = math.exp %488 : vector<8x128xf32>
    %cst_131 = arith.constant 1.000000e+00 : f32
    %490 = vector.broadcast %cst_131 : f32 to vector<8x128xf32>
    %491 = arith.addf %490, %489 : vector<8x128xf32>
    %492 = arith.divf %490, %491 : vector<8x128xf32>
    %493 = vector.extract_strided_slice %442 {offsets = [0, 256], sizes = [8, 128], strides = [1, 1]} : vector<8x384xf32> to vector<8x128xf32>
    %494 = vector.extract_strided_slice %448 {offsets = [0, 256], sizes = [8, 128], strides = [1, 1]} : vector<8x384xf32> to vector<8x128xf32>
    %495 = vector.broadcast %9 : vector<1x128xf32> to vector<8x128xf32>
    %496 = arith.addf %494, %495 : vector<8x128xf32>
    %497 = arith.mulf %484, %496 : vector<8x128xf32>
    %498 = arith.addf %493, %497 : vector<8x128xf32>
    %499 = math.tanh %498 : vector<8x128xf32>
    %cst_132 = arith.constant 1.000000e+00 : f32
    %500 = vector.broadcast %cst_132 : f32 to vector<8x128xf32>
    %501 = arith.subf %500, %492 : vector<8x128xf32>
    %502 = arith.mulf %501, %499 : vector<8x128xf32>
    %503 = arith.mulf %492, %428 : vector<8x128xf32>
    %504 = arith.addf %502, %503 : vector<8x128xf32>
    %c5_i32_133 = arith.constant 5 : i32
    %505 = vector.broadcast %c5_i32_133 : i32 to vector<8x1xi32>
    %506 = arith.cmpi sgt, %7, %505 : vector<8x1xi32>
    %c2_i32_134 = arith.constant 2 : i32
    %507 = vector.broadcast %c2_i32_134 : i32 to vector<8x1xi32>
    %508 = arith.cmpi sgt, %7, %507 : vector<8x1xi32>
    %509 = vector.shape_cast %506 : vector<8x1xi1> to vector<8x1xi1>
    %510 = vector.broadcast %509 : vector<8x1xi1> to vector<8x128xi1>
    %511 = arith.select %510, %476, %425 : vector<8x128xi1>, vector<8x128xf32>
    %512 = vector.shape_cast %508 : vector<8x1xi1> to vector<8x1xi1>
    %513 = vector.broadcast %512 : vector<8x1xi1> to vector<8x128xi1>
    %514 = arith.select %513, %504, %428 : vector<8x128xi1>, vector<8x128xf32>
    %cst_135 = arith.constant 0.000000e+00 : f32
    %515 = vector.shape_cast %506 : vector<8x1xi1> to vector<8x1xi1>
    %516 = vector.broadcast %515 : vector<8x1xi1> to vector<8x128xi1>
    %517 = vector.broadcast %cst_135 : f32 to vector<8x128xf32>
    %518 = arith.select %516, %476, %517 : vector<8x128xi1>, vector<8x128xf32>
    %519 = arith.truncf %518 : vector<8x128xf32> to vector<8x128xbf16>
    %c40_136 = arith.constant 40 : index
    %c0_137 = arith.constant 0 : index
    %520 = vector.load %arg8[%c40_136, %c0_137] : memref<64x256xbf16, #tpu.memory_space<vmem>>, vector<8x128xbf16>
    tpu.vector_store %arg8[%c40_136, %c0_137], %519 {strides = array<i32>} : memref<64x256xbf16, #tpu.memory_space<vmem>>, vector<8x128xbf16>,
    %cst_138 = arith.constant 0.000000e+00 : f32
    %521 = vector.shape_cast %508 : vector<8x1xi1> to vector<8x1xi1>
    %522 = vector.broadcast %521 : vector<8x1xi1> to vector<8x128xi1>
    %523 = vector.broadcast %cst_138 : f32 to vector<8x128xf32>
    %524 = arith.select %522, %504, %523 : vector<8x128xi1>, vector<8x128xf32>
    %525 = arith.truncf %524 : vector<8x128xf32> to vector<8x128xbf16>
    %c16_139 = arith.constant 16 : index
    %c128_140 = arith.constant 128 : index
    %526 = vector.load %arg8[%c16_139, %c128_140] : memref<64x256xbf16, #tpu.memory_space<vmem>>, vector<8x128xbf16>
    tpu.vector_store %arg8[%c16_139, %c128_140], %525 {strides = array<i32>} : memref<64x256xbf16, #tpu.memory_space<vmem>>, vector<8x128xbf16>,
    %c48_141 = arith.constant 48 : index
    %c0_142 = arith.constant 0 : index
    %527 = vector.load %arg9[%c48_141, %c0_142] : memref<64x768xf32, #tpu.memory_space<vmem>>, vector<8x384xf32>
    %c8_143 = arith.constant 8 : index
    %c384_144 = arith.constant 384 : index
    %528 = vector.load %arg9[%c8_143, %c384_144] : memref<64x768xf32, #tpu.memory_space<vmem>>, vector<8x384xf32>
    %529 = arith.truncf %511 : vector<8x128xf32> to vector<8x128xbf16>
    %c0_145 = arith.constant 0 : index
    %c0_146 = arith.constant 0 : index
    %530 = vector.load %arg4[%c0_145, %c0_146] : memref<128x384xbf16, #tpu.memory_space<vmem>>, vector<128x384xbf16>
    %cst_147 = arith.constant dense<0.000000e+00> : vector<8x384xf32>
    %531 = tpu.matmul %529, %530, %cst_147 {dimension_numbers = #tpu.dot_dimension_numbers<[1], [0], [0], [1], [0, 0, 1, 1], [], []>} : vector<8x128xbf16>, vector<128x384xbf16>, vector<8x384xf32> -> vector<8x384xf32>
    %532 = arith.truncf %514 : vector<8x128xf32> to vector<8x128xbf16>
    %c0_148 = arith.constant 0 : index
    %c0_149 = arith.constant 0 : index
    %533 = vector.load %arg6[%c0_148, %c0_149] : memref<128x384xbf16, #tpu.memory_space<vmem>>, vector<128x384xbf16>
    %cst_150 = arith.constant dense<0.000000e+00> : vector<8x384xf32>
    %534 = tpu.matmul %532, %533, %cst_150 {dimension_numbers = #tpu.dot_dimension_numbers<[1], [0], [0], [1], [0, 0, 1, 1], [], []>} : vector<8x128xbf16>, vector<128x384xbf16>, vector<8x384xf32> -> vector<8x384xf32>
    %535 = vector.extract_strided_slice %527 {offsets = [0, 0], sizes = [8, 128], strides = [1, 1]} : vector<8x384xf32> to vector<8x128xf32>
    %536 = vector.extract_strided_slice %531 {offsets = [0, 0], sizes = [8, 128], strides = [1, 1]} : vector<8x384xf32> to vector<8x128xf32>
    %537 = arith.addf %535, %536 : vector<8x128xf32>
    %538 = arith.negf %537 : vector<8x128xf32>
    %539 = math.exp %538 : vector<8x128xf32>
    %cst_151 = arith.constant 1.000000e+00 : f32
    %540 = vector.broadcast %cst_151 : f32 to vector<8x128xf32>
    %541 = arith.addf %540, %539 : vector<8x128xf32>
    %542 = arith.divf %540, %541 : vector<8x128xf32>
    %543 = vector.extract_strided_slice %527 {offsets = [0, 128], sizes = [8, 128], strides = [1, 1]} : vector<8x384xf32> to vector<8x128xf32>
    %544 = vector.extract_strided_slice %531 {offsets = [0, 128], sizes = [8, 128], strides = [1, 1]} : vector<8x384xf32> to vector<8x128xf32>
    %545 = arith.addf %543, %544 : vector<8x128xf32>
    %546 = arith.negf %545 : vector<8x128xf32>
    %547 = math.exp %546 : vector<8x128xf32>
    %cst_152 = arith.constant 1.000000e+00 : f32
    %548 = vector.broadcast %cst_152 : f32 to vector<8x128xf32>
    %549 = arith.addf %548, %547 : vector<8x128xf32>
    %550 = arith.divf %548, %549 : vector<8x128xf32>
    %551 = vector.extract_strided_slice %527 {offsets = [0, 256], sizes = [8, 128], strides = [1, 1]} : vector<8x384xf32> to vector<8x128xf32>
    %552 = vector.extract_strided_slice %531 {offsets = [0, 256], sizes = [8, 128], strides = [1, 1]} : vector<8x384xf32> to vector<8x128xf32>
    %553 = vector.broadcast %8 : vector<1x128xf32> to vector<8x128xf32>
    %554 = arith.addf %552, %553 : vector<8x128xf32>
    %555 = arith.mulf %542, %554 : vector<8x128xf32>
    %556 = arith.addf %551, %555 : vector<8x128xf32>
    %557 = math.tanh %556 : vector<8x128xf32>
    %cst_153 = arith.constant 1.000000e+00 : f32
    %558 = vector.broadcast %cst_153 : f32 to vector<8x128xf32>
    %559 = arith.subf %558, %550 : vector<8x128xf32>
    %560 = arith.mulf %559, %557 : vector<8x128xf32>
    %561 = arith.mulf %550, %511 : vector<8x128xf32>
    %562 = arith.addf %560, %561 : vector<8x128xf32>
    %563 = vector.extract_strided_slice %528 {offsets = [0, 0], sizes = [8, 128], strides = [1, 1]} : vector<8x384xf32> to vector<8x128xf32>
    %564 = vector.extract_strided_slice %534 {offsets = [0, 0], sizes = [8, 128], strides = [1, 1]} : vector<8x384xf32> to vector<8x128xf32>
    %565 = arith.addf %563, %564 : vector<8x128xf32>
    %566 = arith.negf %565 : vector<8x128xf32>
    %567 = math.exp %566 : vector<8x128xf32>
    %cst_154 = arith.constant 1.000000e+00 : f32
    %568 = vector.broadcast %cst_154 : f32 to vector<8x128xf32>
    %569 = arith.addf %568, %567 : vector<8x128xf32>
    %570 = arith.divf %568, %569 : vector<8x128xf32>
    %571 = vector.extract_strided_slice %528 {offsets = [0, 128], sizes = [8, 128], strides = [1, 1]} : vector<8x384xf32> to vector<8x128xf32>
    %572 = vector.extract_strided_slice %534 {offsets = [0, 128], sizes = [8, 128], strides = [1, 1]} : vector<8x384xf32> to vector<8x128xf32>
    %573 = arith.addf %571, %572 : vector<8x128xf32>
    %574 = arith.negf %573 : vector<8x128xf32>
    %575 = math.exp %574 : vector<8x128xf32>
    %cst_155 = arith.constant 1.000000e+00 : f32
    %576 = vector.broadcast %cst_155 : f32 to vector<8x128xf32>
    %577 = arith.addf %576, %575 : vector<8x128xf32>
    %578 = arith.divf %576, %577 : vector<8x128xf32>
    %579 = vector.extract_strided_slice %528 {offsets = [0, 256], sizes = [8, 128], strides = [1, 1]} : vector<8x384xf32> to vector<8x128xf32>
    %580 = vector.extract_strided_slice %534 {offsets = [0, 256], sizes = [8, 128], strides = [1, 1]} : vector<8x384xf32> to vector<8x128xf32>
    %581 = vector.broadcast %9 : vector<1x128xf32> to vector<8x128xf32>
    %582 = arith.addf %580, %581 : vector<8x128xf32>
    %583 = arith.mulf %570, %582 : vector<8x128xf32>
    %584 = arith.addf %579, %583 : vector<8x128xf32>
    %585 = math.tanh %584 : vector<8x128xf32>
    %cst_156 = arith.constant 1.000000e+00 : f32
    %586 = vector.broadcast %cst_156 : f32 to vector<8x128xf32>
    %587 = arith.subf %586, %578 : vector<8x128xf32>
    %588 = arith.mulf %587, %585 : vector<8x128xf32>
    %589 = arith.mulf %578, %514 : vector<8x128xf32>
    %590 = arith.addf %588, %589 : vector<8x128xf32>
    %c6_i32_157 = arith.constant 6 : i32
    %591 = vector.broadcast %c6_i32_157 : i32 to vector<8x1xi32>
    %592 = arith.cmpi sgt, %7, %591 : vector<8x1xi32>
    %c1_i32_158 = arith.constant 1 : i32
    %593 = vector.broadcast %c1_i32_158 : i32 to vector<8x1xi32>
    %594 = arith.cmpi sgt, %7, %593 : vector<8x1xi32>
    %595 = vector.shape_cast %592 : vector<8x1xi1> to vector<8x1xi1>
    %596 = vector.broadcast %595 : vector<8x1xi1> to vector<8x128xi1>
    %597 = arith.select %596, %562, %511 : vector<8x128xi1>, vector<8x128xf32>
    %598 = vector.shape_cast %594 : vector<8x1xi1> to vector<8x1xi1>
    %599 = vector.broadcast %598 : vector<8x1xi1> to vector<8x128xi1>
    %600 = arith.select %599, %590, %514 : vector<8x128xi1>, vector<8x128xf32>
    %cst_159 = arith.constant 0.000000e+00 : f32
    %601 = vector.shape_cast %592 : vector<8x1xi1> to vector<8x1xi1>
    %602 = vector.broadcast %601 : vector<8x1xi1> to vector<8x128xi1>
    %603 = vector.broadcast %cst_159 : f32 to vector<8x128xf32>
    %604 = arith.select %602, %562, %603 : vector<8x128xi1>, vector<8x128xf32>
    %605 = arith.truncf %604 : vector<8x128xf32> to vector<8x128xbf16>
    %c48_160 = arith.constant 48 : index
    %c0_161 = arith.constant 0 : index
    %606 = vector.load %arg8[%c48_160, %c0_161] : memref<64x256xbf16, #tpu.memory_space<vmem>>, vector<8x128xbf16>
    tpu.vector_store %arg8[%c48_160, %c0_161], %605 {strides = array<i32>} : memref<64x256xbf16, #tpu.memory_space<vmem>>, vector<8x128xbf16>,
    %cst_162 = arith.constant 0.000000e+00 : f32
    %607 = vector.shape_cast %594 : vector<8x1xi1> to vector<8x1xi1>
    %608 = vector.broadcast %607 : vector<8x1xi1> to vector<8x128xi1>
    %609 = vector.broadcast %cst_162 : f32 to vector<8x128xf32>
    %610 = arith.select %608, %590, %609 : vector<8x128xi1>, vector<8x128xf32>
    %611 = arith.truncf %610 : vector<8x128xf32> to vector<8x128xbf16>
    %c8_163 = arith.constant 8 : index
    %c128_164 = arith.constant 128 : index
    %612 = vector.load %arg8[%c8_163, %c128_164] : memref<64x256xbf16, #tpu.memory_space<vmem>>, vector<8x128xbf16>
    tpu.vector_store %arg8[%c8_163, %c128_164], %611 {strides = array<i32>} : memref<64x256xbf16, #tpu.memory_space<vmem>>, vector<8x128xbf16>,
    %c56_165 = arith.constant 56 : index
    %c0_166 = arith.constant 0 : index
    %613 = vector.load %arg9[%c56_165, %c0_166] : memref<64x768xf32, #tpu.memory_space<vmem>>, vector<8x384xf32>
    %c0_167 = arith.constant 0 : index
    %c384_168 = arith.constant 384 : index
    %614 = vector.load %arg9[%c0_167, %c384_168] : memref<64x768xf32, #tpu.memory_space<vmem>>, vector<8x384xf32>
    %615 = arith.truncf %597 : vector<8x128xf32> to vector<8x128xbf16>
    %c0_169 = arith.constant 0 : index
    %c0_170 = arith.constant 0 : index
    %616 = vector.load %arg4[%c0_169, %c0_170] : memref<128x384xbf16, #tpu.memory_space<vmem>>, vector<128x384xbf16>
    %cst_171 = arith.constant dense<0.000000e+00> : vector<8x384xf32>
    %617 = tpu.matmul %615, %616, %cst_171 {dimension_numbers = #tpu.dot_dimension_numbers<[1], [0], [0], [1], [0, 0, 1, 1], [], []>} : vector<8x128xbf16>, vector<128x384xbf16>, vector<8x384xf32> -> vector<8x384xf32>
    %618 = arith.truncf %600 : vector<8x128xf32> to vector<8x128xbf16>
    %c0_172 = arith.constant 0 : index
    %c0_173 = arith.constant 0 : index
    %619 = vector.load %arg6[%c0_172, %c0_173] : memref<128x384xbf16, #tpu.memory_space<vmem>>, vector<128x384xbf16>
    %cst_174 = arith.constant dense<0.000000e+00> : vector<8x384xf32>
    %620 = tpu.matmul %618, %619, %cst_174 {dimension_numbers = #tpu.dot_dimension_numbers<[1], [0], [0], [1], [0, 0, 1, 1], [], []>} : vector<8x128xbf16>, vector<128x384xbf16>, vector<8x384xf32> -> vector<8x384xf32>
    %621 = vector.extract_strided_slice %613 {offsets = [0, 0], sizes = [8, 128], strides = [1, 1]} : vector<8x384xf32> to vector<8x128xf32>
    %622 = vector.extract_strided_slice %617 {offsets = [0, 0], sizes = [8, 128], strides = [1, 1]} : vector<8x384xf32> to vector<8x128xf32>
    %623 = arith.addf %621, %622 : vector<8x128xf32>
    %624 = arith.negf %623 : vector<8x128xf32>
    %625 = math.exp %624 : vector<8x128xf32>
    %cst_175 = arith.constant 1.000000e+00 : f32
    %626 = vector.broadcast %cst_175 : f32 to vector<8x128xf32>
    %627 = arith.addf %626, %625 : vector<8x128xf32>
    %628 = arith.divf %626, %627 : vector<8x128xf32>
    %629 = vector.extract_strided_slice %613 {offsets = [0, 128], sizes = [8, 128], strides = [1, 1]} : vector<8x384xf32> to vector<8x128xf32>
    %630 = vector.extract_strided_slice %617 {offsets = [0, 128], sizes = [8, 128], strides = [1, 1]} : vector<8x384xf32> to vector<8x128xf32>
    %631 = arith.addf %629, %630 : vector<8x128xf32>
    %632 = arith.negf %631 : vector<8x128xf32>
    %633 = math.exp %632 : vector<8x128xf32>
    %cst_176 = arith.constant 1.000000e+00 : f32
    %634 = vector.broadcast %cst_176 : f32 to vector<8x128xf32>
    %635 = arith.addf %634, %633 : vector<8x128xf32>
    %636 = arith.divf %634, %635 : vector<8x128xf32>
    %637 = vector.extract_strided_slice %613 {offsets = [0, 256], sizes = [8, 128], strides = [1, 1]} : vector<8x384xf32> to vector<8x128xf32>
    %638 = vector.extract_strided_slice %617 {offsets = [0, 256], sizes = [8, 128], strides = [1, 1]} : vector<8x384xf32> to vector<8x128xf32>
    %639 = vector.broadcast %8 : vector<1x128xf32> to vector<8x128xf32>
    %640 = arith.addf %638, %639 : vector<8x128xf32>
    %641 = arith.mulf %628, %640 : vector<8x128xf32>
    %642 = arith.addf %637, %641 : vector<8x128xf32>
    %643 = math.tanh %642 : vector<8x128xf32>
    %cst_177 = arith.constant 1.000000e+00 : f32
    %644 = vector.broadcast %cst_177 : f32 to vector<8x128xf32>
    %645 = arith.subf %644, %636 : vector<8x128xf32>
    %646 = arith.mulf %645, %643 : vector<8x128xf32>
    %647 = arith.mulf %636, %597 : vector<8x128xf32>
    %648 = arith.addf %646, %647 : vector<8x128xf32>
    %649 = vector.extract_strided_slice %614 {offsets = [0, 0], sizes = [8, 128], strides = [1, 1]} : vector<8x384xf32> to vector<8x128xf32>
    %650 = vector.extract_strided_slice %620 {offsets = [0, 0], sizes = [8, 128], strides = [1, 1]} : vector<8x384xf32> to vector<8x128xf32>
    %651 = arith.addf %649, %650 : vector<8x128xf32>
    %652 = arith.negf %651 : vector<8x128xf32>
    %653 = math.exp %652 : vector<8x128xf32>
    %cst_178 = arith.constant 1.000000e+00 : f32
    %654 = vector.broadcast %cst_178 : f32 to vector<8x128xf32>
    %655 = arith.addf %654, %653 : vector<8x128xf32>
    %656 = arith.divf %654, %655 : vector<8x128xf32>
    %657 = vector.extract_strided_slice %614 {offsets = [0, 128], sizes = [8, 128], strides = [1, 1]} : vector<8x384xf32> to vector<8x128xf32>
    %658 = vector.extract_strided_slice %620 {offsets = [0, 128], sizes = [8, 128], strides = [1, 1]} : vector<8x384xf32> to vector<8x128xf32>
    %659 = arith.addf %657, %658 : vector<8x128xf32>
    %660 = arith.negf %659 : vector<8x128xf32>
    %661 = math.exp %660 : vector<8x128xf32>
    %cst_179 = arith.constant 1.000000e+00 : f32
    %662 = vector.broadcast %cst_179 : f32 to vector<8x128xf32>
    %663 = arith.addf %662, %661 : vector<8x128xf32>
    %664 = arith.divf %662, %663 : vector<8x128xf32>
    %665 = vector.extract_strided_slice %614 {offsets = [0, 256], sizes = [8, 128], strides = [1, 1]} : vector<8x384xf32> to vector<8x128xf32>
    %666 = vector.extract_strided_slice %620 {offsets = [0, 256], sizes = [8, 128], strides = [1, 1]} : vector<8x384xf32> to vector<8x128xf32>
    %667 = vector.broadcast %9 : vector<1x128xf32> to vector<8x128xf32>
    %668 = arith.addf %666, %667 : vector<8x128xf32>
    %669 = arith.mulf %656, %668 : vector<8x128xf32>
    %670 = arith.addf %665, %669 : vector<8x128xf32>
    %671 = math.tanh %670 : vector<8x128xf32>
    %cst_180 = arith.constant 1.000000e+00 : f32
    %672 = vector.broadcast %cst_180 : f32 to vector<8x128xf32>
    %673 = arith.subf %672, %664 : vector<8x128xf32>
    %674 = arith.mulf %673, %671 : vector<8x128xf32>
    %675 = arith.mulf %664, %600 : vector<8x128xf32>
    %676 = arith.addf %674, %675 : vector<8x128xf32>
    %c7_i32_181 = arith.constant 7 : i32
    %677 = vector.broadcast %c7_i32_181 : i32 to vector<8x1xi32>
    %678 = arith.cmpi sgt, %7, %677 : vector<8x1xi32>
    %c0_i32_182 = arith.constant 0 : i32
    %679 = vector.broadcast %c0_i32_182 : i32 to vector<8x1xi32>
    %680 = arith.cmpi sgt, %7, %679 : vector<8x1xi32>
    %cst_183 = arith.constant 0.000000e+00 : f32
    %681 = vector.shape_cast %678 : vector<8x1xi1> to vector<8x1xi1>
    %682 = vector.broadcast %681 : vector<8x1xi1> to vector<8x128xi1>
    %683 = vector.broadcast %cst_183 : f32 to vector<8x128xf32>
    %684 = arith.select %682, %648, %683 : vector<8x128xi1>, vector<8x128xf32>
    %685 = arith.truncf %684 : vector<8x128xf32> to vector<8x128xbf16>
    %c56_184 = arith.constant 56 : index
    %c0_185 = arith.constant 0 : index
    %686 = vector.load %arg8[%c56_184, %c0_185] : memref<64x256xbf16, #tpu.memory_space<vmem>>, vector<8x128xbf16>
    tpu.vector_store %arg8[%c56_184, %c0_185], %685 {strides = array<i32>} : memref<64x256xbf16, #tpu.memory_space<vmem>>, vector<8x128xbf16>,
    %cst_186 = arith.constant 0.000000e+00 : f32
    %687 = vector.shape_cast %680 : vector<8x1xi1> to vector<8x1xi1>
    %688 = vector.broadcast %687 : vector<8x1xi1> to vector<8x128xi1>
    %689 = vector.broadcast %cst_186 : f32 to vector<8x128xf32>
    %690 = arith.select %688, %676, %689 : vector<8x128xi1>, vector<8x128xf32>
    %691 = arith.truncf %690 : vector<8x128xf32> to vector<8x128xbf16>
    %c0_187 = arith.constant 0 : index
    %c128_188 = arith.constant 128 : index
    %692 = vector.load %arg8[%c0_187, %c128_188] : memref<64x256xbf16, #tpu.memory_space<vmem>>, vector<8x128xbf16>
    tpu.vector_store %arg8[%c0_187, %c128_188], %691 {strides = array<i32>} : memref<64x256xbf16, #tpu.memory_space<vmem>>, vector<8x128xbf16>,
    return
  }
}

</mosaic_0001>

<bundles_post_ra>
// kernel: tpu_custom_call.1
= control target key start
LH: loop header
LB: loop body
LE: loop exit
PB: predicated region body
PF: predicated region fallthrough
CT: control target
= control target key end

     0   :  { %13 = vsyncpa [#allocation4], 0  ;;  %s7846_s0 = inlined_call_operand.vmem [shape: s32[8,1], index: 0, kind: input, shape index: {}]   ;;  %s7847_s1 = inlined_call_operand.hbm [shape: bf16[64,128], index: 1, kind: input, shape index: {}]   ;;  %s7848_s2 = inlined_call_operand.hbm [shape: bf16[128,768], index: 2, kind: input, shape index: {}]   ;;  %s7849_s3 = inlined_call_operand.vmem [shape: f32[1,768], index: 3, kind: input, shape index: {}]   ;;  %s7850_s4 = inlined_call_operand.hbm [shape: bf16[128,384], index: 4, kind: input, shape index: {}]   ;;  %s7851_s5 = inlined_call_operand.vmem [shape: f32[1,128], index: 5, kind: input, shape index: {}]   ;;  %s7852_s6 = inlined_call_operand.hbm [shape: bf16[128,384], index: 6, kind: input, shape index: {}]   ;;  %s7853_s7 = inlined_call_operand.vmem [shape: f32[1,128], index: 7, kind: input, shape index: {}]   ;;  %s7854_s8 = inlined_call_operand.hbm [shape: bf16[64,256], index: 8, kind: output, shape index: {}]  }
   0x1   :  { %14 = vsyncpa [#allocation7], 0 }
   0x2   :  { %15 = vsyncpa [#allocation10], 0 }
   0x3   :  { %16 = vsyncpa [#allocation5], 0  ;;  %s6714_s27 = smov [#allocation6]  }
   0x4   :  { %s36_s28 = sshll.u32 %s6714_s27, 4  ;;  %s37_s28 = int_to_ptr.vmem [resolvable:$true] %s36_s28 }
   0x5   :  { %s6614_s29 = scalar_lea.vmem %s37_s28, 6144  ;;  %p6619_p1 = scmp.lt.s32.totalorder %s37_s28, %s37_s28 }
   0x6   :  { %p6615_p0 = scmp.ne.s32.totalorder %s37_s28, %s6614_s29  ;;  %p6620_p2 = scmp.lt.s32.totalorder %s6614_s29, %s6614_s29 }
   0x8   :  { %p6621_p3 = por %p6620_p2, %p6619_p1 }
   0xa   :  { %p6622_p4 = pnand %p6621_p3, %p6615_p0 }
   0xc   :  { %6625 = shalt.err (!%p6622_p4)
}
   0xd   :  { %s6715_s30 = smov 384   ;;  %s6716_s9 = smov 24  }
   0xe   :  { %42 = dma.hbm_to_vmem [thread:$0]  %s7848_s2, 6144, %s37_s28, [#allocation7], %s6715_s30, %s6715_s30, %s6716_s9  }
   0xf   :  { %s6717_s12 = smov [#allocation3]  }
  0x10   :  { %s24_s13 = sshll.u32 %s6717_s12, 4  ;;  %s25_s13 = int_to_ptr.vmem [resolvable:$true] %s24_s13 }
  0x11   :  { %s6634_s14 = scalar_lea.vmem %s25_s13, 512  ;;  %p6639_p6 = scmp.lt.s32.totalorder %s25_s13, %s25_s13 }
  0x12   :  { %p6635_p5 = scmp.ne.s32.totalorder %s25_s13, %s6634_s14  ;;  %p6640_p7 = scmp.lt.s32.totalorder %s6634_s14, %s6634_s14 }
  0x14   :  { %p6641_p8 = por %p6640_p7, %p6639_p6 }
  0x16   :  { %p6642_p9 = pnand %p6641_p8, %p6635_p5 }
  0x18   :  { %6645 = shalt.err (!%p6642_p9)
}
  0x19   :  { %s6718_s15 = smov 64   ;;  %s6719_s16 = smov 4  }
  0x1a   :  { %30 = dma.hbm_to_vmem [thread:$0]  %s7847_s1, 512, %s25_s13, [#allocation4], %s6718_s15, %s6718_s15, %s6719_s16  }
  0x1b   :  { %s6720_s19 = smov [#allocation8]  }
  0x1c   :  { %s50_s20 = sshll.u32 %s6720_s19, 4  ;;  %s51_s20 = int_to_ptr.vmem [resolvable:$true] %s50_s20 }
  0x1d   :  { %s6654_s2 = scalar_lea.vmem %s51_s20, 3072  ;;  %p6659_p11 = scmp.lt.s32.totalorder %s51_s20, %s51_s20 }
  0x1e   :  { %p6655_p10 = scmp.ne.s32.totalorder %s51_s20, %s6654_s2  ;;  %p6660_p12 = scmp.lt.s32.totalorder %s6654_s2, %s6654_s2 }
  0x20   :  { %p6661_p13 = por %p6660_p12, %p6659_p11 }
  0x22   :  { %p6662_p0 = pnand %p6661_p13, %p6655_p10 }
  0x24   :  { %6665 = shalt.err (!%p6662_p0)
}
  0x25   :  { %s6721_s21 = smov 192   ;;  %s6722_s22 = smov 12  }
  0x26   :  { %56 = dma.hbm_to_vmem [thread:$0]  %s7850_s4, 3072, %s51_s20, [#allocation7], %s6721_s21, %s6721_s21, %s6722_s22  }
  0x27   :  { %s6723_s25 = smov [#allocation9]  }
  0x28   :  { %s64_s26 = sshll.u32 %s6723_s25, 4  ;;  %s65_s26 = int_to_ptr.vmem [resolvable:$true] %s64_s26 }
  0x29   :  { %s6674_s1 = scalar_lea.vmem %s65_s26, 3072  ;;  %p6679_p2 = scmp.lt.s32.totalorder %s65_s26, %s65_s26 }
  0x2a   :  { %p6675_p1 = scmp.ne.s32.totalorder %s65_s26, %s6674_s1  ;;  %p6680_p3 = scmp.lt.s32.totalorder %s6674_s1, %s6674_s1 }
  0x2c   :  { %p6681_p4 = por %p6680_p3, %p6679_p2 }
  0x2e   :  { %p6682_p5 = pnand %p6681_p4, %p6675_p1 }
  0x30   :  { %6685 = shalt.err (!%p6682_p5)
}
  0x31   :  { %70 = dma.hbm_to_vmem [thread:$0]  %s7852_s6, 3072, %s65_s26, [#allocation10], %s6721_s21, %s6721_s21, %s6722_s22  }
  0x32   :  { %6706 = dma.done.wait [#allocation4], 512  }
  0x33   :  { %6707 = vsyncadd [#allocation4], 4294966784 }
  0x34   :  { %6708 = dma.done.wait [#allocation7], 9216  }
  0x35   :  { %6709 = vsyncadd [#allocation7], 4294958080 }
  0x36   :  { %6710 = dma.done.wait [#allocation10], 3072  }
  0x37   :  { %6711 = vsyncadd [#allocation10], 4294964224  ;;  %v7855_v0 = vmov 0   ;;  %v6079_v1 = vld [vmem:[#allocation6 + $0x154] ss:$24 sps:$4 sm:$0xff]   ;;  %v6793_v35 = vld [vmem:[#allocation3] sm:$0xff]  }
  0x38   :  { %470 = vmatprep.mubr.bf16.mxu0 %v7855_v0  ;;  %543 = vmatprep.mubr.bf16.mxu1 %v7855_v0  ;;  %v6081_v2 = vld [vmem:[#allocation6 + $0x15c] ss:$24 sps:$4 sm:$0xff]   ;;  %v6083_v3 = vld [vmem:[#allocation6 + $0x150] ss:$24 sps:$4 sm:$0xff]   ;;  %v6087_v6 = vld [vmem:[#allocation6 + $0x12c] ss:$24 sps:$4 sm:$0xff]  }
  0x39   :  { %6077 = vset.pattern.permute.xlu0 %v7855_v0  ;;  %6078 = vset.pattern.permute.xlu1 %v7855_v0  ;;  %v6084_v4 = vld [vmem:[#allocation6 + $0x158] ss:$24 sps:$4 sm:$0xff]   ;;  %v6085_v5 = vld [vmem:[#allocation6 + $0x124] ss:$24 sps:$4 sm:$0xff]   ;;  %v6090_v8 = vld [vmem:[#allocation6 + $0x128] ss:$24 sps:$4 sm:$0xff]  }
  0x3a   :  { %438 = vmatprep.subr.bf16.mxu0 %v6079_v1  ;;  %511 = vmatprep.subr.bf16.mxu1 %v6081_v2  ;;  %v6089_v7 = vld [vmem:[#allocation6 + $0x120] ss:$24 sps:$4 sm:$0xff]   ;;  %v6091_v9 = vld [vmem:[#allocation6 + $0xf4] ss:$24 sps:$4 sm:$0xff]   ;;  %v6095_v11 = vld [vmem:[#allocation6 + $0xf0] ss:$24 sps:$4 sm:$0xff]  }
  0x3b   :  { %439 = vmatpush1.bf16.msra.mxu0 %v6083_v3  ;;  %512 = vmatpush1.bf16.msra.mxu1 %v6084_v4  ;;  %v6093_v10 = vld [vmem:[#allocation6 + $0xfc] ss:$24 sps:$4 sm:$0xff]   ;;  %v6096_v12 = vld [vmem:[#allocation6 + $0xf8] ss:$24 sps:$4 sm:$0xff]   ;;  %v6099_v14 = vld [vmem:[#allocation6 + $0xcc] ss:$24 sps:$4 sm:$0xff]  }
  0x3c   :  { %440 = vmatprep.subr.bf16.mxu0 %v6085_v5  ;;  %513 = vmatprep.subr.bf16.mxu1 %v6087_v6  ;;  %v6097_v13 = vld [vmem:[#allocation6 + $0xc4] ss:$24 sps:$4 sm:$0xff]   ;;  %v6101_v15 = vld [vmem:[#allocation6 + $0xc0] ss:$24 sps:$4 sm:$0xff]   ;;  %v6103_v17 = vld [vmem:[#allocation6 + $0x94] ss:$24 sps:$4 sm:$0xff]  }
  0x3d   :  { %v6102_v16 = vld [vmem:[#allocation6 + $0xc8] ss:$24 sps:$4 sm:$0xff]   ;;  %v6105_v18 = vld [vmem:[#allocation6 + $0x9c] ss:$24 sps:$4 sm:$0xff]   ;;  %v6108_v20 = vld [vmem:[#allocation6 + $0x98] ss:$24 sps:$4 sm:$0xff]  }
  0x3e   :  { %v6107_v19 = vld [vmem:[#allocation6 + $0x90] ss:$24 sps:$4 sm:$0xff]   ;;  %v6109_v21 = vld [vmem:[#allocation6 + $0x64] ss:$24 sps:$4 sm:$0xff]   ;;  %v6113_v23 = vld [vmem:[#allocation6 + $0x60] ss:$24 sps:$4 sm:$0xff]  }
  0x3f   :  { %441 = vmatpush1.bf16.msra.mxu0 %v6089_v7  ;;  %514 = vmatpush1.bf16.msra.mxu1 %v6090_v8  ;;  %v6111_v22 = vld [vmem:[#allocation6 + $0x6c] ss:$24 sps:$4 sm:$0xff]   ;;  %v6114_v24 = vld [vmem:[#allocation6 + $0x68] ss:$24 sps:$4 sm:$0xff]   ;;  %v6117_v26 = vld [vmem:[#allocation6 + $0x3c] ss:$24 sps:$4 sm:$0xff]  }
  0x40   :  { %442 = vmatprep.subr.bf16.mxu0 %v6091_v9  ;;  %515 = vmatprep.subr.bf16.mxu1 %v6093_v10  ;;  %v6115_v25 = vld [vmem:[#allocation6 + $0x34] ss:$24 sps:$4 sm:$0xff]   ;;  %v6119_v27 = vld [vmem:[#allocation6 + $0x30] ss:$24 sps:$4 sm:$0xff]   ;;  %v6121_v29 = vld [vmem:[#allocation6 + $0x4] ss:$24 sps:$4 sm:$0xff]  }
  0x41   :  { %v6120_v28 = vld [vmem:[#allocation6 + $0x38] ss:$24 sps:$4 sm:$0xff]   ;;  %v6123_v30 = vld [vmem:[#allocation6 + $0xc] ss:$24 sps:$4 sm:$0xff]   ;;  %v6126_v32 = vld [vmem:[#allocation6 + $0x8] ss:$24 sps:$4 sm:$0xff]  }
  0x42   :  { %v6125_v31 = vld [vmem:[#allocation6] ss:$24 sps:$4 sm:$0xff]   ;;  %v6130_v33 = vld [vmem:[#allocation6 + $0x164] ss:$24 sps:$4 sm:$0xff]   ;;  %v6795_v37 = vld [vmem:[#allocation8 + $0xa8] ss:$12 sps:$4 sm:$0xff]  }
  0x43   :  { %443 = vmatpush1.bf16.msra.mxu0 %v6095_v11  ;;  %516 = vmatpush1.bf16.msra.mxu1 %v6096_v12  ;;  %v6791_v34 = vld [vmem:[#allocation8 + $0xac] ss:$12 sps:$4 sm:$0xff]   ;;  %v6798_v39 = vld [vmem:[#allocation8 + $0x94] ss:$12 sps:$4 sm:$0xff]   ;;  %v6134_v40 = vld [vmem:[#allocation6 + $0x130] ss:$24 sps:$4 sm:$0xff]  }
  0x44   :  { %444 = vmatprep.subr.bf16.mxu0 %v6097_v13  ;;  %517 = vmatprep.subr.bf16.mxu1 %v6099_v14  ;;  %v6128_v36 = vld [vmem:[#allocation6 + $0x160] ss:$24 sps:$4 sm:$0xff]   ;;  %v6136_v38 = vld [vmem:[#allocation6 + $0x134] ss:$24 sps:$4 sm:$0xff]   ;;  %v6803_v41 = vld [vmem:[#allocation8 + $0x90] ss:$12 sps:$4 sm:$0xff]  }
  0x45   :  { %v6143_v42 = vld [vmem:[#allocation6 + $0x104] ss:$24 sps:$4 sm:$0xff]   ;;  %v6810_v44 = vld [vmem:[#allocation3 + $0x8] sm:$0xff]   ;;  %v6141_v45 = vld [vmem:[#allocation6 + $0x100] ss:$24 sps:$4 sm:$0xff]   ;;  %v7857_v9 = vmov 0.0  }
  0x46   :  { %v6806_v43 = vld [vmem:[#allocation8 + $0x7c] ss:$12 sps:$4 sm:$0xff]   ;;  %v6812_v46 = vld [vmem:[#allocation8 + $0x78] ss:$12 sps:$4 sm:$0xff]   ;;  %v6149_v47 = vld [vmem:[#allocation6 + $0xd4] ss:$24 sps:$4 sm:$0xff]  }
  0x47   :  { %445 = vmatpush1.bf16.msra.mxu0 %v6101_v15  ;;  %518 = vmatpush1.bf16.msra.mxu1 %v6102_v16  ;;  %v6816_v48 = vld [vmem:[#allocation8 + $0x64] ss:$12 sps:$4 sm:$0xff]   ;;  %v6820_v50 = vld [vmem:[#allocation8 + $0x60] ss:$12 sps:$4 sm:$0xff]   ;;  %v6830_v55 = vld [vmem:[#allocation8 + $0x48] ss:$12 sps:$4 sm:$0xff]  }
  0x48   :  { %446 = vmatprep.subr.bf16.mxu0 %v6103_v17  ;;  %519 = vmatprep.subr.bf16.mxu1 %v6105_v18  ;;  %v6147_v49 = vld [vmem:[#allocation6 + $0xd0] ss:$24 sps:$4 sm:$0xff]   ;;  %v6156_v51 = vld [vmem:[#allocation6 + $0xa4] ss:$24 sps:$4 sm:$0xff]   ;;  %v6824_v52 = vld [vmem:[#allocation8 + $0x4c] ss:$12 sps:$4 sm:$0xff]  }
  0x49   :  { %v6828_v53 = vld [vmem:[#allocation3 + $0x10] sm:$0xff]   ;;  %v6154_v54 = vld [vmem:[#allocation6 + $0xa0] ss:$24 sps:$4 sm:$0xff]   ;;  %v6169_v60 = vld [vmem:[#allocation6 + $0x44] ss:$24 sps:$4 sm:$0xff]   ;;  %vm6726_vm4 = vmmov 0  }
  0x4a   :  { %v6162_v56 = vld [vmem:[#allocation6 + $0x74] ss:$24 sps:$4 sm:$0xff]   ;;  %v6160_v58 = vld [vmem:[#allocation6 + $0x70] ss:$24 sps:$4 sm:$0xff]   ;;  %v6846_v62 = vld [vmem:[#allocation3 + $0x18] sm:$0xff]  }
  0x4b   :  { %447 = vmatpush1.bf16.msra.mxu0 %v6107_v19  ;;  %520 = vmatpush1.bf16.msra.mxu1 %v6108_v20  ;;  %v6834_v57 = vld [vmem:[#allocation8 + $0x34] ss:$12 sps:$4 sm:$0xff]   ;;  %v6839_v59 = vld [vmem:[#allocation8 + $0x30] ss:$12 sps:$4 sm:$0xff]   ;;  %v6848_v1 = vld [vmem:[#allocation8 + $0x18] ss:$12 sps:$4 sm:$0xff]  }
  0x4c   :  { %448 = vmatprep.subr.bf16.mxu0 %v6109_v21  ;;  %521 = vmatprep.subr.bf16.mxu1 %v6111_v22  ;;  %v6842_v61 = vld [vmem:[#allocation8 + $0x1c] ss:$12 sps:$4 sm:$0xff]   ;;  %v6167_v63 = vld [vmem:[#allocation6 + $0x40] ss:$24 sps:$4 sm:$0xff]   ;;  %v6175_v2 = vld [vmem:[#allocation6 + $0x14] ss:$24 sps:$4 sm:$0xff]  }
  0x4d   :  { %v6852_v3 = vld [vmem:[#allocation8 + $0x4] ss:$12 sps:$4 sm:$0xff]   ;;  %v6857_v5 = vld [vmem:[#allocation8] ss:$12 sps:$4 sm:$0xff]   ;;  %v6179_v7 = vld [vmem:[#allocation9 + $0xa8] ss:$12 sps:$4 sm:$0xff]  }
  0x4e   :  { %v6173_v4 = vld [vmem:[#allocation6 + $0x10] ss:$24 sps:$4 sm:$0xff]   ;;  %v6860_v6 = vld [vmem:[#allocation9 + $0xac] ss:$12 sps:$4 sm:$0xff]   ;;  %v6185_v10 = vld [vmem:[#allocation9 + $0x94] ss:$12 sps:$4 sm:$0xff]  }
  0x4f   :  { %449 = vmatpush1.bf16.msra.mxu0 %v6113_v23  ;;  %522 = vmatpush1.bf16.msra.mxu1 %v6114_v24  ;;  %v6182_v8 = vld [vmem:[#allocation8 + $0xb0] ss:$12 sps:$4 sm:$0xff]   ;;  %v6186_v12 = vld [vmem:[#allocation8 + $0x98] ss:$12 sps:$4 sm:$0xff]   ;;  %v6190_v15 = vld [vmem:[#allocation8 + $0x80] ss:$12 sps:$4 sm:$0xff]  }
  0x50   :  { %450 = vmatprep.subr.bf16.mxu0 %v6115_v25  ;;  %523 = vmatprep.subr.bf16.mxu1 %v6117_v26  ;;  %v6183_v11 = vld [vmem:[#allocation9 + $0x90] ss:$12 sps:$4 sm:$0xff]   ;;  %v6187_v14 = vld [vmem:[#allocation9 + $0x78] ss:$12 sps:$4 sm:$0xff]   ;;  %v6191_v18 = vld [vmem:[#allocation9 + $0x60] ss:$12 sps:$4 sm:$0xff]  }
  0x51   :  { %v6189_v13 = vld [vmem:[#allocation9 + $0x7c] ss:$12 sps:$4 sm:$0xff]   ;;  %v6193_v16 = vld [vmem:[#allocation9 + $0x64] ss:$12 sps:$4 sm:$0xff]   ;;  %v6197_v20 = vld [vmem:[#allocation9 + $0x4c] ss:$12 sps:$4 sm:$0xff]  }
  0x52   :  { %v6876_v17 = vld [vmem:[%s7846_s0] sm:$0xff]  ;;  %v6194_v19 = vld [vmem:[#allocation8 + $0x68] ss:$12 sps:$4 sm:$0xff]   ;;  %v6198_v25 = vld [vmem:[#allocation8 + $0x50] ss:$12 sps:$4 sm:$0xff]  }
  0x53   :  { %451 = vmatpush1.bf16.msra.mxu0 %v6119_v27  ;;  %524 = vmatpush1.bf16.msra.mxu1 %v6120_v28  ;;  %vm1252_vm0 = vcmp.gt.s32.totalorder %v6876_v17, 0  ;;  %vm1253_vm1 = vcmp.gt.s32.totalorder %v6876_v17, 7  ;;  %vm2356_vm2 = vcmp.gt.s32.totalorder %v6876_v17, 2  ;;  %vm2910_vm3 = vcmp.gt.s32.totalorder %v6876_v17, 3  ;;  %v6195_v24 = vld [vmem:[#allocation9 + $0x48] ss:$12 sps:$4 sm:$0xff]  }
  0x54   :  { %452 = vmatprep.subr.bf16.mxu0 %v6121_v29  ;;  %525 = vmatprep.subr.bf16.mxu1 %v6123_v30  ;;  %v1254_v21 = vsel %vm1252_vm0, 1, %v7855_v0  ;;  %v1260_v22 = vsel %vm1253_vm1, 1, %v7855_v0  ;;  %v2358_v23 = vsel %vm2356_vm2, 1, %v7855_v0  ;;  %v6201_v26 = vld [vmem:[#allocation9 + $0x34] ss:$12 sps:$4 sm:$0xff]   ;;  %vm1802_vm5 = vcmp.gt.s32.totalorder %v6876_v17, 1 }
  0x55   :  { %1256 = vperm.xlu0 %6077, %v1254_v21   ;;  %v6199_v27 = vld [vmem:[#allocation9 + $0x30] ss:$12 sps:$4 sm:$0xff]   ;;  %v6202_v28 = vld [vmem:[#allocation8 + $0x38] ss:$12 sps:$4 sm:$0xff]   ;;  %vm1803_vm6 = vcmp.gt.s32.totalorder %v6876_v17, 6  ;;  %vm2357_vm7 = vcmp.gt.s32.totalorder %v6876_v17, 5 }
  0x56   :  { %v6205_v29 = vld [vmem:[#allocation9 + $0x1c] ss:$12 sps:$4 sm:$0xff]   ;;  %v6203_v30 = vld [vmem:[#allocation9 + $0x18] ss:$12 sps:$4 sm:$0xff]   ;;  %vm2911_vm8 = vcmp.gt.s32.totalorder %v6876_v17, 4 }
  0x57   :  { %453 = vmatpush1.bf16.msra.mxu0 %v6125_v31  ;;  %526 = vmatpush1.bf16.msra.mxu1 %v6126_v32  ;;  %v6206_v31 = vld [vmem:[#allocation8 + $0x20] ss:$12 sps:$4 sm:$0xff]   ;;  %v6209_v32 = vld [vmem:[#allocation9 + $0x4] ss:$12 sps:$4 sm:$0xff]  }
  0x58   :  { %584 = vmatprep.subr.bf16.mxu0 %v6130_v33  ;;  %874 = vmatprep.subr.bf16.mxu1 %v6791_v34  ;;  %v2912_v33 = vsel %vm2910_vm3, 1, %v7855_v0 }
  0x59   :  { %1262 = vperm.xlu0 %6077, %v1260_v22  }
  0x5a   :  { %471 = vmatmul.mubr.bf16.vlgmr.msra.gmra.mxu0 %v6793_v35  ;;  %544 = vmatmul.mubr.bf16.vlgmr.msra.gmra.mxu1 %v6793_v35 }
  0x5b   :  { %585 = vmatpush1.bf16.msra.mxu0 %v6128_v36  ;;  %875 = vmatpush1.bf16.msra.mxu1 %v6795_v37  ;;  %v6210_v36 = vld [vmem:[#allocation8 + $0x8] ss:$12 sps:$4 sm:$0xff]  }
  0x5c   :  { %586 = vmatprep.subr.bf16.mxu0 %v6136_v38  ;;  %876 = vmatprep.subr.bf16.mxu1 %v6798_v39  ;;  %v6211_v38 = vld [vmem:[#allocation9 + $0xb0] ss:$12 sps:$4 sm:$0xff]  }
  0x5d   :  { %480 = vmatprep.mubr.bf16.mxu0 %v7855_v0  ;;  %553 = vmatprep.mubr.bf16.mxu1 %v7855_v0 }
  0x5e   :  { %2360 = vperm.xlu0 %6077, %v2358_v23  }
  0x5f   :  { %587 = vmatpush1.bf16.msra.mxu0 %v6134_v40  ;;  %877 = vmatpush1.bf16.msra.mxu1 %v6803_v41  ;;  %v6212_v40 = vld [vmem:[#allocation9 + $0x98] ss:$12 sps:$4 sm:$0xff]  }
  0x60   :  { %588 = vmatprep.subr.bf16.mxu0 %v6143_v42  ;;  %878 = vmatprep.subr.bf16.mxu1 %v6806_v43  ;;  %v6213_v42 = vld [vmem:[#allocation9 + $0x80] ss:$12 sps:$4 sm:$0xff]  }
  0x62   :  { %481 = vmatmul.mubr.bf16.gmra.mxu0 %v6810_v44  ;;  %554 = vmatmul.mubr.bf16.gmra.mxu1 %v6810_v44 }
  0x63   :  { %589 = vmatpush1.bf16.msra.mxu0 %v6141_v45  ;;  %879 = vmatpush1.bf16.msra.mxu1 %v6812_v46  ;;  %v6220_v45 = vld [vmem:[#allocation8 + $0x98] ss:$12 sps:$4 sm:$0xff]  }
  0x64   :  { %590 = vmatprep.subr.bf16.mxu0 %v6149_v47  ;;  %880 = vmatprep.subr.bf16.mxu1 %v6816_v48  ;;  %v6222_v47 = vld [vmem:[#allocation8 + $0x68] ss:$12 sps:$4 sm:$0xff]  }
  0x65   :  { %490 = vmatprep.mubr.bf16.mxu0 %v7855_v0  ;;  %563 = vmatprep.mubr.bf16.mxu1 %v7855_v0 }
  0x66   :  { %2914 = vperm.xlu0 %6077, %v2912_v33  }
  0x67   :  { %591 = vmatpush1.bf16.msra.mxu0 %v6147_v49  ;;  %881 = vmatpush1.bf16.msra.mxu1 %v6820_v50  ;;  %v6224_v49 = vld [vmem:[#allocation8 + $0x38] ss:$12 sps:$4 sm:$0xff]  }
  0x68   :  { %592 = vmatprep.subr.bf16.mxu0 %v6156_v51  ;;  %882 = vmatprep.subr.bf16.mxu1 %v6824_v52  ;;  %v6226_v51 = vld [vmem:[#allocation8 + $0x8] ss:$12 sps:$4 sm:$0xff]  }
  0x6a   :  { %491 = vmatmul.mubr.bf16.gmra.mxu0 %v6828_v53  ;;  %564 = vmatmul.mubr.bf16.gmra.mxu1 %v6828_v53 }
  0x6b   :  { %593 = vmatpush1.bf16.msra.mxu0 %v6154_v54  ;;  %883 = vmatpush1.bf16.msra.mxu1 %v6830_v55 }
  0x6c   :  { %594 = vmatprep.subr.bf16.mxu0 %v6162_v56  ;;  %884 = vmatprep.subr.bf16.mxu1 %v6834_v57  ;;  %v1804_v56 = vsel %vm1802_vm5, 1, %v7855_v0 }
  0x6d   :  { %500 = vmatprep.mubr.bf16.mxu0 %v7855_v0  ;;  %573 = vmatprep.mubr.bf16.mxu1 %v7855_v0 }
  0x6e   :  { %1806 = vperm.xlu1 %6078, %v1804_v56  }
  0x6f   :  { %595 = vmatpush1.bf16.msra.mxu0 %v6160_v58  ;;  %885 = vmatpush1.bf16.msra.mxu1 %v6839_v59 }
  0x70   :  { %596 = vmatprep.subr.bf16.mxu0 %v6169_v60  ;;  %886 = vmatprep.subr.bf16.mxu1 %v6842_v61 }
  0x72   :  { %501 = vmatmul.mubr.bf16.gmra.mxu0 %v6846_v62  ;;  %574 = vmatmul.mubr.bf16.gmra.mxu1 %v6846_v62 }
  0x73   :  { %597 = vmatpush1.bf16.msra.mxu0 %v6167_v63  ;;  %887 = vmatpush1.bf16.msra.mxu1 %v6848_v1 }
  0x74   :  { %598 = vmatprep.subr.bf16.mxu0 %v6175_v2  ;;  %888 = vmatprep.subr.bf16.mxu1 %v6852_v3 }
  0x75   :  { %616 = vmatprep.mubr.bf16.mxu0 %v7855_v0  ;;  %906 = vmatprep.mubr.bf16.mxu1 %v7855_v0 }
  0x77   :  { %599 = vmatpush1.bf16.msra.mxu0 %v6173_v4  ;;  %889 = vmatpush1.bf16.msra.mxu1 %v6857_v5 }
  0x78   :  { %5741 = vmatprep.subr.bf16.mxu0 %v7857_v9  ;;  %1115 = vmatprep.subr.bf16.mxu1 %v6860_v6 }
  0x7a   :  { %617 = vmatmul.mubr.bf16.vlgmr.msra.gmra.mxu0 %v6793_v35  ;;  %907 = vmatmul.mubr.bf16.vlgmr.msra.gmra.mxu1 %v7855_v0  ;;  %v6207_v35 = vld [vmem:[#allocation9] ss:$12 sps:$4 sm:$0xff]  }
  0x7b   :  { %5742 = vmatpush3.bf16.msra.mxu0 %v6182_v8  ;;  %1116 = vmatpush1.bf16.msra.mxu1 %v6179_v7 }
  0x7c   :  { %5743 = vmatprep.subr.bf16.mxu0 %v7857_v9  ;;  %1117 = vmatprep.subr.bf16.mxu1 %v6185_v10 }
  0x7d   :  { %626 = vmatprep.mubr.bf16.mxu0 %v7855_v0  ;;  %1147 = vmatprep.mubr.bf16.mxu1 %v7855_v0 }
  0x7f   :  { %5744 = vmatpush3.bf16.msra.mxu0 %v6186_v12  ;;  %1118 = vmatpush1.bf16.msra.mxu1 %v6183_v11 }
  0x80   :  { %5745 = vmatprep.subr.bf16.mxu0 %v7857_v9  ;;  %1119 = vmatprep.subr.bf16.mxu1 %v6189_v13 }
  0x82   :  { %627 = vmatmul.mubr.bf16.gmra.mxu0 %v6810_v44  ;;  %v6215_v44 = vld [vmem:[#allocation9 + $0x50] ss:$12 sps:$4 sm:$0xff]  }
  0x83   :  { %5746 = vmatpush3.bf16.msra.mxu0 %v6190_v15  ;;  %1120 = vmatpush1.bf16.msra.mxu1 %v6187_v14  ;;  %v2918_v15 = vsel %vm2911_vm8, 1, %v7855_v0 }
  0x84   :  { %5747 = vmatprep.subr.bf16.mxu0 %v7857_v9  ;;  %1121 = vmatprep.subr.bf16.mxu1 %v6193_v16 }
  0x85   :  { %636 = vmatprep.mubr.bf16.mxu0 %v7855_v0 }
  0x87   :  { %5748 = vmatpush3.bf16.msra.mxu0 %v6194_v19  ;;  %1122 = vmatpush1.bf16.msra.mxu1 %v6191_v18 }
  0x88   :  { %5749 = vmatprep.subr.bf16.mxu0 %v7857_v9  ;;  %1123 = vmatprep.subr.bf16.mxu1 %v6197_v20 }
  0x8a   :  { %637 = vmatmul.mubr.bf16.gmra.mxu0 %v6828_v53 }
  0x8b   :  { %5750 = vmatpush3.bf16.msra.mxu0 %v6198_v25  ;;  %1124 = vmatpush1.bf16.msra.mxu1 %v6195_v24 }
  0x8c   :  { %5751 = vmatprep.subr.bf16.mxu0 %v7857_v9  ;;  %1125 = vmatprep.subr.bf16.mxu1 %v6201_v26 }
  0x8d   :  { %646 = vmatprep.mubr.bf16.mxu0 %v7855_v0 }
  0x8f   :  { %5752 = vmatpush3.bf16.msra.mxu0 %v6202_v28  ;;  %1126 = vmatpush1.bf16.msra.mxu1 %v6199_v27 }
  0x90   :  { %5753 = vmatprep.subr.bf16.mxu0 %v7857_v9  ;;  %1127 = vmatprep.subr.bf16.mxu1 %v6205_v29 }
  0x92   :  { %647 = vmatmul.mubr.bf16.gmra.mxu0 %v6846_v62 }
  0x93   :  { %5754 = vmatpush3.bf16.msra.mxu0 %v6206_v31  ;;  %1128 = vmatpush1.bf16.msra.mxu1 %v6203_v30 }
  0x94   :  { %5755 = vmatprep.subr.bf16.mxu0 %v7857_v9  ;;  %1129 = vmatprep.subr.bf16.mxu1 %v6209_v32 }
  0x95   :  { %5757 = vmatprep.mubr.msk.bf16.mxu0 %vm6726_vm4, %v7857_v9 }
  0x97   :  { %5756 = vmatpush3.bf16.msra.mxu0 %v6210_v36  ;;  %1130 = vmatpush1.bf16.msra.mxu1 %v6207_v35 }
  0x98   :  { %5761 = vmatprep.subr.bf16.mxu0 %v7857_v9  ;;  %1436 = vmatprep.subr.bf16.mxu1 %v6791_v34  ;;  %v6214_v34 = vld [vmem:[#allocation9 + $0x68] ss:$12 sps:$4 sm:$0xff]  }
  0x9a   :  { %5758 = vmatmul.mubr.bf16.vlgmr.msra.gmra.mxu0 %v7855_v0  ;;  %1148 = vmatmul.mubr.bf16.vlgmr.msra.gmra.mxu1 %v7855_v0 }
  0x9b   :  { %5762 = vmatpush3.bf16.msra.mxu0 %v6211_v38  ;;  %5777 = vmatprep.mubr.msk.bf16.mxu0 %vm6726_vm4, %v7857_v9 }
  0x9c   :  { %5763 = vmatprep.subr.bf16.mxu0 %v7857_v9  ;;  %1437 = vmatpush1.bf16.msra.mxu1 %v6795_v37  ;;  %v6216_v37 = vld [vmem:[#allocation9 + $0x38] ss:$12 sps:$4 sm:$0xff]  }
  0x9d   :  { %1438 = vmatprep.subr.bf16.mxu1 %v6798_v39  ;;  %1468 = vmatprep.mubr.bf16.mxu1 %v7855_v0  ;;  %v6217_v39 = vld [vmem:[#allocation9 + $0x20] ss:$12 sps:$4 sm:$0xff]  }
  0x9f   :  { %5764 = vmatpush3.bf16.msra.mxu0 %v6212_v40 }
  0xa0   :  { %5765 = vmatprep.subr.bf16.mxu0 %v7857_v9  ;;  %1439 = vmatpush1.bf16.msra.mxu1 %v6803_v41  ;;  %v6218_v41 = vld [vmem:[#allocation9 + $0x8] ss:$12 sps:$4 sm:$0xff]  }
  0xa1   :  { %1440 = vmatprep.subr.bf16.mxu1 %v6806_v43  ;;  %v6219_v43 = vld [vmem:[#allocation8 + $0xb0] ss:$12 sps:$4 sm:$0xff]  }
  0xa3   :  { %5766 = vmatpush3.bf16.msra.mxu0 %v6213_v42 }
  0xa4   :  { %5767 = vmatprep.subr.bf16.mxu0 %v7857_v9  ;;  %1441 = vmatpush1.bf16.msra.mxu1 %v6812_v46  ;;  %v6221_v46 = vld [vmem:[#allocation8 + $0x80] ss:$12 sps:$4 sm:$0xff]  }
  0xa5   :  { %1442 = vmatprep.subr.bf16.mxu1 %v6816_v48  ;;  %v6223_v48 = vld [vmem:[#allocation8 + $0x50] ss:$12 sps:$4 sm:$0xff]  }
  0xa7   :  { %5768 = vmatpush3.bf16.msra.mxu0 %v6214_v34 }
  0xa8   :  { %5769 = vmatprep.subr.bf16.mxu0 %v7857_v9  ;;  %1443 = vmatpush1.bf16.msra.mxu1 %v6820_v50  ;;  %v6225_v50 = vld [vmem:[#allocation8 + $0x20] ss:$12 sps:$4 sm:$0xff]  }
  0xa9   :  { %1444 = vmatprep.subr.bf16.mxu1 %v6824_v52  ;;  %v144_v52 = vlaneseq }
  0xab   :  { %5770 = vmatpush3.bf16.msra.mxu0 %v6215_v44  ;;  %v6942_v53 = vshrl.u32 %v144_v52, 7 }
  0xac   :  { %5771 = vmatprep.subr.bf16.mxu0 %v7857_v9  ;;  %1445 = vmatpush1.bf16.msra.mxu1 %v6830_v55  ;;  %v6950_v55 = vld [vmem:[%s7849_s3] sm:$0x3f] }
  0xad   :  { %1446 = vmatprep.subr.bf16.mxu1 %v6834_v57  ;;  %v158_v54 = vsub.s32 3, %v6942_v53  ;;  %v1810_v57 = vsel %vm1803_vm6, 1, %v7855_v0  ;;  %v146_v58 = vsub.s32 0, %v6942_v53  ;;  %v150_v63 = vsub.s32 1, %v6942_v53 }
  0xae   :  { %1812 = vperm.xlu1 %6078, %v1810_v57   ;;  %v162_v56 = vsub.s32 4, %v6942_v53 }
  0xaf   :  { %5772 = vmatpush3.bf16.msra.mxu0 %v6216_v37  ;;  %v6957_v60 = vrot.slane %v6950_v55, %v158_v54  ;;  %v6969_v4 = vrot.slane %v6950_v55, %v146_v58  ;;  %v6979_v10 = vrot.slane %v6950_v55, %v150_v63 }
  0xb0   :  { %5773 = vmatprep.subr.bf16.mxu0 %v7857_v9  ;;  %1447 = vmatpush1.bf16.msra.mxu1 %v6839_v59  ;;  %v154_v59 = vsub.s32 2, %v6942_v53 }
  0xb1   :  { %1448 = vmatprep.subr.bf16.mxu1 %v6842_v61 }
  0xb3   :  { %5774 = vmatpush3.bf16.msra.mxu0 %v6217_v39 }
  0xb4   :  { %5775 = vmatprep.subr.bf16.mxu0 %v7857_v9  ;;  %1449 = vmatpush1.bf16.msra.mxu1 %v6848_v1 }
  0xb5   :  { %1450 = vmatprep.subr.bf16.mxu1 %v6852_v3  ;;  %v2364_v3 = vsel %vm2357_vm7, 1, %v7855_v0 }
  0xb6   :  { %2366 = vperm.xlu1 %6078, %v2364_v3  }
  0xb7   :  { %5776 = vmatpush3.bf16.msra.mxu0 %v6218_v41 }
  0xb8   :  { %5781 = vmatprep.subr.bf16.mxu0 %v7857_v9  ;;  %1451 = vmatpush1.bf16.msra.mxu1 %v6857_v5  ;;  %v6972_v5 = vrot.slane %v6950_v55, %v154_v59 }
  0xb9   :  { %1677 = vmatprep.subr.bf16.mxu1 %v6860_v6 }
  0xba   :  { %5778 = vmatmul.mubr.bf16.vlgmr.msra.gmra.mxu0 %v7855_v0  ;;  %2920 = vperm.xlu1 %6078, %v2918_v15  }
  0xbb   :  { %5797 = vmatprep.mubr.msk.bf16.mxu0 %vm6726_vm4, %v7857_v9  ;;  %5782 = vmatpush3.bf16.msra.mxu0 %v6219_v43 }
  0xbc   :  { %5783 = vmatprep.subr.bf16.mxu0 %v7857_v9 }
  0xbf   :  { %5784 = vmatpush3.bf16.msra.mxu0 %v6220_v45 }
  0xc0   :  { %5785 = vmatprep.subr.bf16.mxu0 %v7857_v9 }
  0xc3   :  { %5786 = vmatpush3.bf16.msra.mxu0 %v6221_v46 }
  0xc4   :  { %5787 = vmatprep.subr.bf16.mxu0 %v7857_v9 }
  0xc7   :  { %5788 = vmatpush3.bf16.msra.mxu0 %v6222_v47 }
  0xc8   :  { %5789 = vmatprep.subr.bf16.mxu0 %v7857_v9 }
  0xcb   :  { %5790 = vmatpush3.bf16.msra.mxu0 %v6223_v48 }
  0xcc   :  { %5791 = vmatprep.subr.bf16.mxu0 %v7857_v9 }
  0xcf   :  { %5792 = vmatpush3.bf16.msra.mxu0 %v6224_v49 }
  0xd0   :  { %5793 = vmatprep.subr.bf16.mxu0 %v7857_v9 }
  0xd3   :  { %5794 = vmatpush3.bf16.msra.mxu0 %v6225_v50 }
  0xd4   :  { %5795 = vmatprep.subr.bf16.mxu0 %v7857_v9 }
  0xd7   :  { %5796 = vmatpush3.bf16.msra.mxu0 %v6226_v51 }
  0xd8   :  { %5801 = vmatprep.subr.bf16.mxu0 %v7857_v9 }
 0x11a   :  { %v6960_v61 = vpop.f32.mrf.mxu0  ;;  %v6962_v62 = vpop.f32.mrf.mxu1 }
 0x11c   :  { %v6965_v1 = vpop.f32.mrf.mxu0  ;;  %v547_v2 = vpop.f32.mrf.mxu1 }
 0x11d   :  { %v6975_v6 = vadd.f32 %v547_v2, %v6957_v60  ;;  %v166_v2 = vsub.s32 5, %v6942_v53 }
 0x11e   :  { %v476_v7 = vpop.f32.mrf.mxu0  ;;  %v549_v8 = vpop.f32.mrf.mxu1 }
 0x11f   :  { %7865 = vst [vmem:[#allocation16_spill] sm:$0xff] %v6975_v6  ;;  %v6982_v11 = vadd.f32 %v476_v7, %v6969_v4  ;;  %v6985_v12 = vadd.f32 %v549_v8, %v6972_v5  ;;  %v7071_v53 = vrot.slane %v6950_v55, %v166_v2 }
 0x120   :  { %v478_v13 = vpop.f32.mrf.mxu0  ;;  %v551_v14 = vpop.f32.mrf.mxu1 }
 0x121   :  { %v6989_v16 = vadd.f32 %v478_v13, %v6979_v10  ;;  %v6992_v17 = vadd.f32 %v551_v14, %v6957_v60  ;;  %v7063_v14 = vrot.slane %v6950_v55, %v162_v56 }
 0x122   :  { %v482_v18 = vpop.f32.mrf.mxu0  ;;  %v555_v19 = vpop.f32.mrf.mxu1 }
 0x123   :  { %7866 = vst [vmem:[#allocation17_spill] sm:$0xff] %v6992_v17  ;;  %v6995_v20 = vadd.f32 %v482_v18, %v6969_v4  ;;  %v6998_v21 = vadd.f32 %v555_v19, %v6972_v5  ;;  %v473_v19 = vadd.f32 %v6960_v61, %v6969_v4 }
 0x124   :  { %v484_v22 = vpop.f32.mrf.mxu0  ;;  %v557_v23 = vpop.f32.mrf.mxu1 }
 0x125   :  { %v7001_v24 = vadd.f32 %v484_v22, %v6979_v10  ;;  %v7004_v25 = vadd.f32 %v557_v23, %v6957_v60 }
 0x126   :  { %v486_v26 = vpop.f32.mrf.mxu0  ;;  %v559_v27 = vpop.f32.mrf.mxu1 }
 0x127   :  { %7867 = vst [vmem:[#allocation18_spill] sm:$0xff] %v7004_v25  ;;  %v7007_v28 = vadd.f32 %v486_v26, %v6969_v4  ;;  %v7010_v29 = vadd.f32 %v559_v27, %v6972_v5 }
 0x128   :  { %v488_v30 = vpop.f32.mrf.mxu0  ;;  %v561_v31 = vpop.f32.mrf.mxu1 }
 0x129   :  { %7868 = vst [vmem:[#allocation19_spill] sm:$0xff] %v7010_v29  ;;  %v7013_v32 = vadd.f32 %v488_v30, %v6979_v10  ;;  %v7016_v33 = vadd.f32 %v561_v31, %v6957_v60 }
 0x12a   :  { %v492_v35 = vpop.f32.mrf.mxu0  ;;  %v565_v36 = vpop.f32.mrf.mxu1 }
 0x12b   :  { %7869 = vst [vmem:[#allocation20_spill] sm:$0xff] %v7016_v33  ;;  %v7019_v38 = vadd.f32 %v492_v35, %v6969_v4  ;;  %v7022_v40 = vadd.f32 %v565_v36, %v6972_v5 }
 0x12c   :  { %v494_v42 = vpop.f32.mrf.mxu0  ;;  %v567_v34 = vpop.f32.mrf.mxu1 }
 0x12d   :  { %7870 = vst [vmem:[#allocation21_spill] sm:$0xff] %v7019_v38  ;;  %7871 = vst [vmem:[#allocation22_spill] sm:$0xff] %v7022_v40  ;;  %v7025_v44 = vadd.f32 %v494_v42, %v6979_v10  ;;  %v7028_v37 = vadd.f32 %v567_v34, %v6957_v60 }
 0x12e   :  { %v496_v39 = vpop.f32.mrf.mxu0  ;;  %v569_v41 = vpop.f32.mrf.mxu1 }
 0x12f   :  { %7872 = vst [vmem:[#allocation23_spill] sm:$0xff] %v7025_v44  ;;  %7873 = vst [vmem:[#allocation24_spill] sm:$0xff] %v7028_v37  ;;  %v7031_v43 = vadd.f32 %v496_v39, %v6969_v4  ;;  %v7034_v45 = vadd.f32 %v569_v41, %v6972_v5 }
 0x130   :  { %v498_v46 = vpop.f32.mrf.mxu0  ;;  %v571_v47 = vpop.f32.mrf.mxu1 }
 0x131   :  { %7874 = vst [vmem:[#allocation25_spill] sm:$0xff] %v7031_v43  ;;  %7875 = vst [vmem:[#allocation26_spill] sm:$0xff] %v7034_v45  ;;  %v7037_v48 = vadd.f32 %v498_v46, %v6979_v10  ;;  %v7040_v49 = vadd.f32 %v571_v47, %v6957_v60 }
 0x132   :  { %v502_v50 = vpop.f32.mrf.mxu0  ;;  %v575_v51 = vpop.f32.mrf.mxu1 }
 0x133   :  { %7876 = vst [vmem:[#allocation27_spill] sm:$0xff] %v7037_v48  ;;  %v7043_v52 = vadd.f32 %v502_v50, %v6969_v4  ;;  %v7046_v54 = vadd.f32 %v575_v51, %v6972_v5 }
 0x134   :  { %v504_v57 = vpop.f32.mrf.mxu0  ;;  %v577_v58 = vpop.f32.mrf.mxu1 }
 0x135   :  { %7877 = vst [vmem:[#allocation28_spill] sm:$0xff] %v7043_v52  ;;  %7878 = vst [vmem:[#allocation29_spill] sm:$0xff] %v7046_v54  ;;  %v7050_v59 = vadd.f32 %v504_v57, %v6979_v10  ;;  %v7053_v63 = vadd.f32 %v577_v58, %v6957_v60 }
 0x136   :  { %v506_v3 = vpop.f32.mrf.mxu0  ;;  %v579_v7 = vpop.f32.mrf.mxu1 }
 0x137   :  { %7879 = vst [vmem:[#allocation30_spill] sm:$0xff] %v7050_v59  ;;  %v7057_v8 = vadd.f32 %v506_v3, %v6969_v4  ;;  %v7060_v13 = vadd.f32 %v579_v7, %v6972_v5  ;;  %v475_v4 = vadd.f32 %v6965_v1, %v6979_v10 }
 0x138   :  { %v508_v15 = vpop.f32.mrf.mxu0  ;;  %v581_v18 = vpop.f32.mrf.mxu1 }
 0x139   :  { %7880 = vst [vmem:[#allocation31_spill] sm:$0xff] %v7057_v8  ;;  %7881 = vst [vmem:[#allocation32_spill] sm:$0xff] %v7060_v13  ;;  %v7068_v22 = vadd.f32 %v508_v15, %v6979_v10 }
 0x13a   :  { %v618_v23 = vpop.f32.mrf.mxu0  ;;  %v908_v26 = vpop.f32.mrf.mxu1 }
 0x13b   :  { %7882 = vst [vmem:[#allocation33_spill] sm:$0xff] %v7068_v22  ;;  %v7074_v27 = vadd.f32 %v618_v23, %v7063_v14  ;;  %v1196_v30 = vadd.f32 %v908_v26, %v473_v19 }
 0x13c   :  { %v620_v31 = vpop.f32.mrf.mxu0  ;;  %v910_v35 = vpop.f32.mrf.mxu1 }
 0x13d   :  { %7883 = vst [vmem:[#allocation34_spill] sm:$0xff] %v7074_v27  ;;  %v5215_v36 = vmul.f32 -1.442695, %v1196_v30  ;;  %v7077_v42 = vadd.f32 %v620_v31, %v7071_v53  ;;  %v1203_v46 = vadd.f32 %v910_v35, %v475_v4 }
 0x13e   :  { %v622_v34 = vpop.f32.mrf.mxu0  ;;  %v912_v61 = vpop.f32.mrf.mxu1 }
 0x13f   :  { %7884 = vst [vmem:[#allocation35_spill] sm:$0xff] %v7077_v42  ;;  %6427 = vpow2.f32 %v5215_v36  ;;  %v7082_v55 = vadd.f32 %v622_v34, %v7063_v14  ;;  %v5216_v57 = vmul.f32 -1.442695, %v1203_v46 }
 0x140   :  { %v624_v39 = vpop.f32.mrf.mxu0  ;;  %v913_v41 = vpop.f32.mrf.mxu1 }
 0x141   :  { %7885 = vst [vmem:[#allocation36_spill] sm:$0xff] %v7082_v55  ;;  %v7085_v47 = vadd.f32 %v624_v39, %v7071_v53  ;;  %6429 = vpow2.f32 %v5216_v57  ;;  %v7122_v57 = vld [vmem:[%s7851_s5] ss:$0 sm:$0xff] }
 0x142   :  { %v628_v50 = vpop.f32.mrf.mxu0 }
 0x143   :  { %7886 = vst [vmem:[#allocation37_spill] sm:$0xff] %v7085_v47  ;;  %v7088_v51 = vadd.f32 %v628_v50, %v7063_v14 }
 0x144   :  { %v630_v56 = vpop.f32.mrf.mxu0 }
 0x145   :  { %7887 = vst [vmem:[#allocation38_spill] sm:$0xff] %v7088_v51  ;;  %v7091_v58 = vadd.f32 %v630_v56, %v7071_v53 }
 0x146   :  { %v632_v1 = vpop.f32.mrf.mxu0 }
 0x147   :  { %7888 = vst [vmem:[#allocation39_spill] sm:$0xff] %v7091_v58  ;;  %v7094_v10 = vadd.f32 %v632_v1, %v7063_v14  ;;  %v582_v1 = vadd.f32 %v581_v18, %v6957_v60 }
 0x148   :  { %v634_v2 = vpop.f32.mrf.mxu0 }
 0x149   :  { %7889 = vst [vmem:[#allocation40_spill] sm:$0xff] %v7094_v10  ;;  %v7097_v3 = vadd.f32 %v634_v2, %v7071_v53 }
 0x14a   :  { %v638_v7 = vpop.f32.mrf.mxu0 }
 0x14b   :  { %7890 = vst [vmem:[#allocation41_spill] sm:$0xff] %v7097_v3  ;;  %v7100_v15 = vadd.f32 %v638_v7, %v7063_v14 }
 0x14c   :  { %v6428_v19 = vpop.eup %6427  ;;  %v640_v23 = vpop.f32.mrf.mxu0 }
 0x14d   :  { %7891 = vst [vmem:[#allocation42_spill] sm:$0xff] %v7100_v15  ;;  %v1200_v26 = vadd.f32 1.0, %v6428_v19  ;;  %v7103_v30 = vadd.f32 %v640_v23, %v7071_v53 }
 0x14e   :  { %v642_v31 = vpop.f32.mrf.mxu0  ;;  %v6430_v46 = vpop.eup %6429 }
 0x14f   :  { %7892 = vst [vmem:[#allocation43_spill] sm:$0xff] %v7103_v30  ;;  %6431 = vrcp.f32 %v1200_v26  ;;  %v7106_v35 = vadd.f32 %v642_v31, %v7063_v14  ;;  %v1207_v2 = vadd.f32 1.0, %v6430_v46 }
 0x150   :  { %v644_v36 = vpop.f32.mrf.mxu0 }
 0x151   :  { %v7109_v34 = vadd.f32 %v644_v36, %v7071_v53  ;;  %6433 = vrcp.f32 %v1207_v2  ;;  %v6228_v2 = vld [vmem:[#allocation9 + $0x98] ss:$12 sps:$4 sm:$0xff]  }
 0x152   :  { %v648_v61 = vpop.f32.mrf.mxu0 }
 0x153   :  { %v7112_v4 = vadd.f32 %v648_v61, %v7063_v14 }
 0x154   :  { %v650_v39 = vpop.f32.mrf.mxu0 }
 0x155   :  { %v7115_v41 = vadd.f32 %v650_v39, %v7071_v53  ;;  %v546_v39 = vadd.f32 %v6962_v62, %v6972_v5  ;;  %v7129_v5 = vpop.permute.xlu0 %1256 }
 0x156   :  { %v652_v50 = vpop.f32.mrf.mxu0  ;;  %7893 = vst [vmem:[#allocation44_spill] sm:$0xff] %v7129_v5  ;;  %vm1258_vm9 = vcmp.eq.s32.totalorder %v7129_v5, 1 }
 0x157   :  { %v653_v13 = vadd.f32 %v652_v50, %v7063_v14  ;;  %vm5245_vm10 = vmpackc.low %vm1258_vm9, %vm1258_vm9 }
 0x158   :  { %v7117_v56 = vpop.f32.mrf.mxu0 }
 0x15a   :  { %v949_v7 = vpop.f32.mrf.mxu0  ;;  %v1149_v19 = vpop.f32.mrf.mxu1 }
 0x15b   :  { %v1216_v23 = vadd.f32 %v7122_v57, %v949_v7  ;;  %v1224_v26 = vadd.f32 %v1149_v19, %v582_v1 }
 0x15c   :  { %v6432_v31 = vpop.eup %6431  ;;  %v5759_v36 = vpop.f32.mrf.mxu0 }
 0x15d   :  { %v1151_v61 = vpop.f32.mrf.mxu1  ;;  %v1217_v0 = vmul.f32 %v6432_v31, %v1216_v23  ;;  %v5218_v9 = vmul.f32 -1.442695, %v1224_v26  ;;  %v6588_v23 = vld [vmem:[#allocation9 + $0x94] ss:$12 sps:$4 sm:$0xff]   ;;  %v7894_v26 = vmov 0.0  }
 0x15e   :  { %v952_v42 = vpop.f32.mrf.mxu0  ;;  %v1231_v7 = vadd.f32 %v1151_v61, %v653_v13  ;;  %v6434_v19 = vpop.eup %6433  ;;  %v7145_v31 = vld [vmem:[%s7853_s7] ss:$0 sm:$0xff]  ;;  %v7895_v61 = vmov 0  }
 0x15f   :  { %v1153_v27 = vpop.f32.mrf.mxu1  ;;  %v1218_v60 = vadd.f32 %v1217_v0, %v546_v39  ;;  %6435 = vpow2.f32 %v5218_v9  ;;  %v1220_v22 = vsub.f32 1.0, %v6434_v19  ;;  %v6227_v9 = vld [vmem:[#allocation9 + $0xb0] ss:$12 sps:$4 sm:$0xff]  }
 0x160   :  { %v5760_v18 = vpop.f32.mrf.mxu0  ;;  %v5219_v1 = vmul.f32 -1.442695, %v1231_v7  ;;  %v1222_v27 = vmul.f32 0.0, %v6434_v19 }
 0x161   :  { %v1154_v46 = vpop.f32.mrf.mxu1  ;;  %6437 = vtanh.f32 %v1218_v60  ;;  %v6589_v18 = vld [vmem:[#allocation9 + $0x90] ss:$12 sps:$4 sm:$0xff]  }
 0x162   :  { %6439 = vpow2.f32 %v5219_v1  ;;  %v6229_v46 = vld [vmem:[#allocation9 + $0x80] ss:$12 sps:$4 sm:$0xff]   ;;  %v6590_v1 = vld [vmem:[#allocation9 + $0x7c] ss:$12 sps:$4 sm:$0xff]  }
 0x16c   :  { %v6436_v36 = vpop.eup %6435 }
 0x16d   :  { %v1228_v6 = vadd.f32 1.0, %v6436_v36 }
 0x16e   :  { %v6438_v62 = vpop.eup %6437 }
 0x16f   :  { %6441 = vrcp.f32 %v1228_v6  ;;  %v1221_v42 = vmul.f32 %v6438_v62, %v1220_v22  ;;  %v6440_v6 = vpop.eup %6439  ;;  %v6587_v22 = vld [vmem:[#allocation9 + $0xa8] ss:$12 sps:$4 sm:$0xff]   ;;  %v655_v62 = vadd.f32 %v7117_v56, %v7071_v53  ;;  %v6232_v56 = vld [vmem:[#allocation9 + $0x38] ss:$12 sps:$4 sm:$0xff]  }
 0x170   :  { %v1235_v39 = vadd.f32 1.0, %v6440_v6  ;;  %v6595_v53 = vld [vmem:[#allocation9 + $0x48] ss:$12 sps:$4 sm:$0xff]  }
 0x171   :  { %v1223_v0 = vadd.f32 %v1222_v27, %v1221_v42 }
 0x172   :  { %6443 = vrcp.f32 %v1235_v39  ;;  %v6596_v39 = vld [vmem:[#allocation9 + $0x34] ss:$12 sps:$4 sm:$0xff]  }
 0x173   :  { %v7137_v13 = vsel %vm1258_vm9, %v1223_v0, 0.0  ;;  %v5246_v14 = vpack.c.bf16 %v1223_v0, %v1223_v0  ;;  %v6591_v0 = vld [vmem:[#allocation9 + $0x78] ss:$12 sps:$4 sm:$0xff]  }
 0x174   :  { %v1266_v50 = vpack.c.bf16 %v7137_v13, %v7137_v13 }
 0x175   :  { %5247 = vmatmul.mubr.msk.bf16.vlgmr.msra.gmra.mxu1 %vm5245_vm10, %v5246_v14  ;;  %5798 = vmatmul.mubr.msk.bf16.vlgmr.msra.gmra.mxu0 %vm5245_vm10, %v5246_v14 }
 0x176   :  { %1267 = vst [vmem:[#allocation11] sm:$0xf] %v1266_v50  ;;  %1678 = vmatpush1.bf16.msra.mxu1 %v6587_v22  ;;  %5802 = vmatpush3.bf16.msra.mxu0 %v6227_v9  ;;  %v6230_v9 = vld [vmem:[#allocation9 + $0x68] ss:$12 sps:$4 sm:$0xff]   ;;  %v6592_v50 = vld [vmem:[#allocation9 + $0x64] ss:$12 sps:$4 sm:$0xff]  }
 0x177   :  { %1679 = vmatprep.subr.bf16.mxu1 %v6588_v23  ;;  %5803 = vmatprep.subr.bf16.mxu0 %v7894_v26  ;;  %v6593_v22 = vld [vmem:[#allocation9 + $0x60] ss:$12 sps:$4 sm:$0xff]  }
 0x178   :  { %1709 = vmatprep.mubr.bf16.mxu1 %v7895_v61  ;;  %5817 = vmatprep.mubr.msk.bf16.mxu0 %vm6726_vm4, %v7894_v26  ;;  %v6594_v23 = vld [vmem:[#allocation9 + $0x4c] ss:$12 sps:$4 sm:$0xff]  }
 0x17a   :  { %v1190_v60 = vpop.f32.mrf.mxu0  ;;  %1680 = vmatpush1.bf16.msra.mxu1 %v6589_v18  ;;  %5804 = vmatpush3.bf16.msra.mxu0 %v6228_v2  ;;  %v6231_v2 = vld [vmem:[#allocation9 + $0x50] ss:$12 sps:$4 sm:$0xff]  }
 0x17b   :  { %v1244_v7 = vadd.f32 %v7145_v31, %v1190_v60  ;;  %1681 = vmatprep.subr.bf16.mxu1 %v6590_v1  ;;  %5805 = vmatprep.subr.bf16.mxu0 %v7894_v26  ;;  %v6597_v18 = vld [vmem:[#allocation9 + $0x30] ss:$12 sps:$4 sm:$0xff]  }
 0x17c   :  { %v6442_v19 = vpop.eup %6441  ;;  %v5779_v36 = vpop.f32.mrf.mxu0 }
 0x17d   :  { %v1245_v42 = vmul.f32 %v6442_v19, %v1244_v7  ;;  %v6598_v7 = vld [vmem:[#allocation9 + $0x1c] ss:$12 sps:$4 sm:$0xff]   ;;  %v6599_v36 = vld [vmem:[#allocation9 + $0x18] ss:$12 sps:$4 sm:$0xff]  }
 0x17e   :  { %v1193_v27 = vpop.f32.mrf.mxu0  ;;  %1682 = vmatpush1.bf16.msra.mxu1 %v6591_v0  ;;  %5806 = vmatpush3.bf16.msra.mxu0 %v6229_v46  ;;  %v6233_v46 = vld [vmem:[#allocation9 + $0x20] ss:$12 sps:$4 sm:$0xff]  }
 0x17f   :  { %v1246_v14 = vadd.f32 %v1245_v42, %v655_v62  ;;  %1683 = vmatprep.subr.bf16.mxu1 %v6592_v50  ;;  %5807 = vmatprep.subr.bf16.mxu0 %v7894_v26  ;;  %v6444_v60 = vpop.eup %6443  ;;  %v6234_v62 = vld [vmem:[#allocation9 + $0x8] ss:$12 sps:$4 sm:$0xff]   ;;  %v6600_v42 = vld [vmem:[#allocation9 + $0x4] ss:$12 sps:$4 sm:$0xff]   ;;  %v6601_v50 = vld [vmem:[#allocation9] ss:$12 sps:$4 sm:$0xff]  }
 0x180   :  { %v5780_v6 = vpop.f32.mrf.mxu0  ;;  %v1248_v1 = vsub.f32 1.0, %v6444_v60  ;;  %v1250_v0 = vmul.f32 0.0, %v6444_v60  ;;  %v7184_v60 = vld [vmem:[#allocation8 + $0x90] ss:$12 sps:$4 sm:$0xff]  }
 0x181   :  { %6445 = vtanh.f32 %v1246_v14 }
 0x182   :  { %1684 = vmatpush1.bf16.msra.mxu1 %v6593_v22  ;;  %5808 = vmatpush3.bf16.msra.mxu0 %v6230_v9  ;;  %v7159_v9 = vpop.permute.xlu0 %1262 }
 0x183   :  { %1685 = vmatprep.subr.bf16.mxu1 %v6594_v23  ;;  %5809 = vmatprep.subr.bf16.mxu0 %v7894_v26  ;;  %7896 = vst [vmem:[#allocation45_spill] sm:$0xff] %v7159_v9  ;;  %vm1264_vm11 = vcmp.eq.s32.totalorder %v7159_v9, 1  ;;  %v7175_v23 = vld [vmem:[#allocation8 + $0xac] ss:$12 sps:$4 sm:$0xff]  }
 0x184   :  { %vm5275_vm12 = vmpackc.low %vm1264_vm11, %vm1264_vm11 }
 0x186   :  { %1686 = vmatpush1.bf16.msra.mxu1 %v6595_v53  ;;  %5810 = vmatpush3.bf16.msra.mxu0 %v6231_v2  ;;  %v7177_v53 = vld [vmem:[#allocation8 + $0xa8] ss:$12 sps:$4 sm:$0xff]  }
 0x187   :  { %1687 = vmatprep.subr.bf16.mxu1 %v6596_v39  ;;  %5811 = vmatprep.subr.bf16.mxu0 %v7894_v26  ;;  %v7181_v39 = vld [vmem:[#allocation8 + $0x94] ss:$12 sps:$4 sm:$0xff]  }
 0x18a   :  { %1688 = vmatpush1.bf16.msra.mxu1 %v6597_v18  ;;  %5812 = vmatpush3.bf16.msra.mxu0 %v6232_v56  ;;  %v6238_v56 = vld [vmem:[#allocation8 + $0xb0] ss:$12 sps:$4 sm:$0xff]   ;;  %v6242_v18 = vld [vmem:[#allocation8 + $0x98] ss:$12 sps:$4 sm:$0xff]  }
 0x18b   :  { %1689 = vmatprep.subr.bf16.mxu1 %v6598_v7  ;;  %5813 = vmatprep.subr.bf16.mxu0 %v7894_v26  ;;  %v7191_v7 = vld [vmem:[#allocation8 + $0x78] ss:$12 sps:$4 sm:$0xff]  }
 0x18e   :  { %v6446_v19 = vpop.eup %6445  ;;  %1690 = vmatpush1.bf16.msra.mxu1 %v6599_v36  ;;  %5814 = vmatpush3.bf16.msra.mxu0 %v6233_v46  ;;  %v7188_v46 = vld [vmem:[#allocation8 + $0x7c] ss:$12 sps:$4 sm:$0xff]   ;;  %v7198_v36 = vld [vmem:[#allocation8 + $0x60] ss:$12 sps:$4 sm:$0xff]  }
 0x18f   :  { %1691 = vmatprep.subr.bf16.mxu1 %v6600_v42  ;;  %5815 = vmatprep.subr.bf16.mxu0 %v7894_v26  ;;  %v1249_v27 = vmul.f32 %v6446_v19, %v1248_v1  ;;  %v6246_v1 = vld [vmem:[#allocation8 + $0x80] ss:$12 sps:$4 sm:$0xff]   ;;  %v7195_v19 = vld [vmem:[#allocation8 + $0x64] ss:$12 sps:$4 sm:$0xff]  }
 0x190   :  { %v7202_v42 = vld [vmem:[#allocation8 + $0x4c] ss:$12 sps:$4 sm:$0xff]  }
 0x191   :  { %v1251_v14 = vadd.f32 %v1250_v0, %v1249_v27  ;;  %v7205_v27 = vld [vmem:[#allocation8 + $0x48] ss:$12 sps:$4 sm:$0xff]   ;;  %v6254_v0 = vld [vmem:[#allocation8 + $0x50] ss:$12 sps:$4 sm:$0xff]  }
 0x192   :  { %1692 = vmatpush1.bf16.msra.mxu1 %v6601_v50  ;;  %5816 = vmatpush3.bf16.msra.mxu0 %v6234_v62  ;;  %v6250_v62 = vld [vmem:[#allocation8 + $0x68] ss:$12 sps:$4 sm:$0xff]   ;;  %v7212_v50 = vld [vmem:[#allocation8 + $0x30] ss:$12 sps:$4 sm:$0xff]  }
 0x193   :  { %v5276_v6 = vpack.c.bf16 %v1251_v14, %v1251_v14  ;;  %5821 = vmatprep.subr.bf16.mxu0 %v7894_v26  ;;  %v7165_v22 = vsel %vm1264_vm11, %v1251_v14, 0.0  ;;  %1989 = vmatprep.subr.bf16.mxu1 %v7175_v23  ;;  %v7209_v14 = vld [vmem:[#allocation8 + $0x34] ss:$12 sps:$4 sm:$0xff]  }
 0x194   :  { %v1268_v2 = vpack.c.bf16 %v7165_v22, %v7165_v22 }
 0x195   :  { %5277 = vmatmul.mubr.msk.bf16.vlgmr.msra.gmra.mxu1 %vm5275_vm12, %v5276_v6  ;;  %5818 = vmatmul.mubr.msk.bf16.vlgmr.msra.gmra.mxu0 %vm5275_vm12, %v5276_v6  ;;  %v6258_v6 = vld [vmem:[#allocation8 + $0x38] ss:$12 sps:$4 sm:$0xff]  }
 0x196   :  { %1269 = vst [vmem:[#allocation11 + $0x3c] sm:$0xf] %v1268_v2  ;;  %2021 = vmatprep.mubr.bf16.mxu1 %v7895_v61  ;;  %5837 = vmatprep.mubr.msk.bf16.mxu0 %vm6726_vm4, %v7894_v26  ;;  %v7216_v2 = vld [vmem:[#allocation8 + $0x1c] ss:$12 sps:$4 sm:$0xff]  }
 0x197   :  { %1990 = vmatpush1.bf16.msra.mxu1 %v7177_v53  ;;  %5822 = vmatpush3.bf16.msra.mxu0 %v6238_v56  ;;  %v7219_v56 = vld [vmem:[#allocation8 + $0x18] ss:$12 sps:$4 sm:$0xff]  }
 0x198   :  { %5823 = vmatprep.subr.bf16.mxu0 %v7894_v26  ;;  %1991 = vmatprep.subr.bf16.mxu1 %v7181_v39 }
 0x19b   :  { %1992 = vmatpush1.bf16.msra.mxu1 %v7184_v60  ;;  %5824 = vmatpush3.bf16.msra.mxu0 %v6242_v18  ;;  %v6262_v18 = vld [vmem:[#allocation8 + $0x20] ss:$12 sps:$4 sm:$0xff]  }
 0x19c   :  { %5825 = vmatprep.subr.bf16.mxu0 %v7894_v26  ;;  %1993 = vmatprep.subr.bf16.mxu1 %v7188_v46 }
 0x19f   :  { %1994 = vmatpush1.bf16.msra.mxu1 %v7191_v7  ;;  %5826 = vmatpush3.bf16.msra.mxu0 %v6246_v1  ;;  %v7223_v1 = vld [vmem:[#allocation8 + $0x4] ss:$12 sps:$4 sm:$0xff]  }
 0x1a0   :  { %5827 = vmatprep.subr.bf16.mxu0 %v7894_v26  ;;  %1995 = vmatprep.subr.bf16.mxu1 %v7195_v19 }
 0x1a3   :  { %1996 = vmatpush1.bf16.msra.mxu1 %v7198_v36  ;;  %5828 = vmatpush3.bf16.msra.mxu0 %v6250_v62  ;;  %v7226_v62 = vld [vmem:[#allocation8] ss:$12 sps:$4 sm:$0xff]  }
 0x1a4   :  { %5829 = vmatprep.subr.bf16.mxu0 %v7894_v26  ;;  %1997 = vmatprep.subr.bf16.mxu1 %v7202_v42 }
 0x1a7   :  { %1998 = vmatpush1.bf16.msra.mxu1 %v7205_v27  ;;  %5830 = vmatpush3.bf16.msra.mxu0 %v6254_v0  ;;  %v6266_v0 = vld [vmem:[#allocation8 + $0x8] ss:$12 sps:$4 sm:$0xff]  }
 0x1a8   :  { %5831 = vmatprep.subr.bf16.mxu0 %v7894_v26  ;;  %1999 = vmatprep.subr.bf16.mxu1 %v7209_v14 }
 0x1ab   :  { %2000 = vmatpush1.bf16.msra.mxu1 %v7212_v50  ;;  %5832 = vmatpush3.bf16.msra.mxu0 %v6258_v6  ;;  %v7230_v6 = vld [vmem:[#allocation9 + $0xac] ss:$12 sps:$4 sm:$0xff]  }
 0x1ac   :  { %5833 = vmatprep.subr.bf16.mxu0 %v7894_v26  ;;  %2001 = vmatprep.subr.bf16.mxu1 %v7216_v2 }
 0x1af   :  { %2002 = vmatpush1.bf16.msra.mxu1 %v7219_v56  ;;  %5834 = vmatpush3.bf16.msra.mxu0 %v6262_v18 }
 0x1b0   :  { %5835 = vmatprep.subr.bf16.mxu0 %v7894_v26  ;;  %2003 = vmatprep.subr.bf16.mxu1 %v7223_v1 }
 0x1b3   :  { %2004 = vmatpush1.bf16.msra.mxu1 %v7226_v62  ;;  %5836 = vmatpush3.bf16.msra.mxu0 %v6266_v0 }
 0x1b4   :  { %5841 = vmatprep.subr.bf16.mxu0 %v7894_v26  ;;  %2231 = vmatprep.subr.bf16.mxu1 %v7230_v6 }
 0x235   :  { %v1470_v5 = vpop.f32.mrf.mxu1  ;;  %v1511_v18 = vpop.f32.mrf.mxu0 }
 0x236   :  { %v1758_v9 = vadd.f32 %v1470_v5, %v6982_v11  ;;  %v1772_v11 = vadd.f32 %v7122_v57, %v1511_v18 }
 0x237   :  { %v1472_v8 = vpop.f32.mrf.mxu1  ;;  %v5799_v47 = vpop.f32.mrf.mxu0 }
 0x238   :  { %v5281_v55 = vmul.f32 -1.442695, %v1758_v9  ;;  %v1765_v0 = vadd.f32 %v1472_v8, %v6989_v16 }
 0x239   :  { %v1474_v54 = vpop.f32.mrf.mxu1  ;;  %v1514_v17 = vpop.f32.mrf.mxu0 }
 0x23a   :  { %6447 = vpow2.f32 %v5281_v55  ;;  %v5282_v58 = vmul.f32 -1.442695, %v1765_v0 }
 0x23b   :  { %v1475_v59 = vpop.f32.mrf.mxu1  ;;  %v5800_v52 = vpop.f32.mrf.mxu0 }
 0x23c   :  { %6449 = vpow2.f32 %v5282_v58 }
 0x247   :  { %v6448_v51 = vpop.eup %6447 }
 0x248   :  { %v1762_v45 = vadd.f32 1.0, %v6448_v51 }
 0x249   :  { %v6450_v25 = vpop.eup %6449 }
 0x24a   :  { %6451 = vrcp.f32 %v1762_v45  ;;  %v1769_v48 = vadd.f32 1.0, %v6450_v25 }
 0x24c   :  { %6453 = vrcp.f32 %v1769_v48  ;;  %v7240_v48 = vpop.permute.xlu1 %1806 }
 0x24d   :  { %7897 = vst [vmem:[#allocation46_spill] sm:$0xff] %v7240_v48  ;;  %vm1808_vm13 = vcmp.eq.s32.totalorder %v7240_v48, 1 }
 0x255   :  { %v1711_v43 = vpop.f32.mrf.mxu1  ;;  %v1752_v3 = vpop.f32.mrf.mxu0 }
 0x256   :  { %v1780_v47 = vadd.f32 %v1711_v43, %v7053_v63 }
 0x257   :  { %v6452_v54 = vpop.eup %6451  ;;  %v1713_v17 = vpop.f32.mrf.mxu1 }
 0x258   :  { %v5819_v55 = vpop.f32.mrf.mxu0  ;;  %v1773_v59 = vmul.f32 %v6452_v54, %v1772_v11  ;;  %v5283_v52 = vmul.f32 -1.442695, %v1780_v47  ;;  %v1787_v25 = vadd.f32 %v1713_v17, %v7112_v4  ;;  %v7251_v17 = vld [vmem:[#allocation9 + $0xa8] ss:$12 sps:$4 sm:$0xff]  }
 0x259   :  { %v1715_v16 = vpop.f32.mrf.mxu1  ;;  %v6454_v9 = vpop.eup %6453  ;;  %v6270_v55 = vld [vmem:[#allocation9 + $0xb0] ss:$12 sps:$4 sm:$0xff]  }
 0x25a   :  { %v1755_v8 = vpop.f32.mrf.mxu0  ;;  %v1774_v58 = vadd.f32 %v1773_v59, %v6985_v12  ;;  %6455 = vpow2.f32 %v5283_v52  ;;  %v5284_v5 = vmul.f32 -1.442695, %v1787_v25  ;;  %v1776_v18 = vsub.f32 1.0, %v6454_v9  ;;  %v7255_v16 = vld [vmem:[#allocation9 + $0x94] ss:$12 sps:$4 sm:$0xff]  }
 0x25b   :  { %v1716_v45 = vpop.f32.mrf.mxu1  ;;  %v1778_v47 = vmul.f32 %v6454_v9, %v7137_v13  ;;  %v1794_v25 = vadd.f32 %v7145_v31, %v1752_v3  ;;  %v6278_v9 = vld [vmem:[#allocation9 + $0x80] ss:$12 sps:$4 sm:$0xff]  }
 0x25c   :  { %v5820_v51 = vpop.f32.mrf.mxu0  ;;  %6457 = vtanh.f32 %v1774_v58  ;;  %v6274_v58 = vld [vmem:[#allocation9 + $0x98] ss:$12 sps:$4 sm:$0xff]   ;;  %v7262_v45 = vld [vmem:[#allocation9 + $0x7c] ss:$12 sps:$4 sm:$0xff]   ;;  %v7277_v3 = vld [vmem:[#allocation9 + $0x60] ss:$12 sps:$4 sm:$0xff]  }
 0x25d   :  { %6459 = vpow2.f32 %v5284_v5  ;;  %v7269_v5 = vld [vmem:[#allocation9 + $0x78] ss:$12 sps:$4 sm:$0xff]  }
 0x267   :  { %v6456_v43 = vpop.eup %6455 }
 0x268   :  { %v1784_v63 = vadd.f32 1.0, %v6456_v43 }
 0x269   :  { %v6458_v0 = vpop.eup %6457 }
 0x26a   :  { %6461 = vrcp.f32 %v1784_v63  ;;  %v1777_v11 = vmul.f32 %v6458_v0, %v1776_v18  ;;  %v6460_v8 = vpop.eup %6459  ;;  %v7273_v63 = vld [vmem:[#allocation9 + $0x64] ss:$12 sps:$4 sm:$0xff]  }
 0x26b   :  { %v1791_v51 = vadd.f32 1.0, %v6460_v8 }
 0x26c   :  { %v1779_v12 = vadd.f32 %v1778_v47, %v1777_v11  ;;  %v6282_v11 = vld [vmem:[#allocation9 + $0x68] ss:$12 sps:$4 sm:$0xff]   ;;  %v7281_v47 = vld [vmem:[#allocation9 + $0x4c] ss:$12 sps:$4 sm:$0xff]  }
 0x26d   :  { %6463 = vrcp.f32 %v1791_v51  ;;  %v6294_v51 = vld [vmem:[#allocation9 + $0x20] ss:$12 sps:$4 sm:$0xff]  }
 0x26e   :  { %v7247_v4 = vsel %vm1808_vm13, %v1779_v12, %v7137_v13  ;;  %v1816_v54 = vsel %vm1808_vm13, %v1779_v12, 0.0  ;;  %v7258_v13 = vld [vmem:[#allocation9 + $0x90] ss:$12 sps:$4 sm:$0xff]   ;;  %v7284_v12 = vld [vmem:[#allocation9 + $0x48] ss:$12 sps:$4 sm:$0xff]  }
 0x26f   :  { %v1817_v59 = vpack.c.bf16 %v1816_v54, %v1816_v54  ;;  %v1828_v52 = vpack.c.bf16 %v7247_v4, %v7247_v4  ;;  %v6286_v54 = vld [vmem:[#allocation9 + $0x50] ss:$12 sps:$4 sm:$0xff]  }
 0x271   :  { %1818 = vst [vmem:[#allocation11 + $0x8] sm:$0xf] %v1817_v59  ;;  %2022 = vmatmul.mubr.bf16.vlgmr.msra.gmra.mxu1 %v1828_v52  ;;  %5838 = vmatmul.mubr.bf16.vlgmr.msra.gmra.mxu0 %v1828_v52  ;;  %v6290_v59 = vld [vmem:[#allocation9 + $0x38] ss:$12 sps:$4 sm:$0xff]   ;;  %v7295_v52 = vld [vmem:[#allocation9 + $0x1c] ss:$12 sps:$4 sm:$0xff]  }
 0x272   :  { %2232 = vmatpush1.bf16.msra.mxu1 %v7251_v17  ;;  %5842 = vmatpush3.bf16.msra.mxu0 %v6270_v55  ;;  %v7291_v55 = vld [vmem:[#allocation9 + $0x30] ss:$12 sps:$4 sm:$0xff]  }
 0x273   :  { %2233 = vmatprep.subr.bf16.mxu1 %v7255_v16  ;;  %5843 = vmatprep.subr.bf16.mxu0 %v7894_v26 }
 0x274   :  { %2263 = vmatprep.mubr.bf16.mxu1 %v7895_v61  ;;  %5857 = vmatprep.mubr.msk.bf16.mxu0 %vm6726_vm4, %v7894_v26 }
 0x276   :  { %2234 = vmatpush1.bf16.msra.mxu1 %v7258_v13  ;;  %5844 = vmatpush3.bf16.msra.mxu0 %v6274_v58  ;;  %v7298_v58 = vld [vmem:[#allocation9 + $0x18] ss:$12 sps:$4 sm:$0xff]  }
 0x277   :  { %v6462_v43 = vpop.eup %6461  ;;  %2235 = vmatprep.subr.bf16.mxu1 %v7262_v45  ;;  %5845 = vmatprep.subr.bf16.mxu0 %v7894_v26 }
 0x278   :  { %v1795_v18 = vmul.f32 %v6462_v43, %v1794_v25  ;;  %v7302_v25 = vld [vmem:[#allocation9 + $0x4] ss:$12 sps:$4 sm:$0xff]  }
 0x27a   :  { %v1796_v0 = vadd.f32 %v1795_v18, %v7115_v41  ;;  %2236 = vmatpush1.bf16.msra.mxu1 %v7269_v5  ;;  %5846 = vmatpush3.bf16.msra.mxu0 %v6278_v9  ;;  %v7288_v41 = vld [vmem:[#allocation9 + $0x34] ss:$12 sps:$4 sm:$0xff]   ;;  %v6464_v8 = vpop.eup %6463 }
 0x27b   :  { %2237 = vmatprep.subr.bf16.mxu1 %v7273_v63  ;;  %5847 = vmatprep.subr.bf16.mxu0 %v7894_v26  ;;  %v1798_v9 = vsub.f32 1.0, %v6464_v8 }
 0x27c   :  { %6465 = vtanh.f32 %v1796_v0  ;;  %v1800_v0 = vmul.f32 %v6464_v8, %v7165_v22 }
 0x27e   :  { %2238 = vmatpush1.bf16.msra.mxu1 %v7277_v3  ;;  %5848 = vmatpush3.bf16.msra.mxu0 %v6282_v11  ;;  %v7306_v11 = vld [vmem:[#allocation9] ss:$12 sps:$4 sm:$0xff]  }
 0x27f   :  { %2239 = vmatprep.subr.bf16.mxu1 %v7281_v47  ;;  %5849 = vmatprep.subr.bf16.mxu0 %v7894_v26 }
 0x282   :  { %2240 = vmatpush1.bf16.msra.mxu1 %v7284_v12  ;;  %5850 = vmatpush3.bf16.msra.mxu0 %v6286_v54  ;;  %v6298_v54 = vld [vmem:[#allocation9 + $0x8] ss:$12 sps:$4 sm:$0xff]  }
 0x283   :  { %2241 = vmatprep.subr.bf16.mxu1 %v7288_v41  ;;  %5851 = vmatprep.subr.bf16.mxu0 %v7894_v26 }
 0x286   :  { %2242 = vmatpush1.bf16.msra.mxu1 %v7291_v55  ;;  %5852 = vmatpush3.bf16.msra.mxu0 %v6290_v59  ;;  %v7310_v59 = vpop.permute.xlu1 %1812 }
 0x287   :  { %2243 = vmatprep.subr.bf16.mxu1 %v7295_v52  ;;  %5853 = vmatprep.subr.bf16.mxu0 %v7894_v26  ;;  %7898 = vst [vmem:[#allocation47_spill] sm:$0xff] %v7310_v59  ;;  %vm1814_vm14 = vcmp.eq.s32.totalorder %v7310_v59, 1 }
 0x289   :  { %v6466_v43 = vpop.eup %6465 }
 0x28a   :  { %v1799_v18 = vmul.f32 %v6466_v43, %v1798_v9  ;;  %2244 = vmatpush1.bf16.msra.mxu1 %v7298_v58  ;;  %5854 = vmatpush3.bf16.msra.mxu0 %v6294_v51 }
 0x28b   :  { %2245 = vmatprep.subr.bf16.mxu1 %v7302_v25  ;;  %5855 = vmatprep.subr.bf16.mxu0 %v7894_v26 }
 0x28c   :  { %v1801_v48 = vadd.f32 %v1800_v0, %v1799_v18  ;;  %v6301_v18 = vld [vmem:[#allocation8 + $0x80] ss:$12 sps:$4 sm:$0xff]   ;;  %v6302_v0 = vld [vmem:[#allocation8 + $0x68] ss:$12 sps:$4 sm:$0xff]  }
 0x28e   :  { %v7316_v9 = vsel %vm1814_vm14, %v1801_v48, %v7165_v22  ;;  %v1819_v8 = vsel %vm1814_vm14, %v1801_v48, 0.0  ;;  %2246 = vmatpush1.bf16.msra.mxu1 %v7306_v11  ;;  %5856 = vmatpush3.bf16.msra.mxu0 %v6298_v54  ;;  %v6299_v22 = vld [vmem:[#allocation8 + $0xb0] ss:$12 sps:$4 sm:$0xff]   ;;  %v6300_v48 = vld [vmem:[#allocation8 + $0x98] ss:$12 sps:$4 sm:$0xff]  }
 0x28f   :  { %v1820_v51 = vpack.c.bf16 %v1819_v8, %v1819_v8  ;;  %v2070_v43 = vpack.c.bf16 %v7316_v9, %v7316_v9  ;;  %2543 = vmatprep.subr.bf16.mxu1 %v7175_v23  ;;  %5861 = vmatprep.subr.bf16.mxu0 %v7894_v26  ;;  %v6303_v54 = vld [vmem:[#allocation8 + $0x50] ss:$12 sps:$4 sm:$0xff]   ;;  %v6304_v8 = vld [vmem:[#allocation8 + $0x38] ss:$12 sps:$4 sm:$0xff]  }
 0x291   :  { %1821 = vst [vmem:[#allocation11 + $0x34] sm:$0xf] %v1820_v51  ;;  %2264 = vmatmul.mubr.bf16.vlgmr.msra.gmra.mxu1 %v2070_v43  ;;  %5858 = vmatmul.mubr.bf16.vlgmr.msra.gmra.mxu0 %v2070_v43  ;;  %v6305_v51 = vld [vmem:[#allocation8 + $0x20] ss:$12 sps:$4 sm:$0xff]   ;;  %v6306_v43 = vld [vmem:[#allocation8 + $0x8] ss:$12 sps:$4 sm:$0xff]  }
 0x292   :  { %2544 = vmatpush1.bf16.msra.mxu1 %v7177_v53  ;;  %2575 = vmatprep.mubr.bf16.mxu1 %v7895_v61 }
 0x293   :  { %2545 = vmatprep.subr.bf16.mxu1 %v7181_v39  ;;  %5877 = vmatprep.mubr.msk.bf16.mxu0 %vm6726_vm4, %v7894_v26 }
 0x294   :  { %5862 = vmatpush3.bf16.msra.mxu0 %v6299_v22 }
 0x295   :  { %5863 = vmatprep.subr.bf16.mxu0 %v7894_v26 }
 0x296   :  { %2546 = vmatpush1.bf16.msra.mxu1 %v7184_v60 }
 0x297   :  { %2547 = vmatprep.subr.bf16.mxu1 %v7188_v46 }
 0x298   :  { %5864 = vmatpush3.bf16.msra.mxu0 %v6300_v48 }
 0x299   :  { %5865 = vmatprep.subr.bf16.mxu0 %v7894_v26 }
 0x29a   :  { %2548 = vmatpush1.bf16.msra.mxu1 %v7191_v7 }
 0x29b   :  { %2549 = vmatprep.subr.bf16.mxu1 %v7195_v19 }
 0x29c   :  { %5866 = vmatpush3.bf16.msra.mxu0 %v6301_v18 }
 0x29d   :  { %5867 = vmatprep.subr.bf16.mxu0 %v7894_v26 }
 0x29e   :  { %2550 = vmatpush1.bf16.msra.mxu1 %v7198_v36 }
 0x29f   :  { %2551 = vmatprep.subr.bf16.mxu1 %v7202_v42 }
 0x2a0   :  { %5868 = vmatpush3.bf16.msra.mxu0 %v6302_v0 }
 0x2a1   :  { %5869 = vmatprep.subr.bf16.mxu0 %v7894_v26 }
 0x2a2   :  { %2552 = vmatpush1.bf16.msra.mxu1 %v7205_v27 }
 0x2a3   :  { %2553 = vmatprep.subr.bf16.mxu1 %v7209_v14 }
 0x2a4   :  { %5870 = vmatpush3.bf16.msra.mxu0 %v6303_v54 }
 0x2a5   :  { %5871 = vmatprep.subr.bf16.mxu0 %v7894_v26 }
 0x2a6   :  { %2554 = vmatpush1.bf16.msra.mxu1 %v7212_v50 }
 0x2a7   :  { %2555 = vmatprep.subr.bf16.mxu1 %v7216_v2 }
 0x2a8   :  { %5872 = vmatpush3.bf16.msra.mxu0 %v6304_v8 }
 0x2a9   :  { %5873 = vmatprep.subr.bf16.mxu0 %v7894_v26 }
 0x2aa   :  { %2556 = vmatpush1.bf16.msra.mxu1 %v7219_v56 }
 0x2ab   :  { %2557 = vmatprep.subr.bf16.mxu1 %v7223_v1 }
 0x2ac   :  { %5874 = vmatpush3.bf16.msra.mxu0 %v6305_v51 }
 0x2ad   :  { %5875 = vmatprep.subr.bf16.mxu0 %v7894_v26 }
 0x2ae   :  { %2558 = vmatpush1.bf16.msra.mxu1 %v7226_v62 }
 0x2af   :  { %2785 = vmatprep.subr.bf16.mxu1 %v7230_v6 }
 0x2b0   :  { %5876 = vmatpush3.bf16.msra.mxu0 %v6306_v43 }
 0x2b1   :  { %5881 = vmatprep.subr.bf16.mxu0 %v7894_v26 }
 0x331   :  { %v2023_v22 = vpop.f32.mrf.mxu1  ;;  %v2064_v48 = vpop.f32.mrf.mxu0 }
 0x332   :  { %v2312_v18 = vadd.f32 %v2023_v22, %v6995_v20  ;;  %v2326_v20 = vadd.f32 %v7122_v57, %v2064_v48 }
 0x333   :  { %v2025_v0 = vpop.f32.mrf.mxu1  ;;  %v5839_v54 = vpop.f32.mrf.mxu0 }
 0x334   :  { %v5333_v59 = vmul.f32 -1.442695, %v2312_v18  ;;  %v2319_v51 = vadd.f32 %v2025_v0, %v7001_v24 }
 0x335   :  { %v2027_v10 = vpop.f32.mrf.mxu1  ;;  %v2067_v40 = vpop.f32.mrf.mxu0 }
 0x336   :  { %6467 = vpow2.f32 %v5333_v59  ;;  %v5334_v44 = vmul.f32 -1.442695, %v2319_v51 }
 0x337   :  { %v2028_v8 = vpop.f32.mrf.mxu1  ;;  %v5840_v33 = vpop.f32.mrf.mxu0 }
 0x338   :  { %6469 = vpow2.f32 %v5334_v44 }
 0x343   :  { %v6468_v38 = vpop.eup %6467 }
 0x344   :  { %v2316_v43 = vadd.f32 1.0, %v6468_v38 }
 0x345   :  { %v6470_v30 = vpop.eup %6469 }
 0x346   :  { %6471 = vrcp.f32 %v2316_v43  ;;  %v2323_v15 = vadd.f32 1.0, %v6470_v30 }
 0x348   :  { %6473 = vrcp.f32 %v2323_v15 }
 0x351   :  { %v2265_v29 = vpop.f32.mrf.mxu1  ;;  %v2306_v37 = vpop.f32.mrf.mxu0 }
 0x352   :  { %v2334_v22 = vadd.f32 %v2265_v29, %v7040_v49 }
 0x353   :  { %v6472_v10 = vpop.eup %6471  ;;  %v2267_v40 = vpop.f32.mrf.mxu1 }
 0x354   :  { %v5859_v59 = vpop.f32.mrf.mxu0  ;;  %v2327_v18 = vmul.f32 %v6472_v10, %v2326_v20  ;;  %v5335_v33 = vmul.f32 -1.442695, %v2334_v22  ;;  %v2341_v30 = vadd.f32 %v2267_v40, %v7106_v35  ;;  %v7359_v20 = vpop.permute.xlu0 %2360  ;;  %v6307_v10 = vld [vmem:[#allocation9 + $0xb0] ss:$12 sps:$4 sm:$0xff]  }
 0x355   :  { %v2269_v24 = vpop.f32.mrf.mxu1  ;;  %v6474_v57 = vpop.eup %6473  ;;  %vm2362_vm15 = vcmp.eq.s32.totalorder %v7359_v20, 1  ;;  %v6411_v20 = vld [vmem:[#allocation8 + $0xb0] ss:$12 sps:$4 sm:$0xff]  }
 0x356   :  { %v2309_v0 = vpop.f32.mrf.mxu0  ;;  %v2328_v44 = vadd.f32 %v2327_v18, %v6998_v21  ;;  %6475 = vpow2.f32 %v5335_v33  ;;  %v5336_v8 = vmul.f32 -1.442695, %v2341_v30  ;;  %v2330_v48 = vsub.f32 1.0, %v6474_v57  ;;  %v6308_v33 = vld [vmem:[#allocation9 + $0x98] ss:$12 sps:$4 sm:$0xff]  }
 0x357   :  { %v2270_v38 = vpop.f32.mrf.mxu1  ;;  %v2332_v43 = vmul.f32 %v6474_v57, %v7247_v4  ;;  %v2348_v24 = vadd.f32 %v7145_v31, %v2306_v37  ;;  %v6309_v0 = vld [vmem:[#allocation9 + $0x80] ss:$12 sps:$4 sm:$0xff]   ;;  %v6310_v30 = vld [vmem:[#allocation9 + $0x68] ss:$12 sps:$4 sm:$0xff]   ;;  %v6311_v37 = vld [vmem:[#allocation9 + $0x50] ss:$12 sps:$4 sm:$0xff]  }
 0x358   :  { %v5860_v54 = vpop.f32.mrf.mxu0  ;;  %6477 = vtanh.f32 %v2328_v44 }
 0x359   :  { %6479 = vpow2.f32 %v5336_v8  ;;  %v6313_v8 = vld [vmem:[#allocation9 + $0x20] ss:$12 sps:$4 sm:$0xff]  }
 0x363   :  { %v6476_v29 = vpop.eup %6475 }
 0x364   :  { %v2338_v49 = vadd.f32 1.0, %v6476_v29 }
 0x365   :  { %v6478_v51 = vpop.eup %6477 }
 0x366   :  { %6481 = vrcp.f32 %v2338_v49  ;;  %v2331_v15 = vmul.f32 %v6478_v51, %v2330_v48  ;;  %v6480_v18 = vpop.eup %6479  ;;  %v6314_v49 = vld [vmem:[#allocation9 + $0x8] ss:$12 sps:$4 sm:$0xff]  }
 0x368   :  { %v2333_v21 = vadd.f32 %v2332_v43, %v2331_v15  ;;  %v7398_v15 = vpop.permute.xlu1 %2366 }
 0x369   :  { %vm2368_vm0 = vcmp.eq.s32.totalorder %v7398_v15, 1 }
 0x36a   :  { %v7365_v35 = vsel %vm2362_vm15, %v2333_v21, %v7247_v4  ;;  %v2370_v22 = vsel %vm2362_vm15, %v2333_v21, 0.0  ;;  %v2345_v4 = vadd.f32 1.0, %v6480_v18 }
 0x36b   :  { %v2371_v40 = vpack.c.bf16 %v2370_v22, %v2370_v22  ;;  %v2382_v59 = vpack.c.bf16 %v7365_v35, %v7365_v35 }
 0x36c   :  { %6483 = vrcp.f32 %v2345_v4 }
 0x36d   :  { %2372 = vst [vmem:[#allocation11 + $0x10] sm:$0xf] %v2371_v40  ;;  %2576 = vmatmul.mubr.bf16.vlgmr.msra.gmra.mxu1 %v2382_v59  ;;  %5878 = vmatmul.mubr.bf16.vlgmr.msra.gmra.mxu0 %v2382_v59 }
 0x36e   :  { %2786 = vmatpush1.bf16.msra.mxu1 %v7251_v17  ;;  %5882 = vmatpush3.bf16.msra.mxu0 %v6307_v10 }
 0x36f   :  { %2787 = vmatprep.subr.bf16.mxu1 %v7255_v16  ;;  %5883 = vmatprep.subr.bf16.mxu0 %v7894_v26 }
 0x370   :  { %2817 = vmatprep.mubr.bf16.mxu1 %v7895_v61  ;;  %5897 = vmatprep.mubr.msk.bf16.mxu0 %vm6726_vm4, %v7894_v26 }
 0x372   :  { %2788 = vmatpush1.bf16.msra.mxu1 %v7258_v13  ;;  %5884 = vmatpush3.bf16.msra.mxu0 %v6308_v33 }
 0x373   :  { %v6482_v44 = vpop.eup %6481  ;;  %2789 = vmatprep.subr.bf16.mxu1 %v7262_v45  ;;  %5885 = vmatprep.subr.bf16.mxu0 %v7894_v26 }
 0x374   :  { %v2349_v38 = vmul.f32 %v6482_v44, %v2348_v24 }
 0x376   :  { %v2350_v54 = vadd.f32 %v2349_v38, %v7109_v34  ;;  %2790 = vmatpush1.bf16.msra.mxu1 %v7269_v5  ;;  %5886 = vmatpush3.bf16.msra.mxu0 %v6309_v0  ;;  %v6312_v34 = vld [vmem:[#allocation9 + $0x38] ss:$12 sps:$4 sm:$0xff]  }
 0x377   :  { %2791 = vmatprep.subr.bf16.mxu1 %v7273_v63  ;;  %5887 = vmatprep.subr.bf16.mxu0 %v7894_v26 }
 0x378   :  { %6485 = vtanh.f32 %v2350_v54 }
 0x379   :  { %v6484_v31 = vpop.eup %6483 }
 0x37a   :  { %2792 = vmatpush1.bf16.msra.mxu1 %v7277_v3  ;;  %5888 = vmatpush3.bf16.msra.mxu0 %v6310_v30  ;;  %v2352_v57 = vsub.f32 1.0, %v6484_v31  ;;  %v2354_v51 = vmul.f32 %v6484_v31, %v7316_v9  ;;  %v7899_v30 = vld [vmem:[#allocation24_spill] sm:$0xff] }
 0x37b   :  { %2793 = vmatprep.subr.bf16.mxu1 %v7281_v47  ;;  %5889 = vmatprep.subr.bf16.mxu0 %v7894_v26 }
 0x37e   :  { %2794 = vmatpush1.bf16.msra.mxu1 %v7284_v12  ;;  %5890 = vmatpush3.bf16.msra.mxu0 %v6311_v37 }
 0x37f   :  { %2795 = vmatprep.subr.bf16.mxu1 %v7288_v41  ;;  %5891 = vmatprep.subr.bf16.mxu0 %v7894_v26 }
 0x382   :  { %2796 = vmatpush1.bf16.msra.mxu1 %v7291_v55  ;;  %5892 = vmatpush3.bf16.msra.mxu0 %v6312_v34 }
 0x383   :  { %2797 = vmatprep.subr.bf16.mxu1 %v7295_v52  ;;  %5893 = vmatprep.subr.bf16.mxu0 %v7894_v26 }
 0x385   :  { %v6486_v29 = vpop.eup %6485 }
 0x386   :  { %2798 = vmatpush1.bf16.msra.mxu1 %v7298_v58  ;;  %5894 = vmatpush3.bf16.msra.mxu0 %v6313_v8  ;;  %v2353_v48 = vmul.f32 %v6486_v29, %v2352_v57 }
 0x387   :  { %2799 = vmatprep.subr.bf16.mxu1 %v7302_v25  ;;  %5895 = vmatprep.subr.bf16.mxu0 %v7894_v26 }
 0x388   :  { %v2355_v43 = vadd.f32 %v2354_v51, %v2353_v48  ;;  %v7900_v48 = vld [vmem:[#allocation19_spill] sm:$0xff] }
 0x38a   :  { %2800 = vmatpush1.bf16.msra.mxu1 %v7306_v11  ;;  %5896 = vmatpush3.bf16.msra.mxu0 %v6314_v49  ;;  %v7405_v21 = vsel %vm2368_vm0, %v2355_v43, %v7316_v9  ;;  %v2373_v22 = vsel %vm2368_vm0, %v2355_v43, 0.0 }
 0x38b   :  { %v2374_v10 = vpack.c.bf16 %v2373_v22, %v2373_v22  ;;  %v2624_v40 = vpack.c.bf16 %v7405_v21, %v7405_v21  ;;  %3097 = vmatprep.subr.bf16.mxu1 %v7175_v23  ;;  %5901 = vmatprep.subr.bf16.mxu0 %v7894_v26  ;;  %v6315_v23 = vld [vmem:[#allocation8 + $0xb0] ss:$12 sps:$4 sm:$0xff]  }
 0x38d   :  { %2375 = vst [vmem:[#allocation11 + $0x2c] sm:$0xf] %v2374_v10  ;;  %2818 = vmatmul.mubr.bf16.vlgmr.msra.gmra.mxu1 %v2624_v40  ;;  %5898 = vmatmul.mubr.bf16.vlgmr.msra.gmra.mxu0 %v2624_v40  ;;  %v7901_v10 = vld [vmem:[#allocation42_spill] sm:$0xff] }
 0x38e   :  { %3098 = vmatpush1.bf16.msra.mxu1 %v7177_v53  ;;  %3129 = vmatprep.mubr.bf16.mxu1 %v7895_v61  ;;  %v6316_v53 = vld [vmem:[#allocation8 + $0x98] ss:$12 sps:$4 sm:$0xff]  }
 0x38f   :  { %3099 = vmatprep.subr.bf16.mxu1 %v7181_v39  ;;  %5917 = vmatprep.mubr.msk.bf16.mxu0 %vm6726_vm4, %v7894_v26  ;;  %v6317_v39 = vld [vmem:[#allocation8 + $0x80] ss:$12 sps:$4 sm:$0xff]  }
 0x390   :  { %5902 = vmatpush3.bf16.msra.mxu0 %v6315_v23 }
 0x391   :  { %5903 = vmatprep.subr.bf16.mxu0 %v7894_v26 }
 0x392   :  { %3100 = vmatpush1.bf16.msra.mxu1 %v7184_v60  ;;  %v6318_v60 = vld [vmem:[#allocation8 + $0x68] ss:$12 sps:$4 sm:$0xff]  }
 0x393   :  { %3101 = vmatprep.subr.bf16.mxu1 %v7188_v46  ;;  %v6319_v46 = vld [vmem:[#allocation8 + $0x50] ss:$12 sps:$4 sm:$0xff]  }
 0x394   :  { %5904 = vmatpush3.bf16.msra.mxu0 %v6316_v53 }
 0x395   :  { %5905 = vmatprep.subr.bf16.mxu0 %v7894_v26 }
 0x396   :  { %3102 = vmatpush1.bf16.msra.mxu1 %v7191_v7  ;;  %v6320_v7 = vld [vmem:[#allocation8 + $0x38] ss:$12 sps:$4 sm:$0xff]  }
 0x397   :  { %3103 = vmatprep.subr.bf16.mxu1 %v7195_v19  ;;  %v6321_v19 = vld [vmem:[#allocation8 + $0x20] ss:$12 sps:$4 sm:$0xff]  }
 0x398   :  { %5906 = vmatpush3.bf16.msra.mxu0 %v6317_v39 }
 0x399   :  { %5907 = vmatprep.subr.bf16.mxu0 %v7894_v26 }
 0x39a   :  { %3104 = vmatpush1.bf16.msra.mxu1 %v7198_v36  ;;  %v6322_v36 = vld [vmem:[#allocation8 + $0x8] ss:$12 sps:$4 sm:$0xff]  }
 0x39b   :  { %3105 = vmatprep.subr.bf16.mxu1 %v7202_v42 }
 0x39c   :  { %5908 = vmatpush3.bf16.msra.mxu0 %v6318_v60 }
 0x39d   :  { %5909 = vmatprep.subr.bf16.mxu0 %v7894_v26 }
 0x39e   :  { %3106 = vmatpush1.bf16.msra.mxu1 %v7205_v27 }
 0x39f   :  { %3107 = vmatprep.subr.bf16.mxu1 %v7209_v14 }
 0x3a0   :  { %5910 = vmatpush3.bf16.msra.mxu0 %v6319_v46 }
 0x3a1   :  { %5911 = vmatprep.subr.bf16.mxu0 %v7894_v26 }
 0x3a2   :  { %3108 = vmatpush1.bf16.msra.mxu1 %v7212_v50 }
 0x3a3   :  { %3109 = vmatprep.subr.bf16.mxu1 %v7216_v2 }
 0x3a4   :  { %5912 = vmatpush3.bf16.msra.mxu0 %v6320_v7 }
 0x3a5   :  { %5913 = vmatprep.subr.bf16.mxu0 %v7894_v26 }
 0x3a6   :  { %3110 = vmatpush1.bf16.msra.mxu1 %v7219_v56 }
 0x3a7   :  { %3111 = vmatprep.subr.bf16.mxu1 %v7223_v1 }
 0x3a8   :  { %5914 = vmatpush3.bf16.msra.mxu0 %v6321_v19  ;;  %v7451_v19 = vpop.permute.xlu0 %2914 }
 0x3a9   :  { %5915 = vmatprep.subr.bf16.mxu0 %v7894_v26  ;;  %vm2916_vm1 = vcmp.eq.s32.totalorder %v7451_v19, 1  ;;  %v6395_v19 = vld [vmem:[#allocation8 + $0xb0] ss:$12 sps:$4 sm:$0xff]  }
 0x3aa   :  { %3112 = vmatpush1.bf16.msra.mxu1 %v7226_v62 }
 0x3ab   :  { %3339 = vmatprep.subr.bf16.mxu1 %v7230_v6 }
 0x3ac   :  { %5916 = vmatpush3.bf16.msra.mxu0 %v6322_v36 }
 0x3ad   :  { %5921 = vmatprep.subr.bf16.mxu0 %v7894_v26 }
 0x42d   :  { %v2577_v42 = vpop.f32.mrf.mxu1  ;;  %v2618_v27 = vpop.f32.mrf.mxu0 }
 0x42e   :  { %v2866_v14 = vadd.f32 %v2577_v42, %v7007_v28  ;;  %v7445_v28 = vld [vmem:[%s7851_s5] ss:$0 sm:$0xff] }
 0x42f   :  { %v2579_v50 = vpop.f32.mrf.mxu1  ;;  %v5879_v2 = vpop.f32.mrf.mxu0  ;;  %v2880_v54 = vadd.f32 %v7445_v28, %v2618_v27 }
 0x430   :  { %v5385_v56 = vmul.f32 -1.442695, %v2866_v14  ;;  %v2873_v59 = vadd.f32 %v2579_v50, %v7013_v32  ;;  %v6323_v2 = vld [vmem:[#allocation9 + $0xb0] ss:$12 sps:$4 sm:$0xff]  }
 0x431   :  { %v2581_v1 = vpop.f32.mrf.mxu1  ;;  %v2621_v62 = vpop.f32.mrf.mxu0 }
 0x432   :  { %6487 = vpow2.f32 %v5385_v56  ;;  %v5386_v18 = vmul.f32 -1.442695, %v2873_v59 }
 0x433   :  { %v2582_v6 = vpop.f32.mrf.mxu1  ;;  %v5880_v9 = vpop.f32.mrf.mxu0 }
 0x434   :  { %6489 = vpow2.f32 %v5386_v18  ;;  %v6324_v6 = vld [vmem:[#allocation9 + $0x98] ss:$12 sps:$4 sm:$0xff]   ;;  %v7473_v9 = vld [vmem:[%s7853_s7] ss:$0 sm:$0xff] }
 0x43f   :  { %v6488_v33 = vpop.eup %6487 }
 0x440   :  { %v2870_v4 = vadd.f32 1.0, %v6488_v33  ;;  %v7902_v33 = vld [vmem:[#allocation43_spill] sm:$0xff] }
 0x441   :  { %v6490_v24 = vpop.eup %6489 }
 0x442   :  { %6491 = vrcp.f32 %v2870_v4  ;;  %v2877_v0 = vadd.f32 1.0, %v6490_v24  ;;  %v6326_v24 = vld [vmem:[#allocation9 + $0x68] ss:$12 sps:$4 sm:$0xff]  }
 0x444   :  { %6493 = vrcp.f32 %v2877_v0  ;;  %v7492_v0 = vpop.permute.xlu1 %2920 }
 0x445   :  { %vm2922_vm2 = vcmp.eq.s32.totalorder %v7492_v0, 1  ;;  %v6370_v0 = vld [vmem:[#allocation9 + $0x98] ss:$12 sps:$4 sm:$0xff]  }
 0x44d   :  { %v2819_v44 = vpop.f32.mrf.mxu1  ;;  %v2860_v38 = vpop.f32.mrf.mxu0 }
 0x44e   :  { %v2888_v37 = vadd.f32 %v2819_v44, %v7899_v30  ;;  %v2902_v59 = vadd.f32 %v7473_v9, %v2860_v38  ;;  %v7519_v30 = vld [vmem:[#allocation8 + $0x94] ss:$12 sps:$4 sm:$0xff]  }
 0x44f   :  { %v6492_v34 = vpop.eup %6491  ;;  %v2821_v32 = vpop.f32.mrf.mxu1 }
 0x450   :  { %v5899_v31 = vpop.f32.mrf.mxu0  ;;  %v2881_v8 = vmul.f32 %v6492_v34, %v2880_v54  ;;  %v5387_v57 = vmul.f32 -1.442695, %v2888_v37  ;;  %v2895_v40 = vadd.f32 %v2821_v32, %v7901_v10  ;;  %v6334_v54 = vld [vmem:[#allocation8 + $0xb0] ss:$12 sps:$4 sm:$0xff]   ;;  %v6338_v34 = vld [vmem:[#allocation8 + $0x98] ss:$12 sps:$4 sm:$0xff]  }
 0x451   :  { %v2823_v29 = vpop.f32.mrf.mxu1  ;;  %v6494_v53 = vpop.eup %6493  ;;  %v7522_v37 = vld [vmem:[#allocation8 + $0x90] ss:$12 sps:$4 sm:$0xff]   ;;  %v7529_v31 = vld [vmem:[#allocation8 + $0x78] ss:$12 sps:$4 sm:$0xff]  }
 0x452   :  { %v2863_v49 = vpop.f32.mrf.mxu0  ;;  %v2882_v51 = vadd.f32 %v2881_v8, %v7900_v48  ;;  %6495 = vpow2.f32 %v5387_v57  ;;  %v5388_v23 = vmul.f32 -1.442695, %v2895_v40  ;;  %v2884_v46 = vsub.f32 1.0, %v6494_v53  ;;  %v7526_v32 = vld [vmem:[#allocation8 + $0x7c] ss:$12 sps:$4 sm:$0xff]  }
 0x453   :  { %v2824_v43 = vpop.f32.mrf.mxu1  ;;  %v2886_v42 = vmul.f32 %v6494_v53, %v7365_v35  ;;  %v6342_v8 = vld [vmem:[#allocation8 + $0x80] ss:$12 sps:$4 sm:$0xff]   ;;  %v7533_v57 = vld [vmem:[#allocation8 + $0x64] ss:$12 sps:$4 sm:$0xff]   ;;  %v6346_v49 = vld [vmem:[#allocation8 + $0x68] ss:$12 sps:$4 sm:$0xff]  }
 0x454   :  { %v5900_v22 = vpop.f32.mrf.mxu0  ;;  %6497 = vtanh.f32 %v2882_v51  ;;  %v7536_v29 = vld [vmem:[#allocation8 + $0x60] ss:$12 sps:$4 sm:$0xff]   ;;  %v7543_v51 = vld [vmem:[#allocation8 + $0x48] ss:$12 sps:$4 sm:$0xff]   ;;  %v6350_v43 = vld [vmem:[#allocation8 + $0x50] ss:$12 sps:$4 sm:$0xff]  }
 0x455   :  { %6499 = vpow2.f32 %v5388_v23  ;;  %v7540_v48 = vld [vmem:[#allocation8 + $0x4c] ss:$12 sps:$4 sm:$0xff]   ;;  %v7547_v22 = vld [vmem:[#allocation8 + $0x34] ss:$12 sps:$4 sm:$0xff]   ;;  %v7550_v10 = vld [vmem:[#allocation8 + $0x30] ss:$12 sps:$4 sm:$0xff]  }
 0x456   :  { %v6354_v40 = vld [vmem:[#allocation8 + $0x38] ss:$12 sps:$4 sm:$0xff]   ;;  %v7554_v23 = vld [vmem:[#allocation8 + $0x1c] ss:$12 sps:$4 sm:$0xff]  }
 0x457   :  { %v7557_v53 = vld [vmem:[#allocation8 + $0x18] ss:$12 sps:$4 sm:$0xff]  }
 0x45f   :  { %v6496_v39 = vpop.eup %6495 }
 0x460   :  { %v2892_v60 = vadd.f32 1.0, %v6496_v39  ;;  %v6358_v39 = vld [vmem:[#allocation8 + $0x20] ss:$12 sps:$4 sm:$0xff]  }
 0x461   :  { %v6498_v7 = vpop.eup %6497 }
 0x462   :  { %6501 = vrcp.f32 %v2892_v60  ;;  %v2885_v36 = vmul.f32 %v6498_v7, %v2884_v46  ;;  %v6500_v62 = vpop.eup %6499  ;;  %v7561_v60 = vld [vmem:[#allocation8 + $0x4] ss:$12 sps:$4 sm:$0xff]   ;;  %v7564_v46 = vld [vmem:[#allocation8] ss:$12 sps:$4 sm:$0xff]   ;;  %v6362_v7 = vld [vmem:[#allocation8 + $0x8] ss:$12 sps:$4 sm:$0xff]  }
 0x464   :  { %v2887_v27 = vadd.f32 %v2886_v42, %v2885_v36  ;;  %v7568_v36 = vld [vmem:[#allocation9 + $0xac] ss:$12 sps:$4 sm:$0xff]  }
 0x466   :  { %v7458_v14 = vsel %vm2916_vm1, %v2887_v27, %v7365_v35  ;;  %v2924_v50 = vsel %vm2916_vm1, %v2887_v27, 0.0  ;;  %v2899_v35 = vadd.f32 1.0, %v6500_v62 }
 0x467   :  { %v2925_v56 = vpack.c.bf16 %v2924_v50, %v2924_v50  ;;  %v2936_v1 = vpack.c.bf16 %v7458_v14, %v7458_v14  ;;  %v7903_v50 = vld [vmem:[#allocation21_spill] sm:$0xff] }
 0x468   :  { %6503 = vrcp.f32 %v2899_v35 }
 0x469   :  { %2926 = vst [vmem:[#allocation11 + $0x18] sm:$0xf] %v2925_v56  ;;  %3130 = vmatmul.mubr.bf16.vlgmr.msra.gmra.mxu1 %v2936_v1  ;;  %5918 = vmatmul.mubr.bf16.vlgmr.msra.gmra.mxu0 %v2936_v1 }
 0x46a   :  { %3340 = vmatpush1.bf16.msra.mxu1 %v7251_v17  ;;  %5922 = vmatpush3.bf16.msra.mxu0 %v6323_v2  ;;  %v6325_v17 = vld [vmem:[#allocation9 + $0x80] ss:$12 sps:$4 sm:$0xff]  }
 0x46b   :  { %3341 = vmatprep.subr.bf16.mxu1 %v7255_v16  ;;  %5923 = vmatprep.subr.bf16.mxu0 %v7894_v26 }
 0x46c   :  { %3371 = vmatprep.mubr.bf16.mxu1 %v7895_v61  ;;  %5937 = vmatprep.mubr.msk.bf16.mxu0 %vm6726_vm4, %v7894_v26 }
 0x46e   :  { %3342 = vmatpush1.bf16.msra.mxu1 %v7258_v13  ;;  %5924 = vmatpush3.bf16.msra.mxu0 %v6324_v6  ;;  %v6327_v13 = vld [vmem:[#allocation9 + $0x50] ss:$12 sps:$4 sm:$0xff]  }
 0x46f   :  { %v6502_v16 = vpop.eup %6501  ;;  %3343 = vmatprep.subr.bf16.mxu1 %v7262_v45  ;;  %5925 = vmatprep.subr.bf16.mxu0 %v7894_v26  ;;  %v6328_v45 = vld [vmem:[#allocation9 + $0x38] ss:$12 sps:$4 sm:$0xff]  }
 0x470   :  { %v2903_v18 = vmul.f32 %v6502_v16, %v2902_v59  ;;  %v7904_v16 = vld [vmem:[#allocation23_spill] sm:$0xff] }
 0x472   :  { %v2904_v4 = vadd.f32 %v2903_v18, %v7902_v33  ;;  %3344 = vmatpush1.bf16.msra.mxu1 %v7269_v5  ;;  %5926 = vmatpush3.bf16.msra.mxu0 %v6325_v17 }
 0x473   :  { %3345 = vmatprep.subr.bf16.mxu1 %v7273_v63  ;;  %5927 = vmatprep.subr.bf16.mxu0 %v7894_v26  ;;  %v6329_v63 = vld [vmem:[#allocation9 + $0x20] ss:$12 sps:$4 sm:$0xff]  }
 0x474   :  { %6505 = vtanh.f32 %v2904_v4 }
 0x475   :  { %v6504_v5 = vpop.eup %6503 }
 0x476   :  { %3346 = vmatpush1.bf16.msra.mxu1 %v7277_v3  ;;  %5928 = vmatpush3.bf16.msra.mxu0 %v6326_v24  ;;  %v2906_v3 = vsub.f32 1.0, %v6504_v5  ;;  %v2908_v44 = vmul.f32 %v6504_v5, %v7405_v21 }
 0x477   :  { %3347 = vmatprep.subr.bf16.mxu1 %v7281_v47  ;;  %5929 = vmatprep.subr.bf16.mxu0 %v7894_v26 }
 0x47a   :  { %3348 = vmatpush1.bf16.msra.mxu1 %v7284_v12  ;;  %5930 = vmatpush3.bf16.msra.mxu0 %v6327_v13  ;;  %v6330_v12 = vld [vmem:[#allocation9 + $0x8] ss:$12 sps:$4 sm:$0xff]  }
 0x47b   :  { %3349 = vmatprep.subr.bf16.mxu1 %v7288_v41  ;;  %5931 = vmatprep.subr.bf16.mxu0 %v7894_v26 }
 0x47e   :  { %3350 = vmatpush1.bf16.msra.mxu1 %v7291_v55  ;;  %5932 = vmatpush3.bf16.msra.mxu0 %v6328_v45 }
 0x47f   :  { %3351 = vmatprep.subr.bf16.mxu1 %v7295_v52  ;;  %5933 = vmatprep.subr.bf16.mxu0 %v7894_v26 }
 0x481   :  { %v6506_v47 = vpop.eup %6505 }
 0x482   :  { %3352 = vmatpush1.bf16.msra.mxu1 %v7298_v58  ;;  %5934 = vmatpush3.bf16.msra.mxu0 %v6329_v63  ;;  %v2907_v41 = vmul.f32 %v6506_v47, %v2906_v3  ;;  %v7905_v47 = vld [vmem:[#allocation20_spill] sm:$0xff] }
 0x483   :  { %3353 = vmatprep.subr.bf16.mxu1 %v7302_v25  ;;  %5935 = vmatprep.subr.bf16.mxu0 %v7894_v26 }
 0x484   :  { %v2909_v55 = vadd.f32 %v2908_v44, %v2907_v41 }
 0x486   :  { %3354 = vmatpush1.bf16.msra.mxu1 %v7306_v11  ;;  %5936 = vmatpush3.bf16.msra.mxu0 %v6330_v12  ;;  %v7503_v52 = vsel %vm2922_vm2, %v2909_v55, %v7405_v21  ;;  %v2927_v58 = vsel %vm2922_vm2, %v2909_v55, 0.0  ;;  %v7513_v11 = vld [vmem:[#allocation8 + $0xac] ss:$12 sps:$4 sm:$0xff]   ;;  %v7515_v21 = vld [vmem:[#allocation8 + $0xa8] ss:$12 sps:$4 sm:$0xff]  }
 0x487   :  { %v2928_v38 = vpack.c.bf16 %v2927_v58, %v2927_v58  ;;  %v3178_v25 = vpack.c.bf16 %v7503_v52, %v7503_v52  ;;  %5941 = vmatprep.subr.bf16.mxu0 %v7894_v26  ;;  %3639 = vmatprep.subr.bf16.mxu1 %v7513_v11 }
 0x489   :  { %2929 = vst [vmem:[#allocation11 + $0x24] sm:$0xf] %v2928_v38  ;;  %3372 = vmatmul.mubr.bf16.vlgmr.msra.gmra.mxu1 %v3178_v25  ;;  %5938 = vmatmul.mubr.bf16.vlgmr.msra.gmra.mxu0 %v3178_v25 }
 0x48a   :  { %3671 = vmatprep.mubr.bf16.mxu1 %v7895_v61  ;;  %5957 = vmatprep.mubr.msk.bf16.mxu0 %vm6726_vm4, %v7894_v26 }
 0x48b   :  { %3640 = vmatpush1.bf16.msra.mxu1 %v7515_v21  ;;  %5942 = vmatpush3.bf16.msra.mxu0 %v6334_v54 }
 0x48c   :  { %5943 = vmatprep.subr.bf16.mxu0 %v7894_v26  ;;  %3641 = vmatprep.subr.bf16.mxu1 %v7519_v30 }
 0x48f   :  { %3642 = vmatpush1.bf16.msra.mxu1 %v7522_v37  ;;  %5944 = vmatpush3.bf16.msra.mxu0 %v6338_v34  ;;  %v7906_v34 = vld [vmem:[#allocation22_spill] sm:$0xff] }
 0x490   :  { %5945 = vmatprep.subr.bf16.mxu0 %v7894_v26  ;;  %3643 = vmatprep.subr.bf16.mxu1 %v7526_v32 }
 0x493   :  { %3644 = vmatpush1.bf16.msra.mxu1 %v7529_v31  ;;  %5946 = vmatpush3.bf16.msra.mxu0 %v6342_v8 }
 0x494   :  { %5947 = vmatprep.subr.bf16.mxu0 %v7894_v26  ;;  %3645 = vmatprep.subr.bf16.mxu1 %v7533_v57 }
 0x497   :  { %3646 = vmatpush1.bf16.msra.mxu1 %v7536_v29  ;;  %5948 = vmatpush3.bf16.msra.mxu0 %v6346_v49 }
 0x498   :  { %5949 = vmatprep.subr.bf16.mxu0 %v7894_v26  ;;  %3647 = vmatprep.subr.bf16.mxu1 %v7540_v48 }
 0x49b   :  { %3648 = vmatpush1.bf16.msra.mxu1 %v7543_v51  ;;  %5950 = vmatpush3.bf16.msra.mxu0 %v6350_v43 }
 0x49c   :  { %5951 = vmatprep.subr.bf16.mxu0 %v7894_v26  ;;  %3649 = vmatprep.subr.bf16.mxu1 %v7547_v22 }
 0x49f   :  { %3650 = vmatpush1.bf16.msra.mxu1 %v7550_v10  ;;  %5952 = vmatpush3.bf16.msra.mxu0 %v6354_v40  ;;  %v7907_v40 = vld [vmem:[#allocation40_spill] sm:$0xff] }
 0x4a0   :  { %5953 = vmatprep.subr.bf16.mxu0 %v7894_v26  ;;  %3651 = vmatprep.subr.bf16.mxu1 %v7554_v23 }
 0x4a3   :  { %3652 = vmatpush1.bf16.msra.mxu1 %v7557_v53  ;;  %5954 = vmatpush3.bf16.msra.mxu0 %v6358_v39 }
 0x4a4   :  { %5955 = vmatprep.subr.bf16.mxu0 %v7894_v26  ;;  %3653 = vmatprep.subr.bf16.mxu1 %v7561_v60 }
 0x4a7   :  { %3654 = vmatpush1.bf16.msra.mxu1 %v7564_v46  ;;  %5956 = vmatpush3.bf16.msra.mxu0 %v6362_v7 }
 0x4a8   :  { %5961 = vmatprep.subr.bf16.mxu0 %v7894_v26  ;;  %3881 = vmatprep.subr.bf16.mxu1 %v7568_v36 }
 0x529   :  { %v3131_v42 = vpop.f32.mrf.mxu1  ;;  %v3172_v27 = vpop.f32.mrf.mxu0 }
 0x52a   :  { %v3420_v2 = vadd.f32 %v3131_v42, %v7903_v50  ;;  %v3434_v3 = vadd.f32 %v7445_v28, %v3172_v27 }
 0x52b   :  { %v3133_v56 = vpop.f32.mrf.mxu1  ;;  %v5919_v1 = vpop.f32.mrf.mxu0 }
 0x52c   :  { %v5437_v62 = vmul.f32 -1.442695, %v3420_v2  ;;  %v3427_v18 = vadd.f32 %v3133_v56, %v7904_v16  ;;  %v6366_v16 = vld [vmem:[#allocation9 + $0xb0] ss:$12 sps:$4 sm:$0xff]  }
 0x52d   :  { %v3135_v6 = vpop.f32.mrf.mxu1  ;;  %v3175_v35 = vpop.f32.mrf.mxu0 }
 0x52e   :  { %6507 = vpow2.f32 %v5437_v62  ;;  %v5438_v33 = vmul.f32 -1.442695, %v3427_v18 }
 0x52f   :  { %v3136_v59 = vpop.f32.mrf.mxu1  ;;  %v5920_v17 = vpop.f32.mrf.mxu0 }
 0x530   :  { %6509 = vpow2.f32 %v5438_v33  ;;  %v7586_v17 = vld [vmem:[#allocation9 + $0xa8] ss:$12 sps:$4 sm:$0xff]  }
 0x53b   :  { %v6508_v4 = vpop.eup %6507 }
 0x53c   :  { %v3424_v24 = vadd.f32 1.0, %v6508_v4  ;;  %v7590_v4 = vld [vmem:[#allocation9 + $0x94] ss:$12 sps:$4 sm:$0xff]  }
 0x53d   :  { %v6510_v13 = vpop.eup %6509 }
 0x53e   :  { %6511 = vrcp.f32 %v3424_v24  ;;  %v3431_v45 = vadd.f32 1.0, %v6510_v13  ;;  %v7597_v13 = vld [vmem:[#allocation9 + $0x7c] ss:$12 sps:$4 sm:$0xff]  }
 0x540   :  { %6513 = vrcp.f32 %v3431_v45 }
 0x549   :  { %v3373_v5 = vpop.f32.mrf.mxu1  ;;  %v3414_v63 = vpop.f32.mrf.mxu0 }
 0x54a   :  { %v3442_v12 = vadd.f32 %v3373_v5, %v7905_v47  ;;  %v3456_v5 = vadd.f32 %v7473_v9, %v3414_v63  ;;  %v6374_v47 = vld [vmem:[#allocation9 + $0x80] ss:$12 sps:$4 sm:$0xff]  }
 0x54b   :  { %v6512_v41 = vpop.eup %6511  ;;  %v3375_v44 = vpop.f32.mrf.mxu1  ;;  %v7612_v63 = vld [vmem:[#allocation9 + $0x60] ss:$12 sps:$4 sm:$0xff]  }
 0x54c   :  { %v5939_v55 = vpop.f32.mrf.mxu0  ;;  %v3435_v58 = vmul.f32 %v6512_v41, %v3434_v3  ;;  %v5439_v38 = vmul.f32 -1.442695, %v3442_v12  ;;  %v3449_v39 = vadd.f32 %v3375_v44, %v7907_v40  ;;  %v7604_v3 = vld [vmem:[#allocation9 + $0x78] ss:$12 sps:$4 sm:$0xff]   ;;  %v7630_v40 = vld [vmem:[#allocation9 + $0x1c] ss:$12 sps:$4 sm:$0xff]  }
 0x54d   :  { %v3377_v25 = vpop.f32.mrf.mxu1  ;;  %v6514_v42 = vpop.eup %6513  ;;  %v7608_v41 = vld [vmem:[#allocation9 + $0x64] ss:$12 sps:$4 sm:$0xff]   ;;  %v7908_v55 = vld [vmem:[#allocation41_spill] sm:$0xff] }
 0x54e   :  { %v3417_v54 = vpop.f32.mrf.mxu0  ;;  %v3436_v8 = vadd.f32 %v3435_v58, %v7906_v34  ;;  %6515 = vpow2.f32 %v5439_v38  ;;  %v5440_v7 = vmul.f32 -1.442695, %v3449_v39  ;;  %v3438_v2 = vsub.f32 1.0, %v6514_v42  ;;  %v6378_v38 = vld [vmem:[#allocation9 + $0x68] ss:$12 sps:$4 sm:$0xff]  }
 0x54f   :  { %v3378_v49 = vpop.f32.mrf.mxu1  ;;  %v3440_v62 = vmul.f32 %v6514_v42, %v7458_v14  ;;  %v7616_v25 = vld [vmem:[#allocation9 + $0x4c] ss:$12 sps:$4 sm:$0xff]   ;;  %v7619_v54 = vld [vmem:[#allocation9 + $0x48] ss:$12 sps:$4 sm:$0xff]   ;;  %v6382_v34 = vld [vmem:[#allocation9 + $0x50] ss:$12 sps:$4 sm:$0xff]  }
 0x550   :  { %v5940_v43 = vpop.f32.mrf.mxu0  ;;  %6517 = vtanh.f32 %v3436_v8  ;;  %v7623_v8 = vld [vmem:[#allocation9 + $0x34] ss:$12 sps:$4 sm:$0xff]   ;;  %v7626_v49 = vld [vmem:[#allocation9 + $0x30] ss:$12 sps:$4 sm:$0xff]  }
 0x551   :  { %6519 = vpow2.f32 %v5440_v7  ;;  %v6386_v43 = vld [vmem:[#allocation9 + $0x38] ss:$12 sps:$4 sm:$0xff]   ;;  %v6390_v42 = vld [vmem:[#allocation9 + $0x20] ss:$12 sps:$4 sm:$0xff]  }
 0x552   :  { %v7633_v7 = vld [vmem:[#allocation9 + $0x18] ss:$12 sps:$4 sm:$0xff]  }
 0x55b   :  { %v6516_v27 = vpop.eup %6515 }
 0x55c   :  { %v3446_v50 = vadd.f32 1.0, %v6516_v27  ;;  %v7637_v27 = vld [vmem:[#allocation9 + $0x4] ss:$12 sps:$4 sm:$0xff]  }
 0x55d   :  { %v6518_v56 = vpop.eup %6517 }
 0x55e   :  { %6521 = vrcp.f32 %v3446_v50  ;;  %v3439_v1 = vmul.f32 %v6518_v56, %v3438_v2  ;;  %v6520_v24 = vpop.eup %6519  ;;  %v7640_v56 = vld [vmem:[#allocation9] ss:$12 sps:$4 sm:$0xff]  }
 0x55f   :  { %v3453_v45 = vadd.f32 1.0, %v6520_v24 }
 0x560   :  { %v3441_v6 = vadd.f32 %v3440_v62, %v3439_v1  ;;  %v6394_v1 = vld [vmem:[#allocation9 + $0x8] ss:$12 sps:$4 sm:$0xff]  }
 0x561   :  { %6523 = vrcp.f32 %v3453_v45  ;;  %v6398_v45 = vld [vmem:[#allocation8 + $0x68] ss:$12 sps:$4 sm:$0xff]  }
 0x562   :  { %v7582_v35 = vsel %vm2922_vm2, %v3441_v6, %v7458_v14  ;;  %v3466_v59 = vsel %vm2922_vm2, %v3441_v6, 0.0  ;;  %v7593_v14 = vld [vmem:[#allocation9 + $0x90] ss:$12 sps:$4 sm:$0xff]  }
 0x563   :  { %v3467_v18 = vpack.c.bf16 %v3466_v59, %v3466_v59  ;;  %v3478_v33 = vpack.c.bf16 %v7582_v35, %v7582_v35 }
 0x565   :  { %3468 = vst [vmem:[#allocation11 + $0x20] sm:$0xf] %v3467_v18  ;;  %3672 = vmatmul.mubr.bf16.vlgmr.msra.gmra.mxu1 %v3478_v33  ;;  %5958 = vmatmul.mubr.bf16.vlgmr.msra.gmra.mxu0 %v3478_v33 }
 0x566   :  { %3882 = vmatpush1.bf16.msra.mxu1 %v7586_v17  ;;  %5962 = vmatpush3.bf16.msra.mxu0 %v6366_v16 }
 0x567   :  { %3883 = vmatprep.subr.bf16.mxu1 %v7590_v4  ;;  %5963 = vmatprep.subr.bf16.mxu0 %v7894_v26 }
 0x568   :  { %3913 = vmatprep.mubr.bf16.mxu1 %v7895_v61  ;;  %5977 = vmatprep.mubr.msk.bf16.mxu0 %vm6726_vm4, %v7894_v26 }
 0x56a   :  { %3884 = vmatpush1.bf16.msra.mxu1 %v7593_v14  ;;  %5964 = vmatpush3.bf16.msra.mxu0 %v6370_v0  ;;  %v6397_v0 = vld [vmem:[#allocation8 + $0x80] ss:$12 sps:$4 sm:$0xff]  }
 0x56b   :  { %v6522_v12 = vpop.eup %6521  ;;  %3885 = vmatprep.subr.bf16.mxu1 %v7597_v13  ;;  %5965 = vmatprep.subr.bf16.mxu0 %v7894_v26 }
 0x56c   :  { %v3457_v44 = vmul.f32 %v6522_v12, %v3456_v5  ;;  %v6399_v5 = vld [vmem:[#allocation8 + $0x50] ss:$12 sps:$4 sm:$0xff]   ;;  %v6401_v12 = vld [vmem:[#allocation8 + $0x20] ss:$12 sps:$4 sm:$0xff]  }
 0x56e   :  { %v3458_v58 = vadd.f32 %v3457_v44, %v7908_v55  ;;  %3886 = vmatpush1.bf16.msra.mxu1 %v7604_v3  ;;  %5966 = vmatpush3.bf16.msra.mxu0 %v6374_v47  ;;  %v6524_v39 = vpop.eup %6523  ;;  %v6400_v47 = vld [vmem:[#allocation8 + $0x38] ss:$12 sps:$4 sm:$0xff]   ;;  %v6402_v44 = vld [vmem:[#allocation8 + $0x8] ss:$12 sps:$4 sm:$0xff]  }
 0x56f   :  { %3887 = vmatprep.subr.bf16.mxu1 %v7608_v41  ;;  %5967 = vmatprep.subr.bf16.mxu0 %v7894_v26  ;;  %v3460_v50 = vsub.f32 1.0, %v6524_v39  ;;  %v3462_v6 = vmul.f32 %v6524_v39, %v7503_v52 }
 0x570   :  { %6525 = vtanh.f32 %v3458_v58 }
 0x572   :  { %3888 = vmatpush1.bf16.msra.mxu1 %v7612_v63  ;;  %5968 = vmatpush3.bf16.msra.mxu0 %v6378_v38  ;;  %v7909_v38 = vld [vmem:[#allocation25_spill] sm:$0xff] }
 0x573   :  { %3889 = vmatprep.subr.bf16.mxu1 %v7616_v25  ;;  %5969 = vmatprep.subr.bf16.mxu0 %v7894_v26 }
 0x576   :  { %3890 = vmatpush1.bf16.msra.mxu1 %v7619_v54  ;;  %5970 = vmatpush3.bf16.msra.mxu0 %v6382_v34 }
 0x577   :  { %3891 = vmatprep.subr.bf16.mxu1 %v7623_v8  ;;  %5971 = vmatprep.subr.bf16.mxu0 %v7894_v26 }
 0x57a   :  { %3892 = vmatpush1.bf16.msra.mxu1 %v7626_v49  ;;  %5972 = vmatpush3.bf16.msra.mxu0 %v6386_v43 }
 0x57b   :  { %3893 = vmatprep.subr.bf16.mxu1 %v7630_v40  ;;  %5973 = vmatprep.subr.bf16.mxu0 %v7894_v26 }
 0x57d   :  { %v6526_v2 = vpop.eup %6525 }
 0x57e   :  { %3894 = vmatpush1.bf16.msra.mxu1 %v7633_v7  ;;  %5974 = vmatpush3.bf16.msra.mxu0 %v6390_v42  ;;  %v3461_v62 = vmul.f32 %v6526_v2, %v3460_v50 }
 0x57f   :  { %3895 = vmatprep.subr.bf16.mxu1 %v7637_v27  ;;  %5975 = vmatprep.subr.bf16.mxu0 %v7894_v26 }
 0x580   :  { %v3463_v59 = vadd.f32 %v3462_v6, %v3461_v62  ;;  %v7910_v6 = vld [vmem:[#allocation27_spill] sm:$0xff] }
 0x582   :  { %3896 = vmatpush1.bf16.msra.mxu1 %v7640_v56  ;;  %5976 = vmatpush3.bf16.msra.mxu0 %v6394_v1  ;;  %v7649_v16 = vsel %vm2916_vm1, %v3463_v59, %v7503_v52  ;;  %v3469_v18 = vsel %vm2916_vm1, %v3463_v59, 0.0  ;;  %v6396_v52 = vld [vmem:[#allocation8 + $0x98] ss:$12 sps:$4 sm:$0xff]  }
 0x583   :  { %v3470_v33 = vpack.c.bf16 %v3469_v18, %v3469_v18  ;;  %v3720_v24 = vpack.c.bf16 %v7649_v16, %v7649_v16  ;;  %4181 = vmatprep.subr.bf16.mxu1 %v7513_v11  ;;  %5981 = vmatprep.subr.bf16.mxu0 %v7894_v26 }
 0x585   :  { %3471 = vst [vmem:[#allocation11 + $0x1c] sm:$0xf] %v3470_v33  ;;  %3914 = vmatmul.mubr.bf16.vlgmr.msra.gmra.mxu1 %v3720_v24  ;;  %5978 = vmatmul.mubr.bf16.vlgmr.msra.gmra.mxu0 %v3720_v24 }
 0x586   :  { %4182 = vmatpush1.bf16.msra.mxu1 %v7515_v21  ;;  %4213 = vmatprep.mubr.bf16.mxu1 %v7895_v61 }
 0x587   :  { %4183 = vmatprep.subr.bf16.mxu1 %v7519_v30  ;;  %5997 = vmatprep.mubr.msk.bf16.mxu0 %vm6726_vm4, %v7894_v26 }
 0x588   :  { %5982 = vmatpush3.bf16.msra.mxu0 %v6395_v19 }
 0x589   :  { %5983 = vmatprep.subr.bf16.mxu0 %v7894_v26 }
 0x58a   :  { %4184 = vmatpush1.bf16.msra.mxu1 %v7522_v37 }
 0x58b   :  { %4185 = vmatprep.subr.bf16.mxu1 %v7526_v32 }
 0x58c   :  { %5984 = vmatpush3.bf16.msra.mxu0 %v6396_v52 }
 0x58d   :  { %5985 = vmatprep.subr.bf16.mxu0 %v7894_v26 }
 0x58e   :  { %4186 = vmatpush1.bf16.msra.mxu1 %v7529_v31 }
 0x58f   :  { %4187 = vmatprep.subr.bf16.mxu1 %v7533_v57 }
 0x590   :  { %5986 = vmatpush3.bf16.msra.mxu0 %v6397_v0 }
 0x591   :  { %5987 = vmatprep.subr.bf16.mxu0 %v7894_v26 }
 0x592   :  { %4188 = vmatpush1.bf16.msra.mxu1 %v7536_v29 }
 0x593   :  { %4189 = vmatprep.subr.bf16.mxu1 %v7540_v48 }
 0x594   :  { %5988 = vmatpush3.bf16.msra.mxu0 %v6398_v45 }
 0x595   :  { %5989 = vmatprep.subr.bf16.mxu0 %v7894_v26 }
 0x596   :  { %4190 = vmatpush1.bf16.msra.mxu1 %v7543_v51 }
 0x597   :  { %4191 = vmatprep.subr.bf16.mxu1 %v7547_v22 }
 0x598   :  { %5990 = vmatpush3.bf16.msra.mxu0 %v6399_v5 }
 0x599   :  { %5991 = vmatprep.subr.bf16.mxu0 %v7894_v26 }
 0x59a   :  { %4192 = vmatpush1.bf16.msra.mxu1 %v7550_v10 }
 0x59b   :  { %4193 = vmatprep.subr.bf16.mxu1 %v7554_v23 }
 0x59c   :  { %5992 = vmatpush3.bf16.msra.mxu0 %v6400_v47  ;;  %v7911_v47 = vld [vmem:[#allocation18_spill] sm:$0xff] }
 0x59d   :  { %5993 = vmatprep.subr.bf16.mxu0 %v7894_v26 }
 0x59e   :  { %4194 = vmatpush1.bf16.msra.mxu1 %v7557_v53 }
 0x59f   :  { %4195 = vmatprep.subr.bf16.mxu1 %v7561_v60 }
 0x5a0   :  { %5994 = vmatpush3.bf16.msra.mxu0 %v6401_v12 }
 0x5a1   :  { %5995 = vmatprep.subr.bf16.mxu0 %v7894_v26 }
 0x5a2   :  { %4196 = vmatpush1.bf16.msra.mxu1 %v7564_v46 }
 0x5a3   :  { %4423 = vmatprep.subr.bf16.mxu1 %v7568_v36 }
 0x5a4   :  { %5996 = vmatpush3.bf16.msra.mxu0 %v6402_v44 }
 0x5a5   :  { %6001 = vmatprep.subr.bf16.mxu0 %v7894_v26 }
 0x625   :  { %v3673_v55 = vpop.f32.mrf.mxu1  ;;  %v3714_v58 = vpop.f32.mrf.mxu0 }
 0x626   :  { %v3962_v34 = vadd.f32 %v3673_v55, %v7909_v38  ;;  %v3976_v5 = vadd.f32 %v7445_v28, %v3714_v58 }
 0x627   :  { %v3675_v43 = vpop.f32.mrf.mxu1  ;;  %v5959_v39 = vpop.f32.mrf.mxu0 }
 0x628   :  { %v5489_v42 = vmul.f32 -1.442695, %v3962_v34  ;;  %v3969_v59 = vadd.f32 %v3675_v43, %v7910_v6  ;;  %v7913_v6 = vld [vmem:[#allocation38_spill] sm:$0xff] }
 0x629   :  { %v3677_v50 = vpop.f32.mrf.mxu1  ;;  %v3717_v2 = vpop.f32.mrf.mxu0 }
 0x62a   :  { %6527 = vpow2.f32 %v5489_v42  ;;  %v5490_v18 = vmul.f32 -1.442695, %v3969_v59  ;;  %v7912_v50 = vld [vmem:[#allocation26_spill] sm:$0xff] }
 0x62b   :  { %v3678_v1 = vpop.f32.mrf.mxu1  ;;  %v5960_v62 = vpop.f32.mrf.mxu0 }
 0x62c   :  { %6529 = vpow2.f32 %v5490_v18 }
 0x637   :  { %v6528_v33 = vpop.eup %6527 }
 0x638   :  { %v3966_v24 = vadd.f32 1.0, %v6528_v33 }
 0x639   :  { %v6530_v19 = vpop.eup %6529 }
 0x63a   :  { %6531 = vrcp.f32 %v3966_v24  ;;  %v3973_v52 = vadd.f32 1.0, %v6530_v19 }
 0x63c   :  { %6533 = vrcp.f32 %v3973_v52 }
 0x645   :  { %v3915_v0 = vpop.f32.mrf.mxu1  ;;  %v3956_v45 = vpop.f32.mrf.mxu0 }
 0x646   :  { %v3984_v12 = vadd.f32 %v3915_v0, %v7911_v47  ;;  %v3998_v15 = vadd.f32 %v7473_v9, %v3956_v45  ;;  %v6407_v9 = vld [vmem:[#allocation9 + $0x50] ss:$12 sps:$4 sm:$0xff]   ;;  %v6408_v45 = vld [vmem:[#allocation9 + $0x38] ss:$12 sps:$4 sm:$0xff]  }
 0x647   :  { %v6532_v44 = vpop.eup %6531  ;;  %v3917_v55 = vpop.f32.mrf.mxu1 }
 0x648   :  { %v5979_v38 = vpop.f32.mrf.mxu0  ;;  %v3977_v34 = vmul.f32 %v6532_v44, %v3976_v5  ;;  %v5491_v39 = vmul.f32 -1.442695, %v3984_v12  ;;  %v3991_v59 = vadd.f32 %v3917_v55, %v7913_v6  ;;  %v6403_v44 = vld [vmem:[#allocation9 + $0xb0] ss:$12 sps:$4 sm:$0xff]  }
 0x649   :  { %v3919_v43 = vpop.f32.mrf.mxu1  ;;  %v6534_v28 = vpop.eup %6533 }
 0x64a   :  { %v3959_v42 = vpop.f32.mrf.mxu0  ;;  %v3978_v2 = vadd.f32 %v3977_v34, %v7912_v50  ;;  %6535 = vpow2.f32 %v5491_v39  ;;  %v5492_v18 = vmul.f32 -1.442695, %v3991_v59  ;;  %v3980_v24 = vsub.f32 1.0, %v6534_v28  ;;  %v6404_v39 = vld [vmem:[#allocation9 + $0x98] ss:$12 sps:$4 sm:$0xff]  }
 0x64b   :  { %v3920_v1 = vpop.f32.mrf.mxu1  ;;  %v3982_v0 = vmul.f32 %v6534_v28, %v7582_v35  ;;  %v6405_v43 = vld [vmem:[#allocation9 + $0x80] ss:$12 sps:$4 sm:$0xff]  }
 0x64c   :  { %v5980_v62 = vpop.f32.mrf.mxu0  ;;  %6537 = vtanh.f32 %v3978_v2  ;;  %v7914_v2 = vld [vmem:[#allocation39_spill] sm:$0xff]  ;;  %v6409_v59 = vld [vmem:[#allocation9 + $0x20] ss:$12 sps:$4 sm:$0xff]  }
 0x64d   :  { %6539 = vpow2.f32 %v5492_v18  ;;  %v6406_v62 = vld [vmem:[#allocation9 + $0x68] ss:$12 sps:$4 sm:$0xff]  }
 0x657   :  { %v6536_v58 = vpop.eup %6535 }
 0x658   :  { %v3988_v33 = vadd.f32 1.0, %v6536_v58  ;;  %v6410_v58 = vld [vmem:[#allocation9 + $0x8] ss:$12 sps:$4 sm:$0xff]  }
 0x659   :  { %v6538_v19 = vpop.eup %6537 }
 0x65a   :  { %6541 = vrcp.f32 %v3988_v33  ;;  %v3981_v52 = vmul.f32 %v6538_v19, %v3980_v24  ;;  %v6540_v34 = vpop.eup %6539 }
 0x65c   :  { %v3983_v5 = vadd.f32 %v3982_v0, %v3981_v52 }
 0x65e   :  { %v7694_v47 = vsel %vm2368_vm0, %v3983_v5, %v7582_v35  ;;  %v4008_v12 = vsel %vm2368_vm0, %v3983_v5, 0.0  ;;  %v3995_v35 = vadd.f32 1.0, %v6540_v34 }
 0x65f   :  { %v4009_v55 = vpack.c.bf16 %v4008_v12, %v4008_v12  ;;  %v4020_v38 = vpack.c.bf16 %v7694_v47, %v7694_v47 }
 0x660   :  { %6543 = vrcp.f32 %v3995_v35 }
 0x661   :  { %4010 = vst [vmem:[#allocation11 + $0x28] sm:$0xf] %v4009_v55  ;;  %4214 = vmatmul.mubr.bf16.vlgmr.msra.gmra.mxu1 %v4020_v38  ;;  %5998 = vmatmul.mubr.bf16.vlgmr.msra.gmra.mxu0 %v4020_v38 }
 0x662   :  { %4424 = vmatpush1.bf16.msra.mxu1 %v7586_v17  ;;  %6002 = vmatpush3.bf16.msra.mxu0 %v6403_v44  ;;  %v7916_v44 = vld [vmem:[#allocation30_spill] sm:$0xff] }
 0x663   :  { %4425 = vmatprep.subr.bf16.mxu1 %v7590_v4  ;;  %6003 = vmatprep.subr.bf16.mxu0 %v7894_v26 }
 0x664   :  { %4455 = vmatprep.mubr.bf16.mxu1 %v7895_v61  ;;  %6017 = vmatprep.mubr.msk.bf16.mxu0 %vm6726_vm4, %v7894_v26 }
 0x666   :  { %4426 = vmatpush1.bf16.msra.mxu1 %v7593_v14  ;;  %6004 = vmatpush3.bf16.msra.mxu0 %v6404_v39 }
 0x667   :  { %v6542_v42 = vpop.eup %6541  ;;  %4427 = vmatprep.subr.bf16.mxu1 %v7597_v13  ;;  %6005 = vmatprep.subr.bf16.mxu0 %v7894_v26 }
 0x668   :  { %v3999_v50 = vmul.f32 %v6542_v42, %v3998_v15 }
 0x66a   :  { %v4000_v1 = vadd.f32 %v3999_v50, %v7914_v2  ;;  %4428 = vmatpush1.bf16.msra.mxu1 %v7604_v3  ;;  %6006 = vmatpush3.bf16.msra.mxu0 %v6405_v43  ;;  %v7771_v50 = vld [vmem:[%s7851_s5] ss:$0 sm:$0xff] }
 0x66b   :  { %4429 = vmatprep.subr.bf16.mxu1 %v7608_v41  ;;  %6007 = vmatprep.subr.bf16.mxu0 %v7894_v26 }
 0x66c   :  { %6545 = vtanh.f32 %v4000_v1  ;;  %v7917_v1 = vld [vmem:[#allocation17_spill] sm:$0xff] }
 0x66d   :  { %v6544_v6 = vpop.eup %6543 }
 0x66e   :  { %4430 = vmatpush1.bf16.msra.mxu1 %v7612_v63  ;;  %6008 = vmatpush3.bf16.msra.mxu0 %v6406_v62  ;;  %v4002_v18 = vsub.f32 1.0, %v6544_v6  ;;  %v4004_v24 = vmul.f32 %v6544_v6, %v7649_v16 }
 0x66f   :  { %4431 = vmatprep.subr.bf16.mxu1 %v7616_v25  ;;  %6009 = vmatprep.subr.bf16.mxu0 %v7894_v26 }
 0x672   :  { %4432 = vmatpush1.bf16.msra.mxu1 %v7619_v54  ;;  %6010 = vmatpush3.bf16.msra.mxu0 %v6407_v9 }
 0x673   :  { %4433 = vmatprep.subr.bf16.mxu1 %v7623_v8  ;;  %6011 = vmatprep.subr.bf16.mxu0 %v7894_v26 }
 0x676   :  { %4434 = vmatpush1.bf16.msra.mxu1 %v7626_v49  ;;  %6012 = vmatpush3.bf16.msra.mxu0 %v6408_v45 }
 0x677   :  { %4435 = vmatprep.subr.bf16.mxu1 %v7630_v40  ;;  %6013 = vmatprep.subr.bf16.mxu0 %v7894_v26 }
 0x679   :  { %v6546_v28 = vpop.eup %6545 }
 0x67a   :  { %4436 = vmatpush1.bf16.msra.mxu1 %v7633_v7  ;;  %6014 = vmatpush3.bf16.msra.mxu0 %v6409_v59  ;;  %v4003_v33 = vmul.f32 %v6546_v28, %v4002_v18 }
 0x67b   :  { %4437 = vmatprep.subr.bf16.mxu1 %v7637_v27  ;;  %6015 = vmatprep.subr.bf16.mxu0 %v7894_v26 }
 0x67c   :  { %v4005_v19 = vadd.f32 %v4004_v24, %v4003_v33  ;;  %v7918_v33 = vld [vmem:[#allocation29_spill] sm:$0xff] }
 0x67e   :  { %4438 = vmatpush1.bf16.msra.mxu1 %v7640_v56  ;;  %6016 = vmatpush3.bf16.msra.mxu0 %v6410_v58  ;;  %v7731_v52 = vsel %vm2362_vm15, %v4005_v19, %v7649_v16  ;;  %v4011_v0 = vsel %vm2362_vm15, %v4005_v19, 0.0 }
 0x67f   :  { %v4012_v5 = vpack.c.bf16 %v4011_v0, %v4011_v0  ;;  %v4262_v12 = vpack.c.bf16 %v7731_v52, %v7731_v52  ;;  %4723 = vmatprep.subr.bf16.mxu1 %v7513_v11  ;;  %6021 = vmatprep.subr.bf16.mxu0 %v7894_v26  ;;  %v6412_v11 = vld [vmem:[#allocation8 + $0x98] ss:$12 sps:$4 sm:$0xff]  }
 0x681   :  { %4013 = vst [vmem:[#allocation11 + $0x14] sm:$0xf] %v4012_v5  ;;  %4456 = vmatmul.mubr.bf16.vlgmr.msra.gmra.mxu1 %v4262_v12  ;;  %6018 = vmatmul.mubr.bf16.vlgmr.msra.gmra.mxu0 %v4262_v12  ;;  %v7919_v5 = vld [vmem:[#allocation36_spill] sm:$0xff] }
 0x682   :  { %4724 = vmatpush1.bf16.msra.mxu1 %v7515_v21  ;;  %4755 = vmatprep.mubr.bf16.mxu1 %v7895_v61  ;;  %v6413_v21 = vld [vmem:[#allocation8 + $0x80] ss:$12 sps:$4 sm:$0xff]  }
 0x683   :  { %4725 = vmatprep.subr.bf16.mxu1 %v7519_v30  ;;  %6037 = vmatprep.mubr.msk.bf16.mxu0 %vm6726_vm4, %v7894_v26  ;;  %v6414_v30 = vld [vmem:[#allocation8 + $0x68] ss:$12 sps:$4 sm:$0xff]  }
 0x684   :  { %6022 = vmatpush3.bf16.msra.mxu0 %v6411_v20 }
 0x685   :  { %6023 = vmatprep.subr.bf16.mxu0 %v7894_v26 }
 0x686   :  { %4726 = vmatpush1.bf16.msra.mxu1 %v7522_v37  ;;  %v6415_v37 = vld [vmem:[#allocation8 + $0x50] ss:$12 sps:$4 sm:$0xff]  }
 0x687   :  { %4727 = vmatprep.subr.bf16.mxu1 %v7526_v32  ;;  %v6416_v32 = vld [vmem:[#allocation8 + $0x38] ss:$12 sps:$4 sm:$0xff]  }
 0x688   :  { %6024 = vmatpush3.bf16.msra.mxu0 %v6412_v11 }
 0x689   :  { %6025 = vmatprep.subr.bf16.mxu0 %v7894_v26 }
 0x68a   :  { %4728 = vmatpush1.bf16.msra.mxu1 %v7529_v31  ;;  %v6417_v31 = vld [vmem:[#allocation8 + $0x20] ss:$12 sps:$4 sm:$0xff]  }
 0x68b   :  { %4729 = vmatprep.subr.bf16.mxu1 %v7533_v57  ;;  %v6418_v57 = vld [vmem:[#allocation8 + $0x8] ss:$12 sps:$4 sm:$0xff]  }
 0x68c   :  { %6026 = vmatpush3.bf16.msra.mxu0 %v6413_v21 }
 0x68d   :  { %6027 = vmatprep.subr.bf16.mxu0 %v7894_v26 }
 0x68e   :  { %4730 = vmatpush1.bf16.msra.mxu1 %v7536_v29 }
 0x68f   :  { %4731 = vmatprep.subr.bf16.mxu1 %v7540_v48 }
 0x690   :  { %6028 = vmatpush3.bf16.msra.mxu0 %v6414_v30 }
 0x691   :  { %6029 = vmatprep.subr.bf16.mxu0 %v7894_v26 }
 0x692   :  { %4732 = vmatpush1.bf16.msra.mxu1 %v7543_v51  ;;  %v7915_v51 = vld [vmem:[#allocation28_spill] sm:$0xff] }
 0x693   :  { %4733 = vmatprep.subr.bf16.mxu1 %v7547_v22 }
 0x694   :  { %6030 = vmatpush3.bf16.msra.mxu0 %v6415_v37 }
 0x695   :  { %6031 = vmatprep.subr.bf16.mxu0 %v7894_v26 }
 0x696   :  { %4734 = vmatpush1.bf16.msra.mxu1 %v7550_v10 }
 0x697   :  { %4735 = vmatprep.subr.bf16.mxu1 %v7554_v23 }
 0x698   :  { %6032 = vmatpush3.bf16.msra.mxu0 %v6416_v32 }
 0x699   :  { %6033 = vmatprep.subr.bf16.mxu0 %v7894_v26 }
 0x69a   :  { %4736 = vmatpush1.bf16.msra.mxu1 %v7557_v53 }
 0x69b   :  { %4737 = vmatprep.subr.bf16.mxu1 %v7561_v60 }
 0x69c   :  { %6034 = vmatpush3.bf16.msra.mxu0 %v6417_v31 }
 0x69d   :  { %6035 = vmatprep.subr.bf16.mxu0 %v7894_v26 }
 0x69e   :  { %4738 = vmatpush1.bf16.msra.mxu1 %v7564_v46 }
 0x69f   :  { %4965 = vmatprep.subr.bf16.mxu1 %v7568_v36 }
 0x6a0   :  { %6036 = vmatpush3.bf16.msra.mxu0 %v6418_v57 }
 0x6a1   :  { %6041 = vmatprep.subr.bf16.mxu0 %v7894_v26 }
 0x721   :  { %v4215_v29 = vpop.f32.mrf.mxu1  ;;  %v4256_v48 = vpop.f32.mrf.mxu0 }
 0x722   :  { %v4504_v22 = vadd.f32 %v4215_v29, %v7915_v51  ;;  %v4518_v2 = vadd.f32 %v7771_v50, %v4256_v48 }
 0x723   :  { %v4217_v10 = vpop.f32.mrf.mxu1  ;;  %v5999_v23 = vpop.f32.mrf.mxu0 }
 0x724   :  { %v5541_v53 = vmul.f32 -1.442695, %v4504_v22  ;;  %v4511_v55 = vadd.f32 %v4217_v10, %v7916_v44  ;;  %v6419_v10 = vld [vmem:[#allocation9 + $0xb0] ss:$12 sps:$4 sm:$0xff]   ;;  %v7921_v44 = vld [vmem:[#allocation37_spill] sm:$0xff] }
 0x725   :  { %v4219_v60 = vpop.f32.mrf.mxu1  ;;  %v4259_v46 = vpop.f32.mrf.mxu0 }
 0x726   :  { %6547 = vpow2.f32 %v5541_v53  ;;  %v5542_v38 = vmul.f32 -1.442695, %v4511_v55  ;;  %v6420_v46 = vld [vmem:[#allocation9 + $0x98] ss:$12 sps:$4 sm:$0xff]  }
 0x727   :  { %v4220_v36 = vpop.f32.mrf.mxu1  ;;  %v6000_v16 = vpop.f32.mrf.mxu0 }
 0x728   :  { %6549 = vpow2.f32 %v5542_v38  ;;  %v7796_v36 = vld [vmem:[%s7853_s7] ss:$0 sm:$0xff]  ;;  %v6422_v38 = vld [vmem:[#allocation9 + $0x68] ss:$12 sps:$4 sm:$0xff]   ;;  %s6727_s7 = smov [#allocation11]  }
 0x729   :  { %s5101_s18 = sshll.u32 %s6727_s7, 4  ;;  %s5102_s18 = int_to_ptr.vmem [resolvable:$true] %s5101_s18 }
 0x72a   :  { %s6686_s19 = scalar_lea.vmem %s5102_s18, 1024  ;;  %p6691_p7 = scmp.lt.s32.totalorder %s5102_s18, %s5102_s18 }
 0x72b   :  { %p6687_p6 = scmp.ne.s32.totalorder %s5102_s18, %s6686_s19  ;;  %p6692_p8 = scmp.lt.s32.totalorder %s6686_s19, %s6686_s19 }
 0x72d   :  { %p6693_p9 = por %p6692_p8, %p6691_p7 }
 0x72f   :  { %p6694_p10 = pnand %p6693_p9, %p6687_p6 }
 0x733   :  { %v6548_v34 = vpop.eup %6547 }
 0x734   :  { %v4508_v39 = vadd.f32 1.0, %v6548_v34 }
 0x735   :  { %v6550_v35 = vpop.eup %6549 }
 0x736   :  { %6551 = vrcp.f32 %v4508_v39  ;;  %v4515_v15 = vadd.f32 1.0, %v6550_v35 }
 0x738   :  { %6553 = vrcp.f32 %v4515_v15 }
 0x741   :  { %v4457_v43 = vpop.f32.mrf.mxu1  ;;  %v4498_v42 = vpop.f32.mrf.mxu0 }
 0x742   :  { %v4526_v62 = vadd.f32 %v4457_v43, %v7917_v1  ;;  %v4540_v16 = vadd.f32 %v7796_v36, %v4498_v42  ;;  %v7923_v43 = vld [vmem:[#allocation31_spill] sm:$0xff] }
 0x743   :  { %v6552_v9 = vpop.eup %6551  ;;  %v4459_v45 = vpop.f32.mrf.mxu1 }
 0x744   :  { %v6019_v6 = vpop.f32.mrf.mxu0  ;;  %v4519_v59 = vmul.f32 %v6552_v9, %v4518_v2  ;;  %v5543_v18 = vmul.f32 -1.442695, %v4526_v62  ;;  %v4533_v12 = vadd.f32 %v4459_v45, %v7919_v5 }
 0x745   :  { %v4461_v28 = vpop.f32.mrf.mxu1  ;;  %v6554_v11 = vpop.eup %6553  ;;  %v7924_v6 = vld [vmem:[#allocation33_spill] sm:$0xff] }
 0x746   :  { %v4501_v58 = vpop.f32.mrf.mxu0  ;;  %v4520_v24 = vadd.f32 %v4519_v59, %v7918_v33  ;;  %6555 = vpow2.f32 %v5543_v18  ;;  %v5544_v20 = vmul.f32 -1.442695, %v4533_v12  ;;  %v4522_v37 = vsub.f32 1.0, %v6554_v11  ;;  %v7925_v12 = vld [vmem:[#allocation16_spill] sm:$0xff] }
 0x747   :  { %v4462_v19 = vpop.f32.mrf.mxu1  ;;  %v4524_v57 = vmul.f32 %v6554_v11, %v7694_v47 }
 0x748   :  { %v6020_v0 = vpop.f32.mrf.mxu0  ;;  %6557 = vtanh.f32 %v4520_v24 }
 0x749   :  { %6559 = vpow2.f32 %v5544_v20 }
 0x753   :  { %v6556_v21 = vpop.eup %6555 }
 0x754   :  { %v4530_v30 = vadd.f32 1.0, %v6556_v21 }
 0x755   :  { %v6558_v32 = vpop.eup %6557 }
 0x756   :  { %6561 = vrcp.f32 %v4530_v30  ;;  %v4523_v31 = vmul.f32 %v6558_v32, %v4522_v37  ;;  %v6560_v60 = vpop.eup %6559 }
 0x758   :  { %v4525_v29 = vadd.f32 %v4524_v57, %v4523_v31 }
 0x75a   :  { %v7781_v51 = vsel %vm1814_vm14, %v4525_v29, %v7694_v47  ;;  %v4550_v22 = vsel %vm1814_vm14, %v4525_v29, 0.0  ;;  %v4537_v47 = vadd.f32 1.0, %v6560_v60  ;;  %v7926_v29 = vld [vmem:[#allocation32_spill] sm:$0xff] }
 0x75b   :  { %v4551_v23 = vpack.c.bf16 %v4550_v22, %v4550_v22  ;;  %v4562_v53 = vpack.c.bf16 %v7781_v51, %v7781_v51 }
 0x75c   :  { %6563 = vrcp.f32 %v4537_v47 }
 0x75d   :  { %4552 = vst [vmem:[#allocation11 + $0x30] sm:$0xf] %v4551_v23  ;;  %4756 = vmatmul.mubr.bf16.vlgmr.msra.gmra.mxu1 %v4562_v53  ;;  %6038 = vmatmul.mubr.bf16.vlgmr.msra.gmra.mxu0 %v4562_v53  ;;  %v7927_v23 = vld [vmem:[#allocation34_spill] sm:$0xff] }
 0x75e   :  { %4966 = vmatpush1.bf16.msra.mxu1 %v7586_v17  ;;  %6042 = vmatpush3.bf16.msra.mxu0 %v6419_v10  ;;  %v6421_v17 = vld [vmem:[#allocation9 + $0x80] ss:$12 sps:$4 sm:$0xff]  }
 0x75f   :  { %4967 = vmatprep.subr.bf16.mxu1 %v7590_v4  ;;  %6043 = vmatprep.subr.bf16.mxu0 %v7894_v26 }
 0x760   :  { %4997 = vmatprep.mubr.bf16.mxu1 %v7895_v61  ;;  %6057 = vmatprep.mubr.msk.bf16.mxu0 %vm6726_vm4, %v7894_v26 }
 0x762   :  { %4968 = vmatpush1.bf16.msra.mxu1 %v7593_v14  ;;  %6044 = vmatpush3.bf16.msra.mxu0 %v6420_v46  ;;  %v6423_v14 = vld [vmem:[#allocation9 + $0x50] ss:$12 sps:$4 sm:$0xff]  }
 0x763   :  { %v6562_v4 = vpop.eup %6561  ;;  %4969 = vmatprep.subr.bf16.mxu1 %v7597_v13  ;;  %6045 = vmatprep.subr.bf16.mxu0 %v7894_v26  ;;  %v6424_v13 = vld [vmem:[#allocation9 + $0x38] ss:$12 sps:$4 sm:$0xff]  }
 0x764   :  { %v4541_v61 = vmul.f32 %v6562_v4, %v4540_v16 }
 0x766   :  { %v4542_v55 = vadd.f32 %v4541_v61, %v7921_v44  ;;  %4970 = vmatpush1.bf16.msra.mxu1 %v7604_v3  ;;  %6046 = vmatpush3.bf16.msra.mxu0 %v6421_v17 }
 0x767   :  { %4971 = vmatprep.subr.bf16.mxu1 %v7608_v41  ;;  %6047 = vmatprep.subr.bf16.mxu0 %v7894_v26  ;;  %v6425_v41 = vld [vmem:[#allocation9 + $0x20] ss:$12 sps:$4 sm:$0xff]  }
 0x768   :  { %6565 = vtanh.f32 %v4542_v55 }
 0x769   :  { %v6564_v3 = vpop.eup %6563 }
 0x76a   :  { %4972 = vmatpush1.bf16.msra.mxu1 %v7612_v63  ;;  %6048 = vmatpush3.bf16.msra.mxu0 %v6422_v38  ;;  %v4544_v63 = vsub.f32 1.0, %v6564_v3 }
 0x76b   :  { %4973 = vmatprep.subr.bf16.mxu1 %v7616_v25  ;;  %6049 = vmatprep.subr.bf16.mxu0 %v7894_v26 }
 0x76e   :  { %4974 = vmatpush1.bf16.msra.mxu1 %v7619_v54  ;;  %6050 = vmatpush3.bf16.msra.mxu0 %v6423_v14  ;;  %v6426_v54 = vld [vmem:[#allocation9 + $0x8] ss:$12 sps:$4 sm:$0xff]  }
 0x76f   :  { %4975 = vmatprep.subr.bf16.mxu1 %v7623_v8  ;;  %6051 = vmatprep.subr.bf16.mxu0 %v7894_v26  ;;  %v4546_v8 = vmul.f32 %v6564_v3, %v7731_v52 }
 0x772   :  { %4976 = vmatpush1.bf16.msra.mxu1 %v7626_v49  ;;  %6052 = vmatpush3.bf16.msra.mxu0 %v6424_v13 }
 0x773   :  { %4977 = vmatprep.subr.bf16.mxu1 %v7630_v40  ;;  %6053 = vmatprep.subr.bf16.mxu0 %v7894_v26 }
 0x775   :  { %v6566_v25 = vpop.eup %6565 }
 0x776   :  { %4978 = vmatpush1.bf16.msra.mxu1 %v7633_v7  ;;  %6054 = vmatpush3.bf16.msra.mxu0 %v6425_v41  ;;  %v4545_v34 = vmul.f32 %v6566_v25, %v4544_v63 }
 0x777   :  { %4979 = vmatprep.subr.bf16.mxu1 %v7637_v27  ;;  %6055 = vmatprep.subr.bf16.mxu0 %v7894_v26 }
 0x778   :  { %v4547_v49 = vadd.f32 %v4546_v8, %v4545_v34 }
 0x77a   :  { %4980 = vmatpush1.bf16.msra.mxu1 %v7640_v56  ;;  %6056 = vmatpush3.bf16.msra.mxu0 %v6426_v54  ;;  %v7823_v39 = vsel %vm1808_vm13, %v4547_v49, %v7731_v52  ;;  %v4553_v7 = vsel %vm1808_vm13, %v4547_v49, 0.0  ;;  %v7929_v54 = vld [vmem:[#allocation35_spill] sm:$0xff] }
 0x77b   :  { %v4554_v35 = vpack.c.bf16 %v4553_v7, %v4553_v7  ;;  %v4804_v15 = vpack.c.bf16 %v7823_v39, %v7823_v39 }
 0x77d   :  { %4555 = vst [vmem:[#allocation11 + $0xc] sm:$0xf] %v4554_v35  ;;  %4998 = vmatmul.mubr.bf16.vlgmr.msra.gmra.mxu1 %v4804_v15  ;;  %6058 = vmatmul.mubr.bf16.vlgmr.msra.gmra.mxu0 %v4804_v15 }
 0x81d   :  { %v4757_v26 = vpop.f32.mrf.mxu1  ;;  %v4798_v27 = vpop.f32.mrf.mxu0 }
 0x81e   :  { %v5046_v56 = vadd.f32 %v4757_v26, %v7923_v43  ;;  %v5060_v5 = vadd.f32 %v7771_v50, %v4798_v27 }
 0x81f   :  { %v4759_v42 = vpop.f32.mrf.mxu1  ;;  %v6039_v2 = vpop.f32.mrf.mxu0 }
 0x820   :  { %v5593_v1 = vmul.f32 -1.442695, %v5046_v56  ;;  %v5053_v59 = vadd.f32 %v4759_v42, %v7924_v6 }
 0x821   :  { %v4761_v62 = vpop.f32.mrf.mxu1  ;;  %v4801_v52 = vpop.f32.mrf.mxu0 }
 0x822   :  { %6567 = vpow2.f32 %v5593_v1  ;;  %v5594_v18 = vmul.f32 -1.442695, %v5053_v59 }
 0x823   :  { %v4762_v9 = vpop.f32.mrf.mxu1  ;;  %v6040_v45 = vpop.f32.mrf.mxu0 }
 0x824   :  { %6569 = vpow2.f32 %v5594_v18 }
 0x82f   :  { %v6568_v28 = vpop.eup %6567 }
 0x830   :  { %v5050_v58 = vadd.f32 1.0, %v6568_v28 }
 0x831   :  { %v6570_v33 = vpop.eup %6569 }
 0x832   :  { %6571 = vrcp.f32 %v5050_v58  ;;  %v5057_v24 = vadd.f32 1.0, %v6570_v33 }
 0x834   :  { %6573 = vrcp.f32 %v5057_v24 }
 0x83d   :  { %v4999_v19 = vpop.f32.mrf.mxu1  ;;  %v5040_v0 = vpop.f32.mrf.mxu0 }
 0x83e   :  { %v5068_v20 = vadd.f32 %v4999_v19, %v7925_v12  ;;  %v5082_v41 = vadd.f32 %v7796_v36, %v5040_v0 }
 0x83f   :  { %v6572_v11 = vpop.eup %6571  ;;  %v5001_v21 = vpop.f32.mrf.mxu1 }
 0x840   :  { %v6059_v30 = vpop.f32.mrf.mxu0  ;;  %v5061_v37 = vmul.f32 %v6572_v11, %v5060_v5  ;;  %v5595_v32 = vmul.f32 -1.442695, %v5068_v20  ;;  %v5075_v53 = vadd.f32 %v5001_v21, %v7927_v23 }
 0x841   :  { %v5003_v31 = vpop.f32.mrf.mxu1  ;;  %v6574_v50 = vpop.eup %6573 }
 0x842   :  { %v5043_v57 = vpop.f32.mrf.mxu0  ;;  %v5062_v48 = vadd.f32 %v5061_v37, %v7926_v29  ;;  %6575 = vpow2.f32 %v5595_v32  ;;  %v5596_v60 = vmul.f32 -1.442695, %v5075_v53  ;;  %v5064_v47 = vsub.f32 1.0, %v6574_v50 }
 0x843   :  { %v5004_v22 = vpop.f32.mrf.mxu1  ;;  %v5066_v61 = vmul.f32 %v6574_v50, %v7781_v51 }
 0x844   :  { %v6060_v10 = vpop.f32.mrf.mxu0  ;;  %6577 = vtanh.f32 %v5062_v48 }
 0x845   :  { %6579 = vpow2.f32 %v5596_v60 }
 0x84f   :  { %v6576_v46 = vpop.eup %6575 }
 0x850   :  { %v5072_v16 = vadd.f32 1.0, %v6576_v46 }
 0x851   :  { %v6578_v17 = vpop.eup %6577 }
 0x852   :  { %v5065_v4 = vmul.f32 %v6578_v17, %v5064_v47  ;;  %6581 = vrcp.f32 %v5072_v16  ;;  %v6580_v13 = vpop.eup %6579 }
 0x853   :  { %v5079_v3 = vadd.f32 1.0, %v6580_v13 }
 0x854   :  { %v5067_v44 = vadd.f32 %v5066_v61, %v5065_v4 }
 0x855   :  { %6583 = vrcp.f32 %v5079_v3 }
 0x856   :  { %v5090_v38 = vsel %vm1264_vm11, %v5067_v44, 0.0 }
 0x857   :  { %v5091_v14 = vpack.c.bf16 %v5090_v38, %v5090_v38 }
 0x859   :  { %5092 = vst [vmem:[#allocation11 + $0x38] sm:$0xf] %v5091_v14 }
 0x85f   :  { %v6582_v63 = vpop.eup %6581 }
 0x860   :  { %v5083_v25 = vmul.f32 %v6582_v63, %v5082_v41 }
 0x862   :  { %v5084_v34 = vadd.f32 %v5083_v25, %v7929_v54  ;;  %v6584_v8 = vpop.eup %6583 }
 0x863   :  { %v5086_v49 = vsub.f32 1.0, %v6584_v8  ;;  %v5088_v7 = vmul.f32 %v6584_v8, %v7823_v39 }
 0x864   :  { %6585 = vtanh.f32 %v5084_v34 }
 0x871   :  { %v6586_v51 = vpop.eup %6585 }
 0x872   :  { %v5087_v40 = vmul.f32 %v6586_v51, %v5086_v49 }
 0x874   :  { %v5089_v35 = vadd.f32 %v5088_v7, %v5087_v40 }
 0x876   :  { %v5093_v26 = vsel %vm1258_vm9, %v5089_v35, 0.0 }
 0x877   :  { %v5094_v27 = vpack.c.bf16 %v5093_v26, %v5093_v26 }
 0x879   :  { %5095 = vst [vmem:[#allocation11 + $0x4] sm:$0xf] %v5094_v27 }
 0x87a   :  { %6697 = shalt.err (!%p6694_p10)
}
 0x87b   :  { %s6728_s20 = smov 128   ;;  %s6729_s2 = smov 8  }
 0x87c   :  { %5107 = dma.vmem_to_hbm [thread:$0]  %s5102_s18, 1024, %s7854_s8, [#allocation5], %s6728_s20, %s6728_s20, %s6729_s2  }
 0x87d   :  { %6712 = dma.done.wait [#allocation5], 1024  }
 0x87e   :  { %6713 = vsyncadd [#allocation5], 4294966272 }
 0x87f   :  { %5111 = vsyncpa [#allocation4], 1 }
 0x880   :  { %5112 = vsyncpa [#allocation7], 1 }
 0x881   :  { %5113 = vsyncpa [#allocation10], 1 }
 0x882   :  { %5114 = vsyncpa [#allocation5], 1 }

</bundles_post_ra>
